<compile_context>
chip_gen: v7x
topology: tpu7x:2x2x1
jax: 0.10.0
libtpu: 0.0.40
codegen_flags: <defaults>
</compile_context>

<pallas_src>
import math
import functools
import numpy as np
import jax
import jax.numpy as jnp
from jax.experimental import pallas as pl
from jax.experimental.pallas import tpu as pltpu

_SQRT_HALF = 0.7071067811865476


def _round_up(x, m):
    return ((x + m - 1) // m) * m


def _erf_approx(x):
    # Abramowitz & Stegun 7.1.26 rational approximation, |abs err| <= 1.5e-7.
    # Composed only of exp + VPU mul/add/div/select so it lowers on Mosaic.
    a1, a2, a3, a4, a5 = (0.254829592, -0.284496736, 1.421413741,
                          -1.453152027, 1.061405429)
    p = 0.3275911
    z = jnp.abs(x)
    k = 1.0 / (1.0 + p * z)          # VPU divide: EUP (sin/exp) is the hot slot
    poly = ((((a5 * k + a4) * k + a3) * k + a2) * k + a1) * k
    y = 1.0 - poly * jnp.exp(-(z * z))
    return jnp.where(x >= 0.0, y, -y)


def _gelu_erf(x):
    # PyTorch nn.GELU() default (approximate='none'): 0.5*x*(1+erf(x/sqrt(2)))
    return 0.5 * x * (1.0 + _erf_approx(x * _SQRT_HALF))


def _gelu_exact_ref(x):
    return 0.5 * x * (1.0 + jax.scipy.special.erf(x * _SQRT_HALF))


def _lgv_kernel(t_dim, hidden_dim, out_pad, t_ref, pp_ref, w0t_ref, wr_ref, o_ref):
    """Feature-major MLP: activations are (features, block_b), batch on lanes."""
    T, H = t_dim, hidden_dim
    t = t_ref[...]                              # (1, bB)  batch on lanes

    pe = pp_ref[:, 0:1]                         # (2T, 1) = concat([pe, pe])
    ph = pp_ref[:, 1:2]                         # (2T, 1) = concat([phase, phase+pi/2])
    b0 = pp_ref[0:H, 2:3]                       # (H, 1)
    b1 = pp_ref[0:H, 3:4]                       # (H, 1)
    b2 = pp_ref[0:H, 4:5]                       # (H, 1)
    b3 = pp_ref[0:out_pad, 5:6]                 # (out_pad, 1)

    # cos(arg) folded into sin(arg + pi/2) via the host-side phase offset on
    # rows T:2T -> a single jnp.sin over the full 2T-row embedding.
    t_emb = jnp.sin(pe * t + ph)                # (2T, bB)

    w0t = w0t_ref[...]                          # (H, 2T)      standard M,K @ K,N
    w1t = wr_ref[0:H, :]                        # (H, H)       pure sublane slices
    w2t = wr_ref[H:2 * H, :]                    # (H, H)
    w3t = wr_ref[2 * H:2 * H + out_pad, :]      # (out_pad, H)

    h = _gelu_erf(jnp.dot(w0t, t_emb, preferred_element_type=jnp.float32) + b0)
    h = _gelu_erf(jnp.dot(w1t, h, preferred_element_type=jnp.float32) + b1)
    h = _gelu_erf(jnp.dot(w2t, h, preferred_element_type=jnp.float32) + b2)
    # Lane-dense (out_pad, block_b) store; wrapper slices the out_dim valid rows.
    o_ref[...] = jnp.dot(w3t, h, preferred_element_type=jnp.float32) + b3


def pack_params(params):
    """Packs the 12 tiny operands into 3 arrays for the transposed dataflow."""
    pe, phase = params["pe"], params["phase"]          # (1, T), (1, T)
    w0, b0 = params["w0"], params["b0"]                # (2T, H), (1, H)
    w1, b1 = params["w1"], params["b1"]                # (H, H),  (1, H)
    w2, b2 = params["w2"], params["b2"]                # (H, H),  (1, H)
    w3, b3 = params["w3"], params["b3"]                # (H, out), (1, out)

    T = pe.shape[1]
    H = w1.shape[0]
    out_dim = w3.shape[1]
    out_pad = _round_up(out_dim, 8)

    # Layout assumptions (hold for the module defaults T=64, H=64, out_dim=1).
    assert 2 * T % 128 == 0, "2*t_dim must be a multiple of 128 lanes"
    assert H % 8 == 0 and H <= 2 * T, "hidden_dim must be 8-aligned and <= 2*t_dim"
    assert out_pad <= H and out_pad <= 2 * T, "out_dim too large for this packing"
    # TODO(synk): for out_dim > hidden_dim pass w3/b3 as separate operands.

    f32 = jnp.float32
    # (2T, 8) column table: col0 = pe|pe, col1 = phase|phase+pi/2 (cos fold),
    # cols 2..5 = the four bias vectors (as columns for the transposed layout).
    pp = jnp.zeros((2 * T, 8), f32)
    pp = pp.at[:, 0].set(jnp.concatenate([pe[0], pe[0]]).astype(f32))
    pp = pp.at[:, 1].set(jnp.concatenate(
        [phase[0], phase[0] + 0.5 * math.pi]).astype(f32))
    pp = pp.at[0:H, 2].set(b0[0].astype(f32))
    pp = pp.at[0:H, 3].set(b1[0].astype(f32))
    pp = pp.at[0:H, 4].set(b2[0].astype(f32))
    pp = pp.at[0:out_dim, 5].set(b3[0].astype(f32))

    w0t = w0.T.astype(f32)                                            # (H, 2T)
    w3t = jnp.zeros((out_pad, H), f32).at[:out_dim, :].set(w3.T.astype(f32))
    wrest = jnp.concatenate([w1.T.astype(f32), w2.T.astype(f32), w3t], axis=0)

    return dict(pp=pp, w0t=w0t, wrest=wrest,
                t_dim=T, hidden_dim=H, out_dim=out_dim, out_pad=out_pad)


def langevin_scaling_pis(t, packed, *, max_block_b=2048, core_parallel=False):
    """Whole MLP VMEM-resident; batch tiled on the lane axis."""
    T = packed["t_dim"]
    H = packed["hidden_dim"]
    out_dim = packed["out_dim"]
    out_pad = packed["out_pad"]
    pp, w0t, wrest = packed["pp"], packed["w0t"], packed["wrest"]

    B = int(t.shape[0])
    # Pad only to lane granularity (128); then fit the block size so at most
    # one extra 128-row per block is wasted (never round B up to a full
    # block_b multiple).
    B_lane = _round_up(B, 128)
    n_blocks = -(-B_lane // max_block_b)
    block_b = _round_up(-(-B_lane // n_blocks), 128)
    B_pad = n_blocks * block_b

    t_row = jnp.zeros((1, B_pad), jnp.float32).at[0, :B].set(
        t.reshape(-1).astype(jnp.float32))

    flops = 2 * B_pad * (2 * T * H + 2 * H * H + H * out_pad)
    transcendentals = B_pad * (2 * T + 3 * H)      # sin-only embedding + GELU exp
    bytes_accessed = 4 * (B_pad + out_pad * B_pad + pp.size + w0t.size + wrest.size)

    # TODO(synk): on v7x call with core_parallel=True so the batch axis shards
    # across its 2 TensorCores; plain "parallel" is safe (no-op) on 1-TC chips.
    sem = pltpu.CORE_PARALLEL if core_parallel else "parallel"

    out = pl.pallas_call(
        functools.partial(_lgv_kernel, T, H, out_pad),
        out_shape=jax.ShapeDtypeStruct((out_pad, B_pad), jnp.float32),
        grid=(n_blocks,),
        in_specs=[
            pl.BlockSpec((1, block_b), lambda i: (0, i)),         # t  (lane-dense)
            pl.BlockSpec((2 * T, 8), lambda i: (0, 0)),           # pe/phase/biases
            pl.BlockSpec((H, 2 * T), lambda i: (0, 0)),           # w0^T  (resident)
            pl.BlockSpec((wrest.shape[0], H), lambda i: (0, 0)),  # w1..3^T (resident)
        ],
        out_specs=pl.BlockSpec((out_pad, block_b), lambda i: (0, i)),
        compiler_params=pltpu.CompilerParams(dimension_semantics=(sem,)),
        cost_estimate=pl.CostEstimate(flops=flops,
                                      transcendentals=transcendentals,
                                      bytes_accessed=bytes_accessed),
    )(t_row, pp, w0t, wrest)

    return out[:out_dim, :B].T                     # (B, out_dim)


def reference(t, params):
    """Pure-JAX reference (true erf GELU, full-f32 matmuls, explicit sin+cos)."""
    dot = functools.partial(jnp.dot, precision=jax.lax.Precision.HIGHEST)
    arg = t * params["pe"] + params["phase"]
    t_emb = jnp.concatenate([jnp.sin(arg), jnp.cos(arg)], axis=-1)
    h = _gelu_exact_ref(dot(t_emb, params["w0"]) + params["b0"])
    h = _gelu_exact_ref(dot(h, params["w1"]) + params["b1"])
    h = _gelu_exact_ref(dot(h, params["w2"]) + params["b2"])
    return dot(h, params["w3"]) + params["b3"]


if __name__ == "__main__":
    # Module hyperparams (s_emb_dim is unused by forward, kept for parity).
    s_emb_dim = 64
    t_dim = 64
    hidden_dim = 64
    out_dim = 1
    B = 8

    key = jax.random.PRNGKey(0)
    ks = jax.random.split(key, 10)

    def lin(kw, kb, fan_in, fan_out):
        bound = 1.0 / math.sqrt(fan_in)
        w = jax.random.uniform(kw, (fan_in, fan_out), jnp.float32, -bound, bound)
        b = jax.random.uniform(kb, (1, fan_out), jnp.float32, -bound, bound)
        return w, b

    # Deterministic synthetic parameters (shapes as in the module __init__).
    pe = jnp.linspace(0.1, 100.0, t_dim, dtype=jnp.float32)[None, :]   # buffer (1, T)
    phase = jax.random.normal(ks[0], (1, t_dim), dtype=jnp.float32)    # timestep_phase
    w0, b0 = lin(ks[1], ks[2], 2 * t_dim, hidden_dim)                  # Linear(2T, H)
    w1, b1 = lin(ks[3], ks[4], hidden_dim, hidden_dim)                 # Linear(H, H)
    w2, b2 = lin(ks[5], ks[6], hidden_dim, hidden_dim)                 # Linear(H, H)
    w3, b3 = lin(ks[7], ks[8], hidden_dim, out_dim)                    # Linear(H, out)

    params = dict(pe=pe, phase=phase, w0=w0, b0=b0, w1=w1, b1=b1,
                  w2=w2, b2=b2, w3=w3, b3=b3)
    t = jax.random.uniform(ks[9], (B, 1), dtype=jnp.float32)

    packed = pack_params(params)
    out = jax.block_until_ready(langevin_scaling_pis(t, packed))

    # erf approximation sanity check (tolerance covers f32 rounding on-device).
    xs = jnp.linspace(-6.0, 6.0, 4097, dtype=jnp.float32)
    np.testing.assert_allclose(np.asarray(_erf_approx(xs)),
                               np.asarray(jax.scipy.special.erf(xs)),
                               atol=1e-6, rtol=0)

    ref = reference(t, params)
    assert out.shape == (B, out_dim) and out.dtype == jnp.float32
    # Tolerance absorbs the pi/2 cos-fold rounding at |arg|~100 and minor
    # transcendental/matmul implementation differences (Mosaic vs XLA), all
    # well below any semantically meaningful error.
    np.testing.assert_allclose(np.asarray(out), np.asarray(ref),
                               rtol=1e-3, atol=1e-3)
    print("KERNEL_OK")
</pallas_src>

<mosaic_0001>
module attributes {stable_mosaic.version = 11 : i64} {
  func.func @_lgv_kernel(%arg0: i32, %arg1: memref<1x128xf32, #tpu.memory_space<vmem>>, %arg2: memref<128x8xf32, #tpu.memory_space<vmem>>, %arg3: memref<64x128xf32, #tpu.memory_space<vmem>>, %arg4: memref<136x64xf32, #tpu.memory_space<vmem>>, %arg5: memref<8x128xf32, #tpu.memory_space<vmem>>) attributes {dimension_semantics = [#tpu.dimension_semantics<parallel>], iteration_bounds = array<i64: 1>, scalar_prefetch = 0 : i64, scratch_operands = 0 : i64, tpu.core_type = #tpu.core_type<tc>, window_params = [{transform_indices = @transform_0, window_bounds = array<i64: 1, 128>}, {pipeline_mode = #tpu.pipeline_mode<synchronous>, transform_indices = @transform_1, window_bounds = array<i64: 128, 8>}, {pipeline_mode = #tpu.pipeline_mode<synchronous>, transform_indices = @transform_2, window_bounds = array<i64: 64, 128>}, {pipeline_mode = #tpu.pipeline_mode<synchronous>, transform_indices = @transform_3, window_bounds = array<i64: 136, 64>}, {transform_indices = @transform_4, window_bounds = array<i64: 8, 128>}]} {
    %c0 = arith.constant 0 : index
    %c0_0 = arith.constant 0 : index
    %0 = vector.load %arg1[%c0, %c0_0] : memref<1x128xf32, #tpu.memory_space<vmem>>, vector<1x128xf32>
    %c0_1 = arith.constant 0 : index
    %c0_2 = arith.constant 0 : index
    %1 = vector.load %arg2[%c0_1, %c0_2] : memref<128x8xf32, #tpu.memory_space<vmem>>, vector<128x1xf32>
    %c0_3 = arith.constant 0 : index
    %c1 = arith.constant 1 : index
    %2 = vector.load %arg2[%c0_3, %c1] : memref<128x8xf32, #tpu.memory_space<vmem>>, vector<128x1xf32>
    %c0_4 = arith.constant 0 : index
    %c2 = arith.constant 2 : index
    %3 = vector.load %arg2[%c0_4, %c2] : memref<128x8xf32, #tpu.memory_space<vmem>>, vector<64x1xf32>
    %c0_5 = arith.constant 0 : index
    %c3 = arith.constant 3 : index
    %4 = vector.load %arg2[%c0_5, %c3] : memref<128x8xf32, #tpu.memory_space<vmem>>, vector<64x1xf32>
    %c0_6 = arith.constant 0 : index
    %c4 = arith.constant 4 : index
    %5 = vector.load %arg2[%c0_6, %c4] : memref<128x8xf32, #tpu.memory_space<vmem>>, vector<64x1xf32>
    %c0_7 = arith.constant 0 : index
    %c5 = arith.constant 5 : index
    %6 = vector.load %arg2[%c0_7, %c5] : memref<128x8xf32, #tpu.memory_space<vmem>>, vector<8x1xf32>
    %7 = vector.broadcast %1 : vector<128x1xf32> to vector<128x128xf32>
    %8 = vector.broadcast %0 : vector<1x128xf32> to vector<128x128xf32>
    %9 = arith.mulf %7, %8 : vector<128x128xf32>
    %10 = vector.broadcast %2 : vector<128x1xf32> to vector<128x128xf32>
    %11 = arith.addf %9, %10 : vector<128x128xf32>
    %12 = math.sin %11 : vector<128x128xf32>
    %c0_8 = arith.constant 0 : index
    %c0_9 = arith.constant 0 : index
    %13 = vector.load %arg3[%c0_8, %c0_9] : memref<64x128xf32, #tpu.memory_space<vmem>>, vector<64x128xf32>
    %c0_10 = arith.constant 0 : index
    %c0_11 = arith.constant 0 : index
    %14 = vector.load %arg4[%c0_10, %c0_11] : memref<136x64xf32, #tpu.memory_space<vmem>>, vector<64x64xf32>
    %c64 = arith.constant 64 : index
    %c0_12 = arith.constant 0 : index
    %15 = vector.load %arg4[%c64, %c0_12] : memref<136x64xf32, #tpu.memory_space<vmem>>, vector<64x64xf32>
    %c128 = arith.constant 128 : index
    %c0_13 = arith.constant 0 : index
    %16 = vector.load %arg4[%c128, %c0_13] : memref<136x64xf32, #tpu.memory_space<vmem>>, vector<8x64xf32>
    %cst = arith.constant dense<0.000000e+00> : vector<64x128xf32>
    %17 = tpu.matmul %13, %12, %cst {dimension_numbers = #tpu.dot_dimension_numbers<[1], [0], [0], [1], [0, 0, 1, 1], [], []>} : vector<64x128xf32>, vector<128x128xf32>, vector<64x128xf32> -> vector<64x128xf32>
    %18 = vector.broadcast %3 : vector<64x1xf32> to vector<64x128xf32>
    %19 = arith.addf %17, %18 : vector<64x128xf32>
    %cst_14 = arith.constant 5.000000e-01 : f32
    %20 = vector.broadcast %cst_14 : f32 to vector<64x128xf32>
    %21 = arith.mulf %20, %19 : vector<64x128xf32>
    %cst_15 = arith.constant 0.707106769 : f32
    %22 = vector.broadcast %cst_15 : f32 to vector<64x128xf32>
    %23 = arith.mulf %19, %22 : vector<64x128xf32>
    %24 = math.absf %23 : vector<64x128xf32>
    %cst_16 = arith.constant 0.327591091 : f32
    %25 = vector.broadcast %cst_16 : f32 to vector<64x128xf32>
    %26 = arith.mulf %25, %24 : vector<64x128xf32>
    %cst_17 = arith.constant 1.000000e+00 : f32
    %27 = vector.broadcast %cst_17 : f32 to vector<64x128xf32>
    %28 = arith.addf %27, %26 : vector<64x128xf32>
    %cst_18 = arith.constant 1.000000e+00 : f32
    %29 = vector.broadcast %cst_18 : f32 to vector<64x128xf32>
    %30 = arith.divf %29, %28 : vector<64x128xf32>
    %cst_19 = arith.constant 1.06140542 : f32
    %31 = vector.broadcast %cst_19 : f32 to vector<64x128xf32>
    %32 = arith.mulf %31, %30 : vector<64x128xf32>
    %cst_20 = arith.constant -1.45315206 : f32
    %33 = vector.broadcast %cst_20 : f32 to vector<64x128xf32>
    %34 = arith.addf %32, %33 : vector<64x128xf32>
    %35 = arith.mulf %34, %30 : vector<64x128xf32>
    %cst_21 = arith.constant 1.42141378 : f32
    %36 = vector.broadcast %cst_21 : f32 to vector<64x128xf32>
    %37 = arith.addf %35, %36 : vector<64x128xf32>
    %38 = arith.mulf %37, %30 : vector<64x128xf32>
    %cst_22 = arith.constant -0.284496725 : f32
    %39 = vector.broadcast %cst_22 : f32 to vector<64x128xf32>
    %40 = arith.addf %38, %39 : vector<64x128xf32>
    %41 = arith.mulf %40, %30 : vector<64x128xf32>
    %cst_23 = arith.constant 0.254829586 : f32
    %42 = vector.broadcast %cst_23 : f32 to vector<64x128xf32>
    %43 = arith.addf %41, %42 : vector<64x128xf32>
    %44 = arith.mulf %43, %30 : vector<64x128xf32>
    %45 = arith.mulf %24, %24 : vector<64x128xf32>
    %cst_24 = arith.constant 0.000000e+00 : f32
    %46 = vector.broadcast %cst_24 : f32 to vector<64x128xf32>
    %47 = arith.subf %46, %45 : vector<64x128xf32>
    %48 = math.exp %47 : vector<64x128xf32>
    %49 = arith.mulf %44, %48 : vector<64x128xf32>
    %cst_25 = arith.constant 1.000000e+00 : f32
    %50 = vector.broadcast %cst_25 : f32 to vector<64x128xf32>
    %51 = arith.subf %50, %49 : vector<64x128xf32>
    %cst_26 = arith.constant 0.000000e+00 : f32
    %52 = vector.broadcast %cst_26 : f32 to vector<64x128xf32>
    %53 = arith.cmpf oge, %23, %52 : vector<64x128xf32>
    %cst_27 = arith.constant 0.000000e+00 : f32
    %54 = vector.broadcast %cst_27 : f32 to vector<64x128xf32>
    %55 = arith.subf %54, %51 : vector<64x128xf32>
    %56 = arith.select %53, %51, %55 : vector<64x128xi1>, vector<64x128xf32>
    %cst_28 = arith.constant 1.000000e+00 : f32
    %57 = vector.broadcast %cst_28 : f32 to vector<64x128xf32>
    %58 = arith.addf %57, %56 : vector<64x128xf32>
    %59 = arith.mulf %21, %58 : vector<64x128xf32>
    %cst_29 = arith.constant dense<0.000000e+00> : vector<64x128xf32>
    %60 = tpu.matmul %14, %59, %cst_29 {dimension_numbers = #tpu.dot_dimension_numbers<[1], [0], [0], [1], [0, 0, 1, 1], [], []>} : vector<64x64xf32>, vector<64x128xf32>, vector<64x128xf32> -> vector<64x128xf32>
    %61 = vector.broadcast %4 : vector<64x1xf32> to vector<64x128xf32>
    %62 = arith.addf %60, %61 : vector<64x128xf32>
    %cst_30 = arith.constant 5.000000e-01 : f32
    %63 = vector.broadcast %cst_30 : f32 to vector<64x128xf32>
    %64 = arith.mulf %63, %62 : vector<64x128xf32>
    %cst_31 = arith.constant 0.707106769 : f32
    %65 = vector.broadcast %cst_31 : f32 to vector<64x128xf32>
    %66 = arith.mulf %62, %65 : vector<64x128xf32>
    %67 = math.absf %66 : vector<64x128xf32>
    %cst_32 = arith.constant 0.327591091 : f32
    %68 = vector.broadcast %cst_32 : f32 to vector<64x128xf32>
    %69 = arith.mulf %68, %67 : vector<64x128xf32>
    %cst_33 = arith.constant 1.000000e+00 : f32
    %70 = vector.broadcast %cst_33 : f32 to vector<64x128xf32>
    %71 = arith.addf %70, %69 : vector<64x128xf32>
    %cst_34 = arith.constant 1.000000e+00 : f32
    %72 = vector.broadcast %cst_34 : f32 to vector<64x128xf32>
    %73 = arith.divf %72, %71 : vector<64x128xf32>
    %cst_35 = arith.constant 1.06140542 : f32
    %74 = vector.broadcast %cst_35 : f32 to vector<64x128xf32>
    %75 = arith.mulf %74, %73 : vector<64x128xf32>
    %cst_36 = arith.constant -1.45315206 : f32
    %76 = vector.broadcast %cst_36 : f32 to vector<64x128xf32>
    %77 = arith.addf %75, %76 : vector<64x128xf32>
    %78 = arith.mulf %77, %73 : vector<64x128xf32>
    %cst_37 = arith.constant 1.42141378 : f32
    %79 = vector.broadcast %cst_37 : f32 to vector<64x128xf32>
    %80 = arith.addf %78, %79 : vector<64x128xf32>
    %81 = arith.mulf %80, %73 : vector<64x128xf32>
    %cst_38 = arith.constant -0.284496725 : f32
    %82 = vector.broadcast %cst_38 : f32 to vector<64x128xf32>
    %83 = arith.addf %81, %82 : vector<64x128xf32>
    %84 = arith.mulf %83, %73 : vector<64x128xf32>
    %cst_39 = arith.constant 0.254829586 : f32
    %85 = vector.broadcast %cst_39 : f32 to vector<64x128xf32>
    %86 = arith.addf %84, %85 : vector<64x128xf32>
    %87 = arith.mulf %86, %73 : vector<64x128xf32>
    %88 = arith.mulf %67, %67 : vector<64x128xf32>
    %cst_40 = arith.constant 0.000000e+00 : f32
    %89 = vector.broadcast %cst_40 : f32 to vector<64x128xf32>
    %90 = arith.subf %89, %88 : vector<64x128xf32>
    %91 = math.exp %90 : vector<64x128xf32>
    %92 = arith.mulf %87, %91 : vector<64x128xf32>
    %cst_41 = arith.constant 1.000000e+00 : f32
    %93 = vector.broadcast %cst_41 : f32 to vector<64x128xf32>
    %94 = arith.subf %93, %92 : vector<64x128xf32>
    %cst_42 = arith.constant 0.000000e+00 : f32
    %95 = vector.broadcast %cst_42 : f32 to vector<64x128xf32>
    %96 = arith.cmpf oge, %66, %95 : vector<64x128xf32>
    %cst_43 = arith.constant 0.000000e+00 : f32
    %97 = vector.broadcast %cst_43 : f32 to vector<64x128xf32>
    %98 = arith.subf %97, %94 : vector<64x128xf32>
    %99 = arith.select %96, %94, %98 : vector<64x128xi1>, vector<64x128xf32>
    %cst_44 = arith.constant 1.000000e+00 : f32
    %100 = vector.broadcast %cst_44 : f32 to vector<64x128xf32>
    %101 = arith.addf %100, %99 : vector<64x128xf32>
    %102 = arith.mulf %64, %101 : vector<64x128xf32>
    %cst_45 = arith.constant dense<0.000000e+00> : vector<64x128xf32>
    %103 = tpu.matmul %15, %102, %cst_45 {dimension_numbers = #tpu.dot_dimension_numbers<[1], [0], [0], [1], [0, 0, 1, 1], [], []>} : vector<64x64xf32>, vector<64x128xf32>, vector<64x128xf32> -> vector<64x128xf32>
    %104 = vector.broadcast %5 : vector<64x1xf32> to vector<64x128xf32>
    %105 = arith.addf %103, %104 : vector<64x128xf32>
    %cst_46 = arith.constant 5.000000e-01 : f32
    %106 = vector.broadcast %cst_46 : f32 to vector<64x128xf32>
    %107 = arith.mulf %106, %105 : vector<64x128xf32>
    %cst_47 = arith.constant 0.707106769 : f32
    %108 = vector.broadcast %cst_47 : f32 to vector<64x128xf32>
    %109 = arith.mulf %105, %108 : vector<64x128xf32>
    %110 = math.absf %109 : vector<64x128xf32>
    %cst_48 = arith.constant 0.327591091 : f32
    %111 = vector.broadcast %cst_48 : f32 to vector<64x128xf32>
    %112 = arith.mulf %111, %110 : vector<64x128xf32>
    %cst_49 = arith.constant 1.000000e+00 : f32
    %113 = vector.broadcast %cst_49 : f32 to vector<64x128xf32>
    %114 = arith.addf %113, %112 : vector<64x128xf32>
    %cst_50 = arith.constant 1.000000e+00 : f32
    %115 = vector.broadcast %cst_50 : f32 to vector<64x128xf32>
    %116 = arith.divf %115, %114 : vector<64x128xf32>
    %cst_51 = arith.constant 1.06140542 : f32
    %117 = vector.broadcast %cst_51 : f32 to vector<64x128xf32>
    %118 = arith.mulf %117, %116 : vector<64x128xf32>
    %cst_52 = arith.constant -1.45315206 : f32
    %119 = vector.broadcast %cst_52 : f32 to vector<64x128xf32>
    %120 = arith.addf %118, %119 : vector<64x128xf32>
    %121 = arith.mulf %120, %116 : vector<64x128xf32>
    %cst_53 = arith.constant 1.42141378 : f32
    %122 = vector.broadcast %cst_53 : f32 to vector<64x128xf32>
    %123 = arith.addf %121, %122 : vector<64x128xf32>
    %124 = arith.mulf %123, %116 : vector<64x128xf32>
    %cst_54 = arith.constant -0.284496725 : f32
    %125 = vector.broadcast %cst_54 : f32 to vector<64x128xf32>
    %126 = arith.addf %124, %125 : vector<64x128xf32>
    %127 = arith.mulf %126, %116 : vector<64x128xf32>
    %cst_55 = arith.constant 0.254829586 : f32
    %128 = vector.broadcast %cst_55 : f32 to vector<64x128xf32>
    %129 = arith.addf %127, %128 : vector<64x128xf32>
    %130 = arith.mulf %129, %116 : vector<64x128xf32>
    %131 = arith.mulf %110, %110 : vector<64x128xf32>
    %cst_56 = arith.constant 0.000000e+00 : f32
    %132 = vector.broadcast %cst_56 : f32 to vector<64x128xf32>
    %133 = arith.subf %132, %131 : vector<64x128xf32>
    %134 = math.exp %133 : vector<64x128xf32>
    %135 = arith.mulf %130, %134 : vector<64x128xf32>
    %cst_57 = arith.constant 1.000000e+00 : f32
    %136 = vector.broadcast %cst_57 : f32 to vector<64x128xf32>
    %137 = arith.subf %136, %135 : vector<64x128xf32>
    %cst_58 = arith.constant 0.000000e+00 : f32
    %138 = vector.broadcast %cst_58 : f32 to vector<64x128xf32>
    %139 = arith.cmpf oge, %109, %138 : vector<64x128xf32>
    %cst_59 = arith.constant 0.000000e+00 : f32
    %140 = vector.broadcast %cst_59 : f32 to vector<64x128xf32>
    %141 = arith.subf %140, %137 : vector<64x128xf32>
    %142 = arith.select %139, %137, %141 : vector<64x128xi1>, vector<64x128xf32>
    %cst_60 = arith.constant 1.000000e+00 : f32
    %143 = vector.broadcast %cst_60 : f32 to vector<64x128xf32>
    %144 = arith.addf %143, %142 : vector<64x128xf32>
    %145 = arith.mulf %107, %144 : vector<64x128xf32>
    %cst_61 = arith.constant dense<0.000000e+00> : vector<8x128xf32>
    %146 = tpu.matmul %16, %145, %cst_61 {dimension_numbers = #tpu.dot_dimension_numbers<[1], [0], [0], [1], [0, 0, 1, 1], [], []>} : vector<8x64xf32>, vector<64x128xf32>, vector<8x128xf32> -> vector<8x128xf32>
    %147 = vector.broadcast %6 : vector<8x1xf32> to vector<8x128xf32>
    %148 = arith.addf %146, %147 : vector<8x128xf32>
    %c0_62 = arith.constant 0 : index
    %c0_63 = arith.constant 0 : index
    %149 = vector.load %arg5[%c0_62, %c0_63] : memref<8x128xf32, #tpu.memory_space<vmem>>, vector<8x128xf32>
    tpu.vector_store %arg5[%c0_62, %c0_63], %148 {strides = array<i32>} : memref<8x128xf32, #tpu.memory_space<vmem>>, vector<8x128xf32>,
    return
  }
  func.func @transform_0(%arg0: i32) -> (i32, i32) {
    %c0_i32 = arith.constant 0 : i32
    %c0_i32_0 = arith.constant 0 : i32
    return %c0_i32, %arg0 : i32, i32
  }
  func.func @transform_1(%arg0: i32) -> (i32, i32) {
    %c0_i32 = arith.constant 0 : i32
    %c0_i32_0 = arith.constant 0 : i32
    %c0_i32_1 = arith.constant 0 : i32
    return %c0_i32, %c0_i32_0 : i32, i32
  }
  func.func @transform_2(%arg0: i32) -> (i32, i32) {
    %c0_i32 = arith.constant 0 : i32
    %c0_i32_0 = arith.constant 0 : i32
    %c0_i32_1 = arith.constant 0 : i32
    return %c0_i32, %c0_i32_0 : i32, i32
  }
  func.func @transform_3(%arg0: i32) -> (i32, i32) {
    %c0_i32 = arith.constant 0 : i32
    %c0_i32_0 = arith.constant 0 : i32
    %c0_i32_1 = arith.constant 0 : i32
    return %c0_i32, %c0_i32_0 : i32, i32
  }
  func.func @transform_4(%arg0: i32) -> (i32, i32) {
    %c0_i32 = arith.constant 0 : i32
    %c0_i32_0 = arith.constant 0 : i32
    return %c0_i32, %arg0 : i32, i32
  }
}

</mosaic_0001>

<bundles_post_ra>
// kernel: tpu_custom_call.1
= control target key start
LH: loop header
LB: loop body
LE: loop exit
PB: predicated region body
PF: predicated region fallthrough
CT: control target
= control target key end

     0   :  { %v3747_v2 = vmov 1   ;;  %s5935_s0 = inlined_call_operand.vmem [shape: f32[1,128], index: 0, kind: input, shape index: {}]   ;;  %s5936_s1 = inlined_call_operand.vmem [shape: f32[128,8], index: 1, kind: input, shape index: {}]   ;;  %s5937_s2 = inlined_call_operand.vmem [shape: f32[64,128], index: 2, kind: input, shape index: {}]   ;;  %s5938_s3 = inlined_call_operand.vmem [shape: f32[136,64], index: 3, kind: input, shape index: {}]   ;;  %s5939_s4 = inlined_call_operand.hbm [shape: f32[8,128], index: 4, kind: output, shape index: {}]  }
   0x1   :  { %v21_v0 = vld [vmem:[%s5936_s1 + $0x10] sm:$0xff]  ;;  %v19_v1 = vld [vmem:[%s5936_s1] sm:$0xff]  ;;  %3530 = vset.pattern.permute.xlu0 %v3747_v2  ;;  %3528 = vset.pattern.permute.xlu1 %v3747_v2  ;;  %v20_v4 = vld [vmem:[%s5936_s1 + $0x8] sm:$0xff] }
   0x2   :  { %146 = vperm.xlu0 %3530, %v21_v0   ;;  %138 = vperm.xlu1 %3528, %v19_v1   ;;  %v25_v3 = vld [vmem:[%s5936_s1 + $0x30] sm:$0xff] }
   0x3   :  { %9 = vsyncpa [#allocation3], 0  ;;  %v29_v5 = vld [vmem:[%s5936_s1 + $0x50] sm:$0xff]  ;;  %v22_v6 = vld [vmem:[%s5936_s1 + $0x18] sm:$0xff]  ;;  %v3748_v7 = vmov 0   ;;  %s3762_s9 = smov [#allocation2]  }
   0x4   :  { %v23_v8 = vld [vmem:[%s5936_s1 + $0x20] sm:$0xff]  ;;  %v24_v9 = vld [vmem:[%s5936_s1 + $0x28] sm:$0xff]  ;;  %v26_v11 = vld [vmem:[%s5936_s1 + $0x38] sm:$0xff]  ;;  %v5951_v46 = vmov 683565275   ;;  %s3098_s10 = sshll.u32 %s3762_s9, 4  ;;  %s3099_s10 = int_to_ptr.vmem [resolvable:$true] %s3098_s10 }
   0x5   :  { %v28_v10 = vld [vmem:[%s5936_s1 + $0x48] sm:$0xff]  ;;  %v27_v13 = vld [vmem:[%s5936_s1 + $0x40] sm:$0xff]  ;;  %v33_v14 = vld [vmem:[%s5936_s1 + $0x70] sm:$0xff]  ;;  %v5946_v48 = vmov 2475754826   ;;  %s3723_s11 = scalar_lea.vmem %s3099_s10, 128  ;;  %p3728_p1 = scmp.lt.s32.totalorder %s3099_s10, %s3099_s10 }
   0x6   :  { %162 = vperm.xlu0 %3530, %v25_v3   ;;  %142 = vperm.xlu1 %3528, %v20_v4   ;;  %v32_v12 = vld [vmem:[%s5936_s1 + $0x68] sm:$0xff]  ;;  %v30_v15 = vld [vmem:[%s5936_s1 + $0x58] sm:$0xff]  ;;  %v31_v16 = vld [vmem:[%s5936_s1 + $0x60] sm:$0xff]  ;;  %v5944_v52 = vmov 2131351028   ;;  %p3724_p0 = scmp.ne.s32.totalorder %s3099_s10, %s3723_s11  ;;  %p3729_p2 = scmp.lt.s32.totalorder %s3723_s11, %s3723_s11 }
   0x7   :  { %v34_v17 = vld [vmem:[%s5936_s1 + $0x78] sm:$0xff]  ;;  %v3853_v24 = vld [vmem:[%s5935_s0] ss:$0 sm:$0xff]  ;;  %v5948_v55 = vmov 2102212464  }
   0x8   :  { %v5963_v61 = vmov 920167782   ;;  %p3730_p3 = por %p3729_p2, %p3728_p1 }
   0xa   :  { %178 = vperm.xlu0 %3530, %v29_v5   ;;  %3529 = vset.pattern.permute.xlu1 %v3748_v7  ;;  %p3731_p4 = pnand %p3730_p3, %p3724_p0 }
   0xb   :  { %52 = vperm.xlu1 %3529, %v22_v6  }
   0xe   :  { %3539 = vset.pattern.permute.xlu0 %v3748_v7 }
   0xf   :  { %37 = vperm.xlu0 %3539, %v19_v1   ;;  %3531 = vset.pattern.permute.xlu1 %v3747_v2 }
  0x10   :  { %150 = vperm.xlu1 %3531, %v22_v6  }
  0x13   :  { %42 = vperm.xlu0 %3539, %v20_v4  }
  0x14   :  { %3532 = vset.pattern.permute.xlu1 %v3748_v7 }
  0x15   :  { %57 = vperm.xlu1 %3532, %v23_v8  }
  0x17   :  { %47 = vperm.xlu0 %3539, %v21_v0  }
  0x19   :  { %3533 = vset.pattern.permute.xlu1 %v3747_v2 }
  0x1a   :  { %154 = vperm.xlu1 %3533, %v23_v8  }
  0x1b   :  { %62 = vperm.xlu0 %3539, %v24_v9  }
  0x1e   :  { %158 = vperm.xlu1 %3533, %v24_v9  }
  0x1f   :  { %67 = vperm.xlu0 %3539, %v25_v3  }
  0x22   :  { %3534 = vset.pattern.permute.xlu1 %v3748_v7 }
  0x23   :  { %82 = vperm.xlu0 %3539, %v28_v10   ;;  %72 = vperm.xlu1 %3534, %v26_v11  }
  0x27   :  { %87 = vperm.xlu0 %3539, %v29_v5   ;;  %3535 = vset.pattern.permute.xlu1 %v3747_v2  ;;  %v5953_v5 = vmov 1326507024  }
  0x28   :  { %166 = vperm.xlu1 %3535, %v26_v11  }
  0x2b   :  { %102 = vperm.xlu0 %3539, %v32_v12  }
  0x2c   :  { %3536 = vset.pattern.permute.xlu1 %v3748_v7 }
  0x2d   :  { %77 = vperm.xlu1 %3536, %v27_v13  }
  0x2f   :  { %107 = vperm.xlu0 %3539, %v33_v14  }
  0x31   :  { %3537 = vset.pattern.permute.xlu1 %v3747_v2 }
  0x32   :  { %170 = vperm.xlu1 %3537, %v27_v13  }
  0x33   :  { %3544 = vset.pattern.permute.xlu0 %v3747_v2 }
  0x34   :  { %194 = vperm.xlu0 %3544, %v33_v14  }
  0x36   :  { %174 = vperm.xlu1 %3537, %v28_v10  }
  0x3a   :  { %3538 = vset.pattern.permute.xlu1 %v3748_v7 }
  0x3b   :  { %92 = vperm.xlu1 %3538, %v30_v15  }
  0x3f   :  { %3540 = vset.pattern.permute.xlu1 %v3747_v2 }
  0x40   :  { %182 = vperm.xlu1 %3540, %v30_v15  }
  0x44   :  { %3541 = vset.pattern.permute.xlu1 %v3748_v7 }
  0x45   :  { %97 = vperm.xlu1 %3541, %v31_v16  }
  0x49   :  { %3542 = vset.pattern.permute.xlu1 %v3747_v2 }
  0x4a   :  { %186 = vperm.xlu1 %3542, %v31_v16  }
  0x4e   :  { %190 = vperm.xlu1 %3542, %v32_v12  }
  0x52   :  { %3543 = vset.pattern.permute.xlu1 %v3748_v7 }
  0x53   :  { %112 = vperm.xlu1 %3543, %v34_v17  }
  0x57   :  { %3545 = vset.pattern.permute.xlu1 %v3747_v2 }
  0x58   :  { %198 = vperm.xlu1 %3545, %v34_v17  }
  0x81   :  { %v139_v18 = vpop.permute.xlu1 %138  ;;  %v147_v19 = vpop.permute.xlu0 %146 }
  0x85   :  { %v143_v20 = vpop.permute.xlu1 %142  ;;  %v3846_v21 = vpop.permute.xlu0 %162 }
  0x89   :  { %v3848_v22 = vpop.permute.xlu0 %178 }
  0x8a   :  { %v53_v23 = vpop.permute.xlu1 %52 }
  0x8b   :  { %v124_v25 = vmul.f32 %v3853_v24, %v53_v23 }
  0x8e   :  { %v38_v26 = vpop.permute.xlu0 %37 }
  0x8f   :  { %v151_v27 = vpop.permute.xlu1 %150  ;;  %v121_v31 = vmul.f32 %v3853_v24, %v38_v26 }
  0x90   :  { %v3856_v28 = vadd.f32 %v151_v27, %v124_v25 }
  0x91   :  { %v3861_v36 = vadd.f32 %v139_v18, %v121_v31 }
  0x92   :  { %6045 = vst [vmem:[#allocation5_spill] sm:$0xff] %v3856_v28  ;;  %v532_v29 = vand.u32 2139095040, %v3856_v28  ;;  %v43_v32 = vpop.permute.xlu0 %42  ;;  %v5943_v34 = vand.u32 2147483647, %v3856_v28 }
  0x93   :  { %v122_v39 = vmul.f32 %v3853_v24, %v43_v32  ;;  %v220_v42 = vand.u32 2139095040, %v3861_v36 }
  0x94   :  { %v533_v30 = vshrl.u32 %v532_v29, 23  ;;  %v536_v37 = vand.u32 8388607, %v5943_v34  ;;  %v58_v57 = vpop.permute.xlu1 %57 }
  0x95   :  { %v3870_v50 = vadd.f32 %v143_v20, %v122_v39  ;;  %v221_v58 = vshrl.u32 %v220_v42, 23  ;;  %v125_v7 = vmul.f32 %v3853_v24, %v58_v57 }
  0x96   :  { %v3119_v33 = vadd.s32 4294967169, %v533_v30  ;;  %v48_v40 = vpop.permute.xlu0 %47  ;;  %v537_v45 = vor.u32 8388608, %v536_v37 }
  0x97   :  { %v123_v44 = vmul.f32 %v3853_v24, %v48_v40  ;;  %v324_v10 = vand.u32 2139095040, %v3870_v50  ;;  %v3107_v29 = vadd.s32 4294967169, %v221_v58 }
  0x98   :  { %v539_v35 = vadd.s32 1, %v3119_v33  ;;  %v577_v9 = vshll.u32 %v537_v45, 8 }
  0x99   :  { %v3878_v2 = vadd.f32 %v147_v19, %v123_v44  ;;  %v155_v27 = vpop.permute.xlu1 %154  ;;  %v325_v40 = vshrl.u32 %v324_v10, 23  ;;  %v227_v42 = vadd.s32 1, %v3107_v29 }
  0x9a   :  { %vm540_vm0 = vcmp.gt.s32.totalorder %v539_v35, 0  ;;  %v3894_v39 = vadd.f32 %v155_v27, %v125_v7 }
  0x9b   :  { %v541_v38 = vsel %vm540_vm0, %v539_v35, 0  ;;  %6046 = vst [vmem:[#allocation6_spill] sm:$0xff] %v3878_v2  ;;  %v5940_v11 = vand.u32 2147483647, %v3878_v2  ;;  %v428_v19 = vand.u32 2139095040, %v3878_v2  ;;  %vm228_vm6 = vcmp.gt.s32.totalorder %v227_v42, 0 }
  0x9c   :  { %v543_v41 = vand.u32 31, %v541_v38  ;;  %v542_v59 = vshrl.u32 %v541_v38, 5  ;;  %6047 = vst [vmem:[#allocation7_spill] sm:$0xff] %v3894_v39 }
  0x9d   :  { %v429_v38 = vshrl.u32 %v428_v19, 23 }
  0x9e   :  { %v544_v43 = vsub.s32 32, %v543_v41  ;;  %v546_v47 = vshll.u32 %v5951_v46, %v543_v41  ;;  %v549_v49 = vshll.u32 %v5946_v48, %v543_v41  ;;  %v552_v54 = vshll.u32 %v5944_v52, %v543_v41 }
  0x9f   :  { %v555_v60 = vshll.u32 %v5948_v55, %v543_v41  ;;  %v558_v4 = vshll.u32 %v5963_v61, %v543_v41  ;;  %vm561_vm1 = vcmp.lt.s32.totalorder %v542_v59, 1  ;;  %vm563_vm2 = vcmp.lt.s32.totalorder %v542_v59, 3 }
  0xa0   :  { %v547_v51 = vshrl.u32 %v5946_v48, %v544_v43  ;;  %v550_v53 = vshrl.u32 %v5944_v52, %v544_v43  ;;  %v553_v56 = vshrl.u32 %v5948_v55, %v544_v43  ;;  %v556_v62 = vshrl.u32 %v5963_v61, %v544_v43 }
  0xa1   :  { %v559_v6 = vshrl.u32 %v5953_v5, %v544_v43  ;;  %v545_v8 = vshrl.u32 %v5951_v46, %v544_v43  ;;  %vm564_vm3 = vcmp.lt.s32.totalorder %v542_v59, 4  ;;  %vm562_vm4 = vcmp.lt.s32.totalorder %v542_v59, 2 }
  0xa2   :  { %v548_v63 = vor.u32 %v547_v51, %v546_v47  ;;  %v551_v0 = vor.u32 %v550_v53, %v549_v49  ;;  %v554_v1 = vor.u32 %v553_v56, %v552_v54  ;;  %v557_v3 = vor.u32 %v556_v62, %v555_v60 }
  0xa3   :  { %v560_v12 = vor.u32 %v559_v6, %v558_v4  ;;  %v432_v41 = vand.u32 8388607, %v5940_v11  ;;  %v3115_v44 = vadd.s32 4294967169, %v429_v38  ;;  %v636_v51 = vand.u32 2139095040, %v3894_v39 }
  0xa4   :  { %v566_v13 = vsel %vm564_vm3, %v554_v1, 2102212464  ;;  %v569_v14 = vsel %vm561_vm1, %v548_v63, %v551_v0  ;;  %v570_v15 = vsel %vm564_vm3, %v557_v3, 920167782  ;;  %v573_v16 = vsel %vm561_vm1, %v551_v0, %v554_v1 }
  0xa5   :  { %v571_v17 = vsel %vm563_vm2, %v554_v1, %v570_v15  ;;  %v574_v18 = vsel %vm564_vm3, %v560_v12, 1326507024  ;;  %v565_v20 = vsel %vm561_vm1, %v545_v8, %v548_v63  ;;  %v567_v23 = vsel %vm563_vm2, %v551_v0, %v566_v13 }
  0xa6   :  { %v572_v25 = vsel %vm562_vm4, %v569_v14, %v571_v17  ;;  %v575_v26 = vsel %vm563_vm2, %v557_v3, %v574_v18  ;;  %v568_v37 = vsel %vm562_vm4, %v565_v20, %v567_v23  ;;  %v435_v49 = vadd.s32 1, %v3115_v44 }
  0xa7   :  { %v576_v30 = vsel %vm562_vm4, %v573_v16, %v575_v26  ;;  %v3887_v31 = vmul.u32.u64.low %v577_v9, %v572_v25  ;;  %v3888_v32 = vmul.u32.u64.high %v577_v9, %v572_v25, %v3887_v31  ;;  %v584_v45 = vmul.u32 %v577_v9, %v568_v37 }
  0xa8   :  { %v3891_v33 = vmul.u32.u64.low %v577_v9, %v576_v30  ;;  %v3892_v35 = vmul.u32.u64.high %v577_v9, %v576_v30, %v3891_v33  ;;  %v3111_v54 = vadd.s32 4294967169, %v325_v40  ;;  %v433_v56 = vor.u32 8388608, %v432_v41 }
  0xa9   :  { %v587_v43 = vadd.s32 1, %v3888_v32  ;;  %vm436_vm7 = vcmp.gt.s32.totalorder %v435_v49, 0  ;;  %v637_v59 = vshrl.u32 %v636_v51, 23  ;;  %v3903_v63 = vsel %vm228_vm6, %v227_v42, 0 }
  0xaa   :  { %vm586_vm5 = vc.u32 %v3892_v35, %v3887_v31  ;;  %v437_v58 = vsel %vm436_vm7, %v435_v49, 0  ;;  %v331_v1 = vadd.s32 1, %v3111_v54  ;;  %v3907_v3 = vshll.u32 %v433_v56, 8  ;;  %v63_v54 = vpop.permute.xlu0 %62 }
  0xab   :  { %v588_v47 = vsel %vm586_vm5, %v587_v43, %v3888_v32  ;;  %v438_v60 = vshrl.u32 %v437_v58, 5  ;;  %v439_v62 = vand.u32 31, %v437_v58  ;;  %v3123_v13 = vadd.s32 4294967169, %v637_v59 }
  0xac   :  { %v589_v53 = vadd.s32 %v588_v47, %v584_v45  ;;  %v3927_v38 = vand.u32 31, %v3903_v63  ;;  %vm332_vm12 = vcmp.gt.s32.totalorder %v331_v1, 0 }
  0xad   :  { %v440_v4 = vsub.s32 32, %v439_v62  ;;  %v442_v6 = vshll.u32 %v5951_v46, %v439_v62  ;;  %v445_v7 = vshll.u32 %v5946_v48, %v439_v62  ;;  %v448_v8 = vshll.u32 %v5944_v52, %v439_v62 }
  0xae   :  { %v590_v57 = vadd.s32 536870912, %v589_v53  ;;  %v451_v10 = vshll.u32 %v5948_v55, %v439_v62  ;;  %v454_v12 = vshll.u32 %v5963_v61, %v439_v62  ;;  %vm457_vm8 = vcmp.lt.s32.totalorder %v438_v60, 1 }
  0xaf   :  { %v443_v14 = vshrl.u32 %v5946_v48, %v440_v4  ;;  %v446_v15 = vshrl.u32 %v5944_v52, %v440_v4  ;;  %v449_v16 = vshrl.u32 %v5948_v55, %v440_v4  ;;  %v441_v18 = vshrl.u32 %v5951_v46, %v440_v4 }
  0xb0   :  { %v3905_v0 = vshrl.u32 %v590_v57, 30  ;;  %v452_v19 = vshrl.u32 %v5963_v61, %v440_v4  ;;  %v455_v20 = vshrl.u32 %v5953_v5, %v440_v4  ;;  %vm459_vm9 = vcmp.lt.s32.totalorder %v438_v60, 3 }
  0xb1   :  { %v444_v23 = vor.u32 %v443_v14, %v442_v6  ;;  %v447_v25 = vor.u32 %v446_v15, %v445_v7  ;;  %v450_v26 = vor.u32 %v449_v16, %v448_v8  ;;  %vm460_vm10 = vcmp.lt.s32.totalorder %v438_v60, 4 }
  0xb2   :  { %6048 = vst [vmem:[#allocation8_spill] sm:$0xff] %v3905_v0  ;;  %v592_v9 = vshll.u32 %v3905_v0, 30  ;;  %v453_v29 = vor.u32 %v452_v19, %v451_v10  ;;  %v456_v30 = vor.u32 %v455_v20, %v454_v12  ;;  %vm458_vm11 = vcmp.lt.s32.totalorder %v438_v60, 2 }
  0xb3   :  { %v462_v32 = vsel %vm460_vm10, %v450_v26, 2102212464  ;;  %v465_v33 = vsel %vm457_vm8, %v444_v23, %v447_v25  ;;  %v469_v37 = vsel %vm457_vm8, %v447_v25, %v450_v26  ;;  %v461_v42 = vsel %vm457_vm8, %v441_v18, %v444_v23 }
  0xb4   :  { %v3918_v17 = vsub.s32 %v589_v53, %v592_v9  ;;  %v466_v40 = vsel %vm460_vm10, %v453_v29, 920167782  ;;  %v470_v41 = vsel %vm460_vm10, %v456_v30, 1326507024  ;;  %v643_v45 = vadd.s32 1, %v3123_v13  ;;  %v159_v13 = vpop.permute.xlu1 %158 }
  0xb5   :  { %v467_v43 = vsel %vm459_vm9, %v450_v26, %v466_v40  ;;  %v471_v44 = vsel %vm459_vm9, %v453_v29, %v470_v41  ;;  %v463_v49 = vsel %vm459_vm9, %v447_v25, %v462_v32  ;;  %v3946_v62 = vsub.s32 32, %v3927_v38 }
  0xb6   :  { %v595_v27 = vsub.s32 0, %v3918_v17  ;;  %v468_v51 = vsel %vm458_vm11, %v465_v33, %v467_v43  ;;  %v472_v53 = vsel %vm458_vm11, %v469_v37, %v471_v44  ;;  %vm644_vm13 = vcmp.gt.s32.totalorder %v643_v45, 0  ;;  %v68_v33 = vpop.permute.xlu0 %67 }
  0xb7   :  { %v3937_v56 = vmul.u32.u64.low %v3907_v3, %v472_v53  ;;  %v3938_v57 = vmul.u32.u64.high %v3907_v3, %v472_v53, %v3937_v56  ;;  %v3941_v58 = vmul.u32.u64.low %v3907_v3, %v468_v51  ;;  %v3942_v59 = vmul.u32.u64.high %v3907_v3, %v468_v51, %v3941_v58 }
  0xb8   :  { %v3120_v47 = vmin.u32 %v595_v27, %v3918_v17  ;;  %v464_v4 = vsel %vm458_vm11, %v461_v42, %v463_v49  ;;  %v5942_v6 = vand.u32 2147483647, %v3894_v39  ;;  %v645_v7 = vsel %vm644_vm13, %v643_v45, 0 }
  0xb9   :  { %v126_v8 = vmul.f32 %v3853_v24, %v63_v54  ;;  %v3952_v10 = vsel %vm332_vm12, %v331_v1, 0  ;;  %v647_v12 = vand.u32 31, %v645_v7  ;;  %vm482_vm14 = vc.u32 %v3938_v57, %v3941_v58 }
  0xba   :  { %v597_v9 = vclz %v3120_v47  ;;  %v483_v14 = vadd.s32 1, %v3942_v59  ;;  %v3959_v60 = vshrl.u32 %v5963_v61, %v3946_v62  ;;  %v480_v15 = vmul.u32 %v3907_v3, %v464_v4 }
  0xbb   :  { %v648_v16 = vsub.s32 32, %v647_v12  ;;  %v3963_v18 = vand.u32 31, %v3952_v10  ;;  %v640_v19 = vand.u32 8388607, %v5942_v6  ;;  %v3968_v20 = vadd.f32 %v159_v13, %v126_v8 }
  0xbc   :  { %v484_v1 = vsel %vm482_vm14, %v483_v14, %v3942_v59  ;;  %v3121_v23 = vadd.s32 4294967294, %v597_v9  ;;  %v650_v26 = vshll.u32 %v5951_v46, %v647_v12  ;;  %v653_v27 = vshll.u32 %v5946_v48, %v647_v12 }
  0xbd   :  { %6049 = vst [vmem:[#allocation9_spill] sm:$0xff] %v3963_v18  ;;  %6050 = vst [vmem:[#allocation10_spill] sm:$0xff] %v3968_v20  ;;  %v485_v25 = vadd.s32 %v484_v1, %v480_v15  ;;  %v651_v29 = vshrl.u32 %v5946_v48, %v648_v16  ;;  %v654_v3 = vshrl.u32 %v5944_v52, %v648_v16  ;;  %v646_v40 = vshrl.u32 %v645_v7, 5 }
  0xbe   :  { %v656_v30 = vshll.u32 %v5944_v52, %v647_v12  ;;  %v657_v32 = vshrl.u32 %v5948_v55, %v648_v16  ;;  %v659_v41 = vshll.u32 %v5948_v55, %v647_v12  ;;  %v660_v42 = vshrl.u32 %v5963_v61, %v648_v16 }
  0xbf   :  { %v486_v37 = vadd.s32 536870912, %v485_v25  ;;  %v3980_v43 = vshrl.u32 %v5953_v5, %v3946_v62  ;;  %v652_v44 = vor.u32 %v651_v29, %v650_v26  ;;  %v655_v45 = vor.u32 %v654_v3, %v653_v27 }
  0xc0   :  { %v658_v47 = vor.u32 %v657_v32, %v656_v30  ;;  %v3983_v49 = vsub.s32 32, %v3963_v18  ;;  %v641_v51 = vor.u32 8388608, %v640_v19  ;;  %v661_v53 = vor.u32 %v660_v42, %v659_v41 }
  0xc1   :  { %v127_v54 = vmul.f32 %v3853_v24, %v68_v33  ;;  %v3986_v56 = vshrl.u32 %v486_v37, 30  ;;  %v662_v59 = vshll.u32 %v5963_v61, %v647_v12  ;;  %v663_v4 = vshrl.u32 %v5953_v5, %v648_v16 }
  0xc2   :  { %6051 = vst [vmem:[#allocation11_spill] sm:$0xff] %v3983_v49  ;;  %v740_v7 = vand.u32 2139095040, %v3968_v20  ;;  %vm3122_vm15 = vcmp.lt.s32.totalorder %v3121_v23, 0  ;;  %vm665_vm0 = vcmp.lt.s32.totalorder %v646_v40, 1  ;;  %vm667_vm1 = vcmp.lt.s32.totalorder %v646_v40, 3 }
  0xc3   :  { %6052 = vst [vmem:[#allocation12_spill] sm:$0xff] %v3986_v56  ;;  %vm668_vm2 = vcmp.lt.s32.totalorder %v646_v40, 4  ;;  %v664_v8 = vor.u32 %v663_v4, %v662_v59  ;;  %v673_v13 = vsel %vm665_vm0, %v652_v44, %v655_v45  ;;  %v649_v15 = vshrl.u32 %v5951_v46, %v648_v16 }
  0xc4   :  { %v670_v9 = vsel %vm668_vm2, %v658_v47, 2102212464  ;;  %v674_v14 = vsel %vm668_vm2, %v661_v53, 920167782  ;;  %vm666_vm3 = vcmp.lt.s32.totalorder %v646_v40, 2  ;;  %v681_v19 = vshll.u32 %v641_v51, 8 }
  0xc5   :  { %v675_v1 = vsel %vm667_vm1, %v658_v47, %v674_v14  ;;  %v488_v12 = vshll.u32 %v3986_v56, 30  ;;  %v677_v27 = vsel %vm665_vm0, %v655_v45, %v658_v47  ;;  %v678_v29 = vsel %vm668_vm2, %v664_v8, 1326507024 }
  0xc6   :  { %v676_v26 = vsel %vm666_vm3, %v673_v13, %v675_v1  ;;  %v600_v3 = vsel %vm3122_vm15, 0, %v3121_v23  ;;  %v669_v30 = vsel %vm665_vm0, %v649_v15, %v652_v44  ;;  %v671_v32 = vsel %vm667_vm1, %v655_v45, %v670_v9 }
  0xc7   :  { %v679_v33 = vsel %vm667_vm1, %v661_v53, %v678_v29  ;;  %v4002_v37 = vmul.u32.u64.low %v681_v19, %v676_v26  ;;  %v4003_v41 = vmul.u32.u64.high %v681_v19, %v676_v26, %v4002_v37  ;;  %v741_v42 = vshrl.u32 %v740_v7, 23 }
  0xc8   :  { %v680_v16 = vsel %vm666_vm3, %v677_v27, %v679_v33  ;;  %v243_v51 = vshll.u32 %v5948_v55, %v3927_v38  ;;  %v4010_v47 = vshll.u32 %v5963_v61, %v3927_v38  ;;  %v605_v45 = vsub.s32 4294967266, %v600_v3 }
  0xc9   :  { %v4012_v23 = vmul.u32.u64.low %v681_v19, %v680_v16  ;;  %v4013_v44 = vmul.u32.u64.high %v681_v19, %v680_v16, %v4012_v23  ;;  %v4015_v59 = vsub.s32 %v485_v25, %v488_v12  ;;  %v672_v53 = vsel %vm666_vm3, %v669_v30, %v671_v32 }
  0xca   :  { %v3127_v4 = vadd.s32 4294967169, %v741_v42  ;;  %v4019_v8 = vshrl.u32 %v3903_v63, 5  ;;  %v4022_v7 = vor.u32 %v3959_v60, %v243_v51  ;;  %v4027_v13 = vadd.f32 %v3846_v21, %v127_v54 }
  0xcb   :  { %v347_v14 = vshll.u32 %v5948_v55, %v3963_v18  ;;  %v348_v25 = vshrl.u32 %v5963_v61, %v3983_v49  ;;  %v691_v40 = vadd.s32 1, %v4003_v41  ;;  %v601_v63 = vsub.s32 32, %v600_v3 }
  0xcc   :  { %6053 = vst [vmem:[#allocation13_spill] sm:$0xff] %v4027_v13  ;;  %v747_v15 = vadd.s32 1, %v3127_v4  ;;  %v688_v1 = vmul.u32 %v681_v19, %v672_v53  ;;  %vm690_vm4 = vc.u32 %v4013_v44, %v4002_v37  ;;  %v5941_v60 = vand.u32 2147483647, %v3968_v20 }
  0xcd   :  { %v606_v12 = vadd.s32 127, %v605_v45  ;;  %v491_v21 = vsub.s32 0, %v4015_v59  ;;  %v692_v54 = vsel %vm690_vm4, %v691_v40, %v4003_v41  ;;  %v585_v26 = vadd.s32 %v3887_v31, %v3892_v35 }
  0xce   :  { %vm748_vm5 = vcmp.gt.s32.totalorder %v747_v15, 0  ;;  %v693_v27 = vadd.s32 %v692_v54, %v688_v1  ;;  %v844_v30 = vand.u32 2139095040, %v4027_v13  ;;  %v4043_v19 = vshrl.u32 %v3952_v10, 5 }
  0xcf   :  { %v749_v29 = vsel %vm748_vm5, %v747_v15, 0  ;;  %v4045_v32 = vor.u32 %v348_v25, %v347_v14  ;;  %v4049_v33 = vshrl.u32 %v5953_v5, %v3983_v49  ;;  %v602_v41 = vshll.u32 %v3918_v17, %v600_v3 }
  0xd0   :  { %v751_v16 = vand.u32 31, %v749_v29  ;;  %v603_v42 = vshrl.u32 %v585_v26, %v601_v63  ;;  %v694_v51 = vadd.s32 536870912, %v693_v27  ;;  %v5950_v31 = vand.u32 2147483647, %v4027_v13 }
  0xd1   :  { %6054 = vst [vmem:[#allocation14_spill] sm:$0xff] %v4045_v32  ;;  %v607_v35 = vshll.u32 %v606_v12, 23  ;;  %v3116_v23 = vmin.u32 %v491_v21, %v4015_v59  ;;  %v744_v10 = vand.u32 8388607, %v5941_v60  ;;  %v845_v25 = vshrl.u32 %v844_v30, 23 }
  0xd2   :  { %v752_v45 = vsub.s32 32, %v751_v16  ;;  %v4056_v53 = vshrl.u32 %v694_v51, 30  ;;  %v754_v4 = vshll.u32 %v5951_v46, %v751_v16  ;;  %v757_v14 = vshll.u32 %v5946_v48, %v751_v16 }
  0xd3   :  { %v760_v40 = vshll.u32 %v5944_v52, %v751_v16  ;;  %v750_v1 = vshrl.u32 %v749_v29, 5  ;;  %v763_v12 = vshll.u32 %v5948_v55, %v751_v16  ;;  %v604_v54 = vor.u32 %v603_v42, %v602_v41 }
  0xd4   :  { %6055 = vst [vmem:[#allocation15_spill] sm:$0xff] %v4056_v53  ;;  %v755_v17 = vshrl.u32 %v5946_v48, %v752_v45  ;;  %v758_v3 = vshrl.u32 %v5944_v52, %v752_v45  ;;  %v761_v15 = vshrl.u32 %v5948_v55, %v752_v45  ;;  %v696_v63 = vshll.u32 %v4056_v53, 30 }
  0xd5   :  { %v764_v21 = vshrl.u32 %v5963_v61, %v752_v45  ;;  %vm252_vm6 = vcmp.lt.s32.totalorder %v4019_v8, 4  ;;  %v608_v30 = vor.u32 4788187, %v607_v35  ;;  %v745_v6 = vor.u32 8388608, %v744_v10 }
  0xd6   :  { %v756_v26 = vor.u32 %v755_v17, %v754_v4  ;;  %v759_v51 = vor.u32 %v758_v3, %v757_v14  ;;  %v762_v11 = vor.u32 %v761_v15, %v760_v40  ;;  %v4068_v60 = vsub.s32 %v693_v27, %v696_v63 }
  0xd7   :  { %v765_v34 = vor.u32 %v764_v21, %v763_v12  ;;  %v493_v52 = vclz %v3116_v23  ;;  %v766_v48 = vshll.u32 %v5963_v61, %v751_v16  ;;  %v767_v29 = vshrl.u32 %v5953_v5, %v752_v45 }
  0xd8   :  { %v3131_v9 = vadd.s32 4294967169, %v845_v25  ;;  %v699_v55 = vsub.s32 0, %v4068_v60  ;;  %vm769_vm7 = vcmp.lt.s32.totalorder %v750_v1, 1  ;;  %vm771_vm8 = vcmp.lt.s32.totalorder %v750_v1, 3 }
  0xd9   :  { %vm772_vm9 = vcmp.lt.s32.totalorder %v750_v1, 4  ;;  %v768_v41 = vor.u32 %v767_v29, %v766_v48  ;;  %v777_v4 = vsel %vm769_vm7, %v756_v26, %v759_v51  ;;  %v753_v27 = vshrl.u32 %v5951_v46, %v752_v45 }
  0xda   :  { %v774_v42 = vsel %vm772_vm9, %v762_v11, 2102212464  ;;  %v778_v35 = vsel %vm772_vm9, %v765_v34, 920167782  ;;  %vm770_vm10 = vcmp.lt.s32.totalorder %v750_v1, 2  ;;  %v785_v10 = vshll.u32 %v745_v6, 8  ;;  %v4120_v1 = vpop.permute.xlu0 %82 }
  0xdb   :  { %v779_v23 = vsel %vm771_vm8, %v762_v11, %v778_v35  ;;  %v3124_v16 = vmin.u32 %v699_v55, %v4068_v60  ;;  %v781_v25 = vsel %vm769_vm7, %v759_v51, %v762_v11  ;;  %v782_v17 = vsel %vm772_vm9, %v768_v41, 1326507024 }
  0xdc   :  { %v780_v14 = vsel %vm770_vm10, %v777_v4, %v779_v23  ;;  %v609_v3 = vand.u32 2147483647, %v608_v30  ;;  %v773_v48 = vsel %vm769_vm7, %v753_v27, %v756_v26  ;;  %v775_v40 = vsel %vm771_vm8, %v759_v51, %v774_v42 }
  0xdd   :  { %v783_v15 = vsel %vm771_vm8, %v765_v34, %v782_v17  ;;  %v4083_v63 = vmul.u32.u64.low %v785_v10, %v780_v14  ;;  %v4084_v12 = vmul.u32.u64.high %v785_v10, %v780_v14, %v4083_v63  ;;  %v851_v6 = vadd.s32 1, %v3131_v9 }
  0xde   :  { %v784_v45 = vsel %vm770_vm10, %v781_v25, %v783_v15  ;;  %v3117_v55 = vadd.s32 4294967294, %v493_v52  ;;  %v848_v11 = vand.u32 8388607, %v5950_v31  ;;  %v4095_v26 = vsel %vm252_vm6, %v4022_v7, 920167782  ;;  %v88_v5 = vpop.permute.xlu0 %87 }
  0xdf   :  { %v4087_v21 = vmul.u32.u64.low %v785_v10, %v784_v45  ;;  %v4088_v29 = vmul.u32.u64.high %v785_v10, %v784_v45, %v4087_v21  ;;  %v4099_v34 = vshll.u32 %v5963_v61, %v3963_v18  ;;  %v701_v51 = vclz %v3124_v16 }
  0xe0   :  { %vm852_vm11 = vcmp.gt.s32.totalorder %v851_v6, 0  ;;  %v6056_v52 = vor.u32 %v3980_v43, %v4010_v47  ;;  %v611_v30 = vcvt.s32.f32 %v604_v54  ;;  %v776_v41 = vsel %vm770_vm10, %v773_v48, %v775_v40 }
  0xe1   :  { %v853_v42 = vsel %vm852_vm11, %v851_v6, 0  ;;  %vm356_vm12 = vcmp.lt.s32.totalorder %v4043_v19, 4  ;;  %v795_v35 = vadd.s32 1, %v4084_v12  ;;  %vm3118_vm13 = vcmp.lt.s32.totalorder %v3117_v55, 0 }
  0xe2   :  { %v4106_v9 = vsel %vm252_vm6, %v6056_v52, 1326507024  ;;  %v855_v27 = vand.u32 31, %v853_v42  ;;  %v4113_v23 = vmul.f32 %v611_v30, %v609_v3  ;;  %v4118_v43 = vsel %vm356_vm12, %v4045_v32, 920167782 }
  0xe3   :  { %6057 = vst [vmem:[#allocation16_spill] sm:$0xff] %v4118_v43  ;;  %v849_v47 = vor.u32 8388608, %v848_v11  ;;  %v3125_v54 = vadd.s32 4294967294, %v701_v51  ;;  %v792_v16 = vmul.u32 %v785_v10, %v776_v41  ;;  %vm794_vm14 = vc.u32 %v4088_v29, %v4083_v63 }
  0xe4   :  { %v856_v14 = vsub.s32 32, %v855_v27  ;;  %v796_v25 = vsel %vm794_vm14, %v795_v35, %v4084_v12  ;;  %v858_v17 = vshll.u32 %v5951_v46, %v855_v27  ;;  %v6058_v3 = vmov 2475754826  }
  0xe5   :  { %v861_v48 = vshll.u32 %v6058_v3, %v855_v27  ;;  %v6059_v40 = vmov 2131351028   ;;  %v797_v45 = vadd.s32 %v796_v25, %v792_v16  ;;  %v854_v6 = vshrl.u32 %v853_v42, 5  ;;  %v73_v42 = vpop.permute.xlu1 %72 }
  0xe6   :  { %v864_v15 = vshll.u32 %v6059_v40, %v855_v27  ;;  %v859_v21 = vshrl.u32 %v6058_v3, %v856_v14  ;;  %v862_v11 = vshrl.u32 %v6059_v40, %v856_v14  ;;  %v613_v10 = vxor.u32 2147483648, %v4113_v23 }
  0xe7   :  { %v4132_v51 = vsel %vm3118_vm13, 0, %v3117_v55  ;;  %v6060_v52 = vmov 2102212464   ;;  %vm3126_vm15 = vcmp.lt.s32.totalorder %v3125_v54, 0  ;;  %v798_v41 = vadd.s32 536870912, %v797_v45 }
  0xe8   :  { %v865_v30 = vshrl.u32 %v6060_v52, %v856_v14  ;;  %v867_v12 = vshll.u32 %v6060_v52, %v855_v27  ;;  %v868_v35 = vshrl.u32 %v5963_v61, %v856_v14  ;;  %v4137_v31 = vshll.u32 %v849_v47, 8 }
  0xe9   :  { %v860_v16 = vor.u32 %v859_v21, %v858_v17  ;;  %v863_v25 = vor.u32 %v862_v11, %v861_v48  ;;  %v870_v46 = vshll.u32 %v5963_v61, %v855_v27  ;;  %v4140_v53 = vshrl.u32 %v798_v41, 30 }
  0xea   :  { %v866_v4 = vor.u32 %v865_v30, %v864_v15  ;;  %v869_v55 = vor.u32 %v868_v35, %v867_v12  ;;  %v6062_v0 = vmov 1326507024   ;;  %vm873_vm0 = vcmp.lt.s32.totalorder %v854_v6, 1 }
  0xeb   :  { %6061 = vst [vmem:[#allocation17_spill] sm:$0xff] %v4140_v53  ;;  %v871_v13 = vshrl.u32 %v6062_v0, %v856_v14  ;;  %vm6033_vm1 = vcmp.lt.s32.totalorder %v3856_v28, 0  ;;  %v501_v56 = vsub.s32 4294967266, %v4132_v51  ;;  %v6063_v43 = vmov 683565275  }
  0xec   :  { %v857_v47 = vshrl.u32 %v6063_v43, %v856_v14  ;;  %vm876_vm2 = vcmp.lt.s32.totalorder %v854_v6, 4  ;;  %v128_v17 = vmul.f32 %v3853_v24, %v73_v42  ;;  %v800_v48 = vshll.u32 %v4140_v53, 30 }
  0xed   :  { %v872_v15 = vor.u32 %v871_v13, %v870_v46  ;;  %v878_v27 = vsel %vm876_vm2, %v866_v4, 2102212464  ;;  %v131_v21 = vmul.f32 %v3853_v24, %v88_v5  ;;  %v4151_v11 = vsel %vm3126_vm15, 0, %v3125_v54  ;;  %v167_v13 = vpop.permute.xlu1 %166 }
  0xee   :  { %vm875_vm3 = vcmp.lt.s32.totalorder %v854_v6, 3  ;;  %v881_v30 = vsel %vm873_vm0, %v860_v16, %v863_v25  ;;  %v882_v12 = vsel %vm876_vm2, %v869_v55, 920167782  ;;  %v6064_v14 = vand.u32 2147483647, %v3856_v28 }
  0xef   :  { %v6065_v41 = vmov 0  ;;  %v4161_v35 = vsub.s32 %v797_v45, %v800_v48  ;;  %vm874_vm5 = vcmp.lt.s32.totalorder %v854_v6, 2  ;;  %v883_v46 = vsel %vm875_vm3, %v866_v4, %v882_v12 }
  0xf0   :  { %vm4157_vm4 = vcmp.le.f32.partialorder %v6064_v14, 0.7853982  ;;  %v885_v5 = vsel %vm873_vm0, %v863_v25, %v866_v4  ;;  %v877_v54 = vsel %vm873_vm0, %v857_v47, %v860_v16  ;;  %v879_v42 = vsel %vm875_vm3, %v863_v25, %v878_v27 }
  0xf1   :  { %v6066_v41 = vsel %vm4157_vm4, 4294967295, %v6065_v41  ;;  %v884_v61 = vsel %vm874_vm5, %v881_v30, %v883_v46  ;;  %v886_v53 = vsel %vm876_vm2, %v872_v15, 1326507024  ;;  %v803_v32 = vsub.s32 0, %v4161_v35 }
  0xf2   :  { %6067 = vst [vmem:[#allocation18_spill] sm:$0xff] %v6066_v41  ;;  %v887_v14 = vsel %vm875_vm3, %v869_v55, %v886_v53  ;;  %v4169_v18 = vmul.u32.u64.low %v4137_v31, %v884_v61  ;;  %v4170_v49 = vmul.u32.u64.high %v4137_v31, %v884_v61, %v4169_v18  ;;  %v709_v45 = vsub.s32 4294967266, %v4151_v11 }
  0xf3   :  { %v888_v4 = vsel %vm874_vm5, %v885_v5, %v887_v14  ;;  %v4176_v48 = vadd.f32 %v3848_v22, %v131_v21  ;;  %v4178_v16 = vadd.f32 %v167_v13, %v128_v17  ;;  %v6069_v25 = vor.u32 %v4049_v33, %v4099_v34 }
  0xf4   :  { %v3128_v61 = vmin.u32 %v803_v32, %v4161_v35  ;;  %v4189_v55 = vmul.u32.u64.low %v4137_v31, %v888_v4  ;;  %v4190_v47 = vmul.u32.u64.high %v4137_v31, %v888_v4, %v4189_v55  ;;  %v481_v15 = vadd.s32 %v3941_v58, %v3938_v57 }
  0xf5   :  { %6068 = vst [vmem:[#allocation19_spill] sm:$0xff] %v4176_v48  ;;  %v4185_v53 = vsel %vm356_vm12, %v6069_v25, 1326507024  ;;  %v880_v22 = vsel %vm874_vm5, %v877_v54, %v879_v42  ;;  %v4197_v17 = vmul.f32 %v3853_v24, %v4120_v1  ;;  %v1260_v33 = vand.u32 2139095040, %v4176_v48 }
  0xf6   :  { %v614_v34 = vsel %vm6033_vm1, %v613_v10, %v4113_v23  ;;  %v497_v32 = vsub.s32 32, %v4132_v51  ;;  %v805_v27 = vclz %v3128_v61  ;;  %v899_v21 = vadd.s32 1, %v4170_v49 }
  0xf7   :  { %v502_v30 = vadd.s32 127, %v501_v56  ;;  %v710_v12 = vadd.s32 127, %v709_v45  ;;  %v1261_v57 = vshrl.u32 %v1260_v33, 23  ;;  %v948_v58 = vand.u32 2139095040, %v4178_v16 }
  0xf8   :  { %v705_v6 = vsub.s32 32, %v4151_v11  ;;  %v3129_v1 = vadd.s32 4294967294, %v805_v27  ;;  %v896_v46 = vmul.u32 %v4137_v31, %v880_v22  ;;  %vm898_vm7 = vc.u32 %v4190_v47, %v4169_v18 }
  0xf9   :  { %v4213_v23 = vsel %vm4157_vm4, %v3856_v28, %v614_v34  ;;  %v900_v10 = vsel %vm898_vm7, %v899_v21, %v4170_v49  ;;  %v3147_v56 = vadd.s32 4294967169, %v1261_v57  ;;  %v949_v5 = vshrl.u32 %v948_v58, 23 }
  0xfa   :  { %v499_v13 = vshrl.u32 %v481_v15, %v497_v32  ;;  %v689_v54 = vadd.s32 %v4002_v37, %v4013_v44  ;;  %vm3130_vm8 = vcmp.lt.s32.totalorder %v3129_v1, 0  ;;  %v901_v42 = vadd.s32 %v900_v10, %v896_v46 }
  0xfb   :  { %v503_v14 = vshll.u32 %v502_v30, 23  ;;  %v711_v31 = vshll.u32 %v710_v12, 23  ;;  %v4218_v45 = vsel %vm3130_vm8, 0, %v3129_v1  ;;  %v1267_v4 = vadd.s32 1, %v3147_v56 }
  0xfc   :  { %v498_v25 = vshll.u32 %v4015_v59, %v4132_v51  ;;  %v707_v61 = vshrl.u32 %v689_v54, %v705_v6  ;;  %v902_v55 = vadd.s32 536870912, %v901_v42  ;;  %v5972_v49 = vand.u32 2147483647, %v4176_v48  ;;  %v78_v48 = vpop.permute.xlu1 %77 }
  0xfd   :  { %3553 = vcosq.f32 %v4213_v23  ;;  %v813_v15 = vsub.s32 4294967266, %v4218_v45  ;;  %vm1268_vm9 = vcmp.gt.s32.totalorder %v1267_v4, 0  ;;  %v3135_v37 = vadd.s32 4294967169, %v949_v5 }
  0xfe   :  { %v4225_v44 = vor.u32 %v499_v13, %v498_v25  ;;  %v706_v22 = vshll.u32 %v4068_v60, %v4151_v11  ;;  %v4229_v33 = vshrl.u32 %v902_v55, 30  ;;  %v1269_v34 = vsel %vm1268_vm9, %v1267_v4, 0 }
  0xff   :  { %v4231_v32 = vor.u32 4788187, %v503_v14  ;;  %v4233_v59 = vor.u32 4788187, %v711_v31  ;;  %v793_v51 = vadd.s32 %v4083_v63, %v4088_v29  ;;  %v1271_v27 = vand.u32 31, %v1269_v34 }
 0x100   :  { %6070 = vst [vmem:[#allocation20_spill] sm:$0xff] %v4229_v33  ;;  %v4237_v21 = vor.u32 %v707_v61, %v706_v22  ;;  %v904_v30 = vshll.u32 %v4229_v33, 30  ;;  %v1264_v12 = vand.u32 8388607, %v5972_v49  ;;  %v5976_v60 = vand.u32 2147483647, %v4178_v16 }
 0x101   :  { %v809_v11 = vsub.s32 32, %v4218_v45  ;;  %v814_v57 = vadd.s32 127, %v813_v15  ;;  %v1272_v58 = vsub.s32 32, %v1271_v27  ;;  %v955_v6 = vadd.s32 1, %v3135_v37 }
 0x102   :  { %v4244_v1 = vsub.s32 %v901_v42, %v904_v30  ;;  %v1270_v46 = vshrl.u32 %v1269_v34, 5  ;;  %v1274_v63 = vshll.u32 %v6063_v43, %v1271_v27  ;;  %v1277_v29 = vshll.u32 %v6058_v3, %v1271_v27 }
 0x103   :  { %v1275_v10 = vshrl.u32 %v6058_v3, %v1272_v58  ;;  %v1278_v56 = vshrl.u32 %v6059_v40, %v1272_v58  ;;  %v1280_v5 = vshll.u32 %v6059_v40, %v1271_v27  ;;  %v1281_v13 = vshrl.u32 %v6060_v52, %v1272_v58 }
 0x104   :  { %v907_v54 = vsub.s32 0, %v4244_v1  ;;  %v1283_v14 = vshll.u32 %v6060_v52, %v1271_v27  ;;  %v6071_v31 = vmov 920167782   ;;  %v1287_v15 = vshrl.u32 %v6062_v0, %v1272_v58 }
 0x105   :  { %v1284_v42 = vshrl.u32 %v6071_v31, %v1272_v58  ;;  %v1286_v4 = vshll.u32 %v6071_v31, %v1271_v27  ;;  %v1276_v25 = vor.u32 %v1275_v10, %v1274_v63  ;;  %v1279_v61 = vor.u32 %v1278_v56, %v1277_v29 }
 0x106   :  { %v1282_v55 = vor.u32 %v1281_v13, %v1280_v5  ;;  %v713_v37 = vand.u32 2147483647, %v4233_v59  ;;  %v1265_v22 = vor.u32 8388608, %v1264_v12  ;;  %v4260_v30 = vand.u32 8388607, %v5976_v60 }
 0x107   :  { %v1285_v34 = vor.u32 %v1284_v42, %v1283_v14  ;;  %v4262_v49 = vpop.eup %3553  ;;  %v811_v33 = vshrl.u32 %v793_v51, %v809_v11  ;;  %v1288_v41 = vor.u32 %v1287_v15, %v1286_v4  ;;  %vm1292_vm10 = vcmp.lt.s32.totalorder %v1270_v46, 4 }
 0x108   :  { %6072 = vst [vmem:[#allocation21_spill] sm:$0xff] %v4262_v49  ;;  %vm956_vm11 = vcmp.gt.s32.totalorder %v955_v6, 0  ;;  %v815_v27 = vshll.u32 %v814_v57, 23  ;;  %v1273_v63 = vshrl.u32 %v6063_v43, %v1272_v58  ;;  %vm1289_vm13 = vcmp.lt.s32.totalorder %v1270_v46, 1 }
 0x109   :  { %v1294_v29 = vsel %vm1292_vm10, %v1282_v55, 2102212464  ;;  %v3132_v59 = vmin.u32 %v907_v54, %v4244_v1  ;;  %vm1291_vm14 = vcmp.lt.s32.totalorder %v1270_v46, 3  ;;  %v1297_v12 = vsel %vm1289_vm13, %v1276_v25, %v1279_v61 }
 0x10a   :  { %v1298_v10 = vsel %vm1292_vm10, %v1285_v34, 920167782  ;;  %v810_v56 = vshll.u32 %v4161_v35, %v4218_v45  ;;  %v1301_v51 = vsel %vm1289_vm13, %v1279_v61, %v1282_v55  ;;  %v957_v11 = vsel %vm956_vm11, %v955_v6, 0 }
 0x10b   :  { %v1299_v5 = vsel %vm1291_vm14, %v1282_v55, %v1298_v10  ;;  %vm1290_vm15 = vcmp.lt.s32.totalorder %v1270_v46, 2  ;;  %v1293_v13 = vsel %vm1289_vm13, %v1273_v63, %v1276_v25  ;;  %v1295_v57 = vsel %vm1291_vm14, %v1279_v61, %v1294_v29 }
 0x10c   :  { %v1302_v58 = vsel %vm1292_vm10, %v1288_v41, 1326507024  ;;  %v812_v14 = vor.u32 %v811_v33, %v810_v56  ;;  %v1300_v42 = vsel %vm1290_vm15, %v1297_v12, %v1299_v5  ;;  %v1305_v54 = vshll.u32 %v1265_v22, 8 }
 0x10d   :  { %v1303_v4 = vsel %vm1291_vm14, %v1285_v34, %v1302_v58  ;;  %v816_v15 = vor.u32 4788187, %v815_v27  ;;  %v909_v60 = vclz %v3132_v59  ;;  %v959_v28 = vand.u32 31, %v957_v11 }
 0x10e   :  { %v1304_v49 = vsel %vm1290_vm15, %v1301_v51, %v1303_v4  ;;  %v505_v35 = vand.u32 2147483647, %v4231_v32  ;;  %v507_v45 = vcvt.s32.f32 %v4225_v44  ;;  %v715_v6 = vcvt.s32.f32 %v4237_v21 }
 0x10f   :  { %v1296_v25 = vsel %vm1290_vm15, %v1293_v13, %v1295_v57  ;;  %v4277_v41 = vmul.u32.u64.low %v1305_v54, %v1304_v49  ;;  %v4278_v33 = vmul.u32.u64.high %v1305_v54, %v1304_v49, %v4277_v41  ;;  %v953_v34 = vor.u32 8388608, %v4260_v30  ;;  %v4298_v13 = vpop.permute.xlu0 %102 }
 0x110   :  { %v4280_v61 = vmul.u32.u64.low %v1305_v54, %v1300_v42  ;;  %v4281_v55 = vmul.u32.u64.high %v1305_v54, %v1300_v42, %v4280_v61  ;;  %v716_v22 = vmul.f32 %v715_v6, %v713_v37  ;;  %v960_v27 = vsub.s32 32, %v959_v28 }
 0x111   :  { %v129_v63 = vmul.f32 %v3853_v24, %v78_v48  ;;  %v817_v29 = vand.u32 2147483647, %v816_v15  ;;  %v819_v59 = vcvt.s32.f32 %v812_v14  ;;  %v3133_v12 = vadd.s32 4294967294, %v909_v60  ;;  %v171_v60 = vpop.permute.xlu1 %170 }
 0x112   :  { %v1312_v10 = vmul.u32 %v1305_v54, %v1296_v25  ;;  %v958_v21 = vshrl.u32 %v957_v11, 5  ;;  %v962_v46 = vshll.u32 %v6063_v43, %v959_v28  ;;  %v963_v49 = vshrl.u32 %v6058_v3, %v960_v27 }
 0x113   :  { %v965_v56 = vshll.u32 %v6058_v3, %v959_v28  ;;  %vm6008_vm0 = vcmp.lt.s32.totalorder %v3894_v39, 0  ;;  %vm1314_vm2 = vc.u32 %v4278_v33, %v4280_v61  ;;  %v1315_v37 = vadd.s32 1, %v4281_v55 }
 0x114   :  { %v966_v24 = vshrl.u32 %v6059_v40, %v960_v27  ;;  %v968_v48 = vshll.u32 %v6059_v40, %v959_v28  ;;  %v964_v30 = vor.u32 %v963_v49, %v962_v46  ;;  %v969_v5 = vshrl.u32 %v6060_v52, %v960_v27 }
 0x115   :  { %v971_v51 = vshll.u32 %v6060_v52, %v959_v28  ;;  %v974_v11 = vshll.u32 %v6071_v31, %v959_v28  ;;  %v1316_v57 = vsel %vm1314_vm2, %v1315_v37, %v4281_v55  ;;  %v972_v14 = vshrl.u32 %v6071_v31, %v960_v27 }
 0x116   :  { %v967_v58 = vor.u32 %v966_v24, %v965_v56  ;;  %v975_v42 = vshrl.u32 %v6062_v0, %v960_v27  ;;  %v717_v4 = vxor.u32 2147483648, %v716_v22  ;;  %v1317_v54 = vadd.s32 %v1316_v57, %v1312_v10 }
 0x117   :  { %v970_v15 = vor.u32 %v969_v5, %v968_v48  ;;  %v4303_v6 = vadd.f32 %v171_v60, %v129_v63  ;;  %v6074_v25 = vand.u32 2147483647, %v3894_v39  ;;  %v6075_v41 = vmov 0 }
 0x118   :  { %v820_v28 = vmul.f32 %v819_v59, %v817_v29  ;;  %v973_v46 = vor.u32 %v972_v14, %v971_v51  ;;  %v976_v49 = vor.u32 %v975_v42, %v974_v11  ;;  %v993_v55 = vshll.u32 %v953_v34, 8  ;;  %v108_v59 = vpop.permute.xlu0 %107 }
 0x119   :  { %6073 = vst [vmem:[#allocation22_spill] sm:$0xff] %v4303_v6  ;;  %vm4307_vm3 = vcmp.le.f32.partialorder %v6074_v25, 0.7853982  ;;  %vm3134_vm5 = vcmp.lt.s32.totalorder %v3133_v12, 0  ;;  %v1318_v56 = vadd.s32 536870912, %v1317_v54  ;;  %vm977_vm7 = vcmp.lt.s32.totalorder %v958_v21, 1 }
 0x11a   :  { %v6076_v41 = vsel %vm4307_vm3, 4294967295, %v6075_v41  ;;  %vm980_vm8 = vcmp.lt.s32.totalorder %v958_v21, 4  ;;  %vm6005_vm9 = vcmp.lt.s32.totalorder %v3968_v20, 0  ;;  %vm979_vm10 = vcmp.lt.s32.totalorder %v958_v21, 3 }
 0x11b   :  { %6077 = vst [vmem:[#allocation23_spill] sm:$0xff] %v6076_v41  ;;  %v982_v10 = vsel %vm980_vm8, %v970_v15, 2102212464  ;;  %v985_v63 = vsel %vm977_vm7, %v964_v30, %v967_v58  ;;  %v986_v37 = vsel %vm980_vm8, %v973_v46, 920167782  ;;  %v961_v24 = vshrl.u32 %v6063_v43, %v960_v27 }
 0x11c   :  { %vm978_vm11 = vcmp.lt.s32.totalorder %v958_v21, 2  ;;  %v987_v48 = vsel %vm979_vm10, %v970_v15, %v986_v37  ;;  %v989_v29 = vsel %vm977_vm7, %v967_v58, %v970_v15  ;;  %v912_v34 = vsel %vm3134_vm5, 0, %v3133_v12 }
 0x11d   :  { %v4316_v60 = vshrl.u32 %v1318_v56, 30  ;;  %v988_v5 = vsel %vm978_vm11, %v985_v63, %v987_v48  ;;  %v990_v51 = vsel %vm980_vm8, %v976_v49, 1326507024  ;;  %v718_v11 = vsel %vm6008_vm0, %v717_v4, %v716_v22  ;;  %v195_v48 = vpop.permute.xlu0 %194 }
 0x11e   :  { %v981_v57 = vsel %vm977_vm7, %v961_v24, %v964_v30  ;;  %v983_v14 = vsel %vm979_vm10, %v967_v58, %v982_v10  ;;  %v991_v27 = vsel %vm979_vm10, %v973_v46, %v990_v51  ;;  %v1052_v12 = vand.u32 2139095040, %v4303_v6  ;;  %v4339_v58 = vld [vmem:[%s5935_s0] ss:$0 sm:$0xff] }
 0x11f   :  { %6078 = vst [vmem:[#allocation24_spill] sm:$0xff] %v4316_v60  ;;  %v992_v42 = vsel %vm978_vm11, %v989_v29, %v991_v27  ;;  %v4325_v25 = vmul.u32.u64.low %v993_v55, %v988_v5  ;;  %v4326_v15 = vmul.u32.u64.high %v993_v55, %v988_v5, %v4325_v25  ;;  %v821_v56 = vxor.u32 2147483648, %v820_v28 }
 0x120   :  { %v917_v63 = vsub.s32 4294967266, %v912_v34  ;;  %v4330_v49 = vmul.u32.u64.low %v993_v55, %v992_v42  ;;  %v4331_v37 = vmul.u32.u64.high %v993_v55, %v992_v42, %v4330_v49  ;;  %vm6034_vm13 = vcmp.lt.s32.totalorder %v3878_v2, 0 }
 0x121   :  { %v1320_v22 = vshll.u32 %v4316_v60, 30  ;;  %v984_v30 = vsel %vm978_vm11, %v981_v57, %v983_v14  ;;  %v135_v4 = vmul.f32 %v4339_v58, %v108_v59  ;;  %v1053_v46 = vshrl.u32 %v1052_v12, 23 }
 0x122   :  { %3555 = vsinq.f32 %v4213_v23  ;;  %v508_v10 = vmul.f32 %v507_v45, %v505_v35  ;;  %v721_v21 = vsel %vm4307_vm3, %v3894_v39, %v718_v11  ;;  %v897_v24 = vadd.s32 %v4169_v18, %v4190_v47 }
 0x123   :  { %v913_v29 = vsub.s32 32, %v912_v34  ;;  %v1003_v5 = vadd.s32 1, %v4326_v15  ;;  %v5982_v59 = vand.u32 2147483647, %v4303_v6  ;;  %v3139_v51 = vadd.s32 4294967169, %v1053_v46 }
 0x124   :  { %v822_v23 = vsel %vm6005_vm9, %v821_v56, %v820_v28  ;;  %v918_v32 = vadd.s32 127, %v917_v63  ;;  %v1000_v44 = vmul.u32 %v993_v55, %v984_v30  ;;  %vm1002_vm14 = vc.u32 %v4331_v37, %v4325_v25  ;;  %v175_v30 = vpop.permute.xlu1 %174 }
 0x125   :  { %v4358_v35 = vsub.s32 %v1317_v54, %v1320_v22  ;;  %v1004_v45 = vsel %vm1002_vm14, %v1003_v5, %v4326_v15  ;;  %v1059_v18 = vadd.s32 1, %v3139_v51  ;;  %v4361_v47 = vadd.f32 %v195_v48, %v135_v4 }
 0x126   :  { %v509_v11 = vxor.u32 2147483648, %v508_v10  ;;  %3557 = vcosq.f32 %v721_v21  ;;  %v6080_v57 = vand.u32 2147483647, %v3968_v20  ;;  %v6081_v14 = vmov 0 }
 0x127   :  { %6079 = vst [vmem:[#allocation25_spill] sm:$0xff] %v4361_v47  ;;  %v1005_v28 = vadd.s32 %v1004_v45, %v1000_v44  ;;  %3559 = vsinq.f32 %v721_v21  ;;  %v915_v55 = vshrl.u32 %v897_v24, %v913_v29  ;;  %vm1060_vm2 = vcmp.gt.s32.totalorder %v1059_v18, 0 }
 0x128   :  { %vm4365_vm15 = vcmp.le.f32.partialorder %v6080_v57, 0.7853982  ;;  %v919_v27 = vshll.u32 %v918_v32, 23  ;;  %v1056_v15 = vand.u32 8388607, %v5982_v59  ;;  %v1061_v12 = vsel %vm1060_vm2, %v1059_v18, 0 }
 0x129   :  { %v6082_v14 = vsel %vm4365_vm15, 4294967295, %v6081_v14  ;;  %v825_v54 = vsel %vm4365_vm15, %v3968_v20, %v822_v23  ;;  %v1006_v42 = vadd.s32 536870912, %v1005_v28  ;;  %v914_v56 = vshll.u32 %v4244_v1, %v912_v34 }
 0x12a   :  { %6083 = vst [vmem:[#allocation26_spill] sm:$0xff] %v6082_v14  ;;  %v1323_v63 = vsub.s32 0, %v4358_v35  ;;  %v1063_v49 = vand.u32 31, %v1061_v12  ;;  %v1676_v22 = vand.u32 2139095040, %v4361_v47  ;;  %v4379_v4 = vsel %vm6034_vm13, %v509_v11, %v508_v10 }
 0x12b   :  { %6084 = vst [vmem:[#allocation27_spill] sm:$0xff] %v4379_v4  ;;  %3561 = vcosq.f32 %v825_v54  ;;  %v4381_v46 = vshrl.u32 %v1006_v42, 30  ;;  %v4385_v21 = vmul.f32 %v4339_v58, %v4298_v13  ;;  %v4387_v24 = vor.u32 %v915_v55, %v914_v56 }
 0x12c   :  { %3563 = vsinq.f32 %v825_v54  ;;  %v4391_v1 = vadd.s32 %v4280_v61, %v4278_v33  ;;  %v1064_v34 = vsub.s32 32, %v1063_v49  ;;  %v4393_v48 = vpop.eup %3555  ;;  %v4395_v29 = vor.u32 4788187, %v919_v27 }
 0x12d   :  { %6085 = vst [vmem:[#allocation28_spill] sm:$0xff] %v4381_v46  ;;  %6086 = vst [vmem:[#allocation29_spill] sm:$0xff] %v4393_v48  ;;  %v1008_v10 = vshll.u32 %v4381_v46, 30  ;;  %v1057_v5 = vor.u32 8388608, %v1056_v15  ;;  %v4399_v51 = vadd.f32 %v175_v30, %v4197_v17  ;;  %v4402_v13 = vmin.u32 %v1323_v63, %v4358_v35 }
 0x12e   :  { %v1067_v23 = vshrl.u32 %v6058_v3, %v1064_v34  ;;  %v1070_v32 = vshrl.u32 %v6059_v40, %v1064_v34  ;;  %v1677_v33 = vshrl.u32 %v1676_v22, 23  ;;  %v1066_v44 = vshll.u32 %v6063_v43, %v1063_v49 }
 0x12f   :  { %6087 = vst [vmem:[#allocation30_spill] sm:$0xff] %v4399_v51  ;;  %v4406_v61 = vsub.s32 %v1005_v28, %v1008_v10  ;;  %v1072_v45 = vshll.u32 %v6059_v40, %v1063_v49  ;;  %v1073_v18 = vshrl.u32 %v6060_v52, %v1064_v34  ;;  %v1062_v11 = vshrl.u32 %v1061_v12, 5 }
 0x130   :  { %v1069_v17 = vshll.u32 %v6058_v3, %v1063_v49  ;;  %v1075_v57 = vshll.u32 %v6060_v52, %v1063_v49  ;;  %v1076_v54 = vshrl.u32 %v6071_v31, %v1064_v34  ;;  %v4414_v55 = vpop.eup %3557  ;;  %v1068_v42 = vor.u32 %v1067_v23, %v1066_v44 }
 0x131   :  { %6088 = vst [vmem:[#allocation31_spill] sm:$0xff] %v4414_v55  ;;  %v1011_v27 = vsub.s32 0, %v4406_v61  ;;  %v1074_v28 = vor.u32 %v1073_v18, %v1072_v45  ;;  %v4418_v56 = vpop.eup %3559  ;;  %v1078_v12 = vshll.u32 %v6071_v31, %v1063_v49  ;;  %v1079_v30 = vshrl.u32 %v6062_v0, %v1064_v34 }
 0x132   :  { %6089 = vst [vmem:[#allocation32_spill] sm:$0xff] %v4418_v56  ;;  %v1071_v63 = vor.u32 %v1070_v32, %v1069_v17  ;;  %v1077_v22 = vor.u32 %v1076_v54, %v1075_v57  ;;  %v1325_v10 = vclz %v4402_v13  ;;  %v4424_v60 = vshll.u32 %v1057_v5, 8 }
 0x133   :  { %v3136_v59 = vmin.u32 %v1011_v27, %v4406_v61  ;;  %v1156_v46 = vand.u32 2139095040, %v4399_v51  ;;  %v1065_v23 = vshrl.u32 %v6063_v43, %v1064_v34  ;;  %v1080_v44 = vor.u32 %v1079_v30, %v1078_v12 }
 0x134   :  { %vm1084_vm5 = vcmp.lt.s32.totalorder %v1062_v11, 4  ;;  %v3163_v45 = vadd.s32 4294967169, %v1677_v33  ;;  %vm1081_vm7 = vcmp.lt.s32.totalorder %v1062_v11, 1  ;;  %vm1083_vm8 = vcmp.lt.s32.totalorder %v1062_v11, 3 }
 0x135   :  { %v4428_v18 = vpop.eup %3561  ;;  %v1013_v32 = vclz %v3136_v59  ;;  %v1086_v49 = vsel %vm1084_vm5, %v1074_v28, 2102212464  ;;  %v1089_v13 = vsel %vm1081_vm7, %v1068_v42, %v1071_v63  ;;  %v1090_v57 = vsel %vm1084_vm5, %v1077_v22, 920167782 }
 0x136   :  { %6090 = vst [vmem:[#allocation33_spill] sm:$0xff] %v4428_v18  ;;  %v4430_v17 = vpop.eup %3563  ;;  %v1093_v54 = vsel %vm1081_vm7, %v1071_v63, %v1074_v28  ;;  %v1094_v5 = vsel %vm1084_vm5, %v1080_v44, 1326507024  ;;  %vm1082_vm10 = vcmp.lt.s32.totalorder %v1062_v11, 2  ;;  %v1091_v15 = vsel %vm1083_vm8, %v1074_v28, %v1090_v57 }
 0x137   :  { %6091 = vst [vmem:[#allocation34_spill] sm:$0xff] %v4430_v17  ;;  %v3137_v27 = vadd.s32 4294967294, %v1013_v32  ;;  %v6092_v34 = vand.u32 2147483647, %v4361_v47  ;;  %v1085_v33 = vsel %vm1081_vm7, %v1065_v23, %v1068_v42  ;;  %v1087_v30 = vsel %vm1083_vm8, %v1071_v63, %v1086_v49 }
 0x138   :  { %v1095_v18 = vsel %vm1083_vm8, %v1077_v22, %v1094_v5  ;;  %v1683_v59 = vadd.s32 1, %v3163_v45  ;;  %v1092_v55 = vsel %vm1082_vm10, %v1089_v13, %v1091_v15  ;;  %v1157_v14 = vshrl.u32 %v1156_v46, 23 }
 0x139   :  { %v4434_v12 = vand.u32 8388607, %v6092_v34  ;;  %vm3138_vm11 = vcmp.lt.s32.totalorder %v3137_v27, 0  ;;  %v1096_v17 = vsel %vm1082_vm10, %v1093_v54, %v1095_v18  ;;  %v1088_v42 = vsel %vm1082_vm10, %v1085_v33, %v1087_v30  ;;  %v93_v33 = vpop.permute.xlu1 %92 }
 0x13a   :  { %v1016_v56 = vsel %vm3138_vm11, 0, %v3137_v27  ;;  %v4439_v44 = vmul.u32.u64.low %v4424_v60, %v1096_v17  ;;  %v4440_v32 = vmul.u32.u64.high %v4424_v60, %v1096_v17, %v4439_v44  ;;  %vm1684_vm14 = vcmp.gt.s32.totalorder %v1683_v59, 0 }
 0x13b   :  { %v1017_v57 = vsub.s32 32, %v1016_v56  ;;  %v1021_v34 = vsub.s32 4294967266, %v1016_v56  ;;  %v4446_v22 = vmul.u32.u64.low %v4424_v60, %v1092_v55  ;;  %v4447_v15 = vmul.u32.u64.high %v4424_v60, %v1092_v55, %v4446_v22 }
 0x13c   :  { %v1685_v46 = vsel %vm1684_vm14, %v1683_v59, 0  ;;  %v1001_v23 = vadd.s32 %v4325_v25, %v4331_v37  ;;  %v5998_v49 = vand.u32 2147483647, %v4399_v51  ;;  %v4453_v17 = vadd.s32 4294967294, %v1325_v10 }
 0x13d   :  { %v1022_v45 = vadd.s32 127, %v1021_v34  ;;  %v1687_v18 = vand.u32 31, %v1685_v46  ;;  %v1104_v11 = vmul.u32 %v4424_v60, %v1088_v42  ;;  %v1681_v13 = vor.u32 8388608, %v4434_v12  ;;  %v4475_v39 = vpop.permute.xlu1 %182 }
 0x13e   :  { %v3143_v54 = vadd.s32 4294967169, %v1157_v14  ;;  %v1018_v5 = vshll.u32 %v4406_v61, %v1016_v56  ;;  %v1019_v55 = vshrl.u32 %v1001_v23, %v1017_v57  ;;  %vm1106_vm2 = vc.u32 %v4440_v32, %v4446_v22 }
 0x13f   :  { %v1688_v27 = vsub.s32 32, %v1687_v18  ;;  %v1023_v25 = vshll.u32 %v1022_v45, 23  ;;  %v1107_v37 = vadd.s32 1, %v4447_v15  ;;  %v1686_v30 = vshrl.u32 %v1685_v46, 5 }
 0x140   :  { %v1690_v10 = vshll.u32 %v6063_v43, %v1687_v18  ;;  %v1693_v60 = vshll.u32 %v6058_v3, %v1687_v18  ;;  %v1696_v14 = vshll.u32 %v6059_v40, %v1687_v18  ;;  %v1699_v61 = vshll.u32 %v6060_v52, %v1687_v18 }
 0x141   :  { %v1691_v59 = vshrl.u32 %v6058_v3, %v1688_v27  ;;  %v1108_v56 = vsel %vm1106_vm2, %v1107_v37, %v4447_v15  ;;  %v1694_v12 = vshrl.u32 %v6059_v40, %v1688_v27  ;;  %v1697_v44 = vshrl.u32 %v6060_v52, %v1688_v27 }
 0x142   :  { %v1700_v57 = vshrl.u32 %v6071_v31, %v1688_v27  ;;  %vm3150_vm5 = vcmp.lt.s32.totalorder %v4453_v17, 0  ;;  %v1109_v34 = vadd.s32 %v1108_v56, %v1104_v11  ;;  %v1702_v46 = vshll.u32 %v6071_v31, %v1687_v18 }
 0x143   :  { %v1692_v42 = vor.u32 %v1691_v59, %v1690_v10  ;;  %v1160_v23 = vand.u32 8388607, %v5998_v49  ;;  %v1695_v45 = vor.u32 %v1694_v12, %v1693_v60  ;;  %v1698_v28 = vor.u32 %v1697_v44, %v1696_v14 }
 0x144   :  { %v1701_v63 = vor.u32 %v1700_v57, %v1699_v61  ;;  %v1703_v15 = vshrl.u32 %v6062_v0, %v1688_v27  ;;  %v1020_v37 = vor.u32 %v1019_v55, %v1018_v5  ;;  %v1024_v20 = vor.u32 4788187, %v1023_v25 }
 0x145   :  { %v1110_v48 = vadd.s32 536870912, %v1109_v34  ;;  %v1163_v41 = vadd.s32 1, %v3143_v54  ;;  %v1689_v4 = vshrl.u32 %v6063_v43, %v1688_v27  ;;  %vm1705_vm7 = vcmp.lt.s32.totalorder %v1686_v30, 1 }
 0x146   :  { %v1704_v11 = vor.u32 %v1703_v15, %v1702_v46  ;;  %vm1708_vm8 = vcmp.lt.s32.totalorder %v1686_v30, 4  ;;  %vm1706_vm10 = vcmp.lt.s32.totalorder %v1686_v30, 2  ;;  %v1713_v59 = vsel %vm1705_vm7, %v1692_v42, %v1695_v45  ;;  %v98_v15 = vpop.permute.xlu1 %97 }
 0x147   :  { %v4478_v18 = vshrl.u32 %v1110_v48, 30  ;;  %v1710_v10 = vsel %vm1708_vm8, %v1698_v28, 2102212464  ;;  %vm1707_vm11 = vcmp.lt.s32.totalorder %v1686_v30, 3  ;;  %v1714_v60 = vsel %vm1708_vm8, %v1701_v63, 920167782 }
 0x148   :  { %v1717_v14 = vsel %vm1705_vm7, %v1695_v45, %v1698_v28  ;;  %v1718_v61 = vsel %vm1708_vm8, %v1704_v11, 1326507024  ;;  %v1709_v55 = vsel %vm1705_vm7, %v1689_v4, %v1692_v42  ;;  %v1711_v54 = vsel %vm1707_vm11, %v1695_v45, %v1710_v10 }
 0x149   :  { %v1112_v5 = vshll.u32 %v4478_v18, 30  ;;  %v1715_v25 = vsel %vm1707_vm11, %v1698_v28, %v1714_v60  ;;  %v1719_v27 = vsel %vm1707_vm11, %v1701_v63, %v1718_v61  ;;  %v1721_v12 = vshll.u32 %v1681_v13, 8 }
 0x14a   :  { %v1716_v56 = vsel %vm1706_vm10, %v1713_v59, %v1715_v25  ;;  %v1161_v44 = vor.u32 8388608, %v1160_v23  ;;  %v1025_v57 = vand.u32 2147483647, %v1024_v20  ;;  %v1720_v46 = vsel %vm1706_vm10, %v1717_v14, %v1719_v27 }
 0x14b   :  { %v4482_v48 = vsub.s32 %v1109_v34, %v1112_v5  ;;  %vm1164_vm14 = vcmp.gt.s32.totalorder %v1163_v41, 0  ;;  %v1712_v49 = vsel %vm1706_vm10, %v1709_v55, %v1711_v54  ;;  %v1027_v42 = vcvt.s32.f32 %v1020_v37 }
 0x14c   :  { %v4486_v11 = vmul.u32.u64.low %v1721_v12, %v1720_v46  ;;  %v4487_v2 = vmul.u32.u64.high %v1721_v12, %v1720_v46, %v4486_v11  ;;  %v1165_v4 = vsel %vm1164_vm14, %v1163_v41, 0  ;;  %v4497_v20 = vsel %vm3150_vm5, 0, %v4453_v17 }
 0x14d   :  { %v1115_v28 = vsub.s32 0, %v4482_v48  ;;  %v4490_v45 = vmul.u32.u64.low %v1721_v12, %v1716_v56  ;;  %v4491_v63 = vmul.u32.u64.high %v1721_v12, %v1716_v56, %v4490_v45  ;;  %v1167_v13 = vand.u32 31, %v1165_v4 }
 0x14e   :  { %v132_v30 = vmul.f32 %v4339_v58, %v93_v33  ;;  %v4501_v34 = vmul.f32 %v4339_v58, %v98_v15  ;;  %v4503_v23 = vmul.f32 %v1027_v42, %v1025_v57  ;;  %v1105_v41 = vadd.s32 %v4446_v22, %v4440_v32 }
 0x14f   :  { %v3140_v37 = vmin.u32 %v1115_v28, %v4482_v48  ;;  %v1728_v10 = vmul.u32 %v1721_v12, %v1712_v49  ;;  %vm1730_vm2 = vc.u32 %v4487_v2, %v4490_v45  ;;  %v4510_v59 = vshrl.u32 %v1165_v4, 5 }
 0x150   :  { %v1168_v17 = vsub.s32 32, %v1167_v13  ;;  %v4512_v60 = vshll.u32 %v1161_v44, 8  ;;  %v1731_v14 = vadd.s32 1, %v4491_v63  ;;  %v1170_v61 = vshll.u32 %v6063_v43, %v1167_v13 }
 0x151   :  { %v1117_v33 = vclz %v3140_v37  ;;  %v1173_v5 = vshll.u32 %v6058_v3, %v1167_v13  ;;  %v1176_v49 = vshll.u32 %v6059_v40, %v1167_v13  ;;  %v1179_v56 = vshll.u32 %v6060_v52, %v1167_v13 }
 0x152   :  { %v1171_v32 = vshrl.u32 %v6058_v3, %v1168_v17  ;;  %v1174_v22 = vshrl.u32 %v6059_v40, %v1168_v17  ;;  %v1177_v55 = vshrl.u32 %v6060_v52, %v1168_v17  ;;  %v1732_v25 = vsel %vm1730_vm2, %v1731_v14, %v4491_v63 }
 0x153   :  { %v3141_v54 = vadd.s32 4294967294, %v1117_v33  ;;  %v1180_v27 = vshrl.u32 %v6071_v31, %v1168_v17  ;;  %v1733_v12 = vadd.s32 %v1732_v25, %v1728_v10  ;;  %v1182_v11 = vshll.u32 %v6071_v31, %v1167_v13 }
 0x154   :  { %v1172_v44 = vor.u32 %v1171_v32, %v1170_v61  ;;  %v1175_v57 = vor.u32 %v1174_v22, %v1173_v5  ;;  %v1178_v46 = vor.u32 %v1177_v55, %v1176_v49  ;;  %v1183_v4 = vshrl.u32 %v6062_v0, %v1168_v17 }
 0x155   :  { %vm3142_vm5 = vcmp.lt.s32.totalorder %v3141_v54, 0  ;;  %v1181_v15 = vor.u32 %v1180_v27, %v1179_v56  ;;  %v1734_v28 = vadd.s32 536870912, %v1733_v12  ;;  %vm1185_vm7 = vcmp.lt.s32.totalorder %v4510_v59, 1  ;;  %v187_v56 = vpop.permute.xlu1 %186 }
 0x156   :  { %v1120_v42 = vsel %vm3142_vm5, 0, %v3141_v54  ;;  %vm1186_vm8 = vcmp.lt.s32.totalorder %v4510_v59, 2  ;;  %v1184_v37 = vor.u32 %v1183_v4, %v1182_v11  ;;  %vm1187_vm10 = vcmp.lt.s32.totalorder %v4510_v59, 3 }
 0x157   :  { %v1125_v63 = vsub.s32 4294967266, %v1120_v42  ;;  %vm1188_vm11 = vcmp.lt.s32.totalorder %v4510_v59, 4  ;;  %v4530_v10 = vshrl.u32 %v1734_v28, 30  ;;  %v1193_v13 = vsel %vm1185_vm7, %v1172_v44, %v1175_v57 }
 0x158   :  { %v1190_v33 = vsel %vm1188_vm11, %v1178_v46, 2102212464  ;;  %v1194_v14 = vsel %vm1188_vm11, %v1181_v15, 920167782  ;;  %vm6004_vm14 = vcmp.lt.s32.totalorder %v4178_v16, 0  ;;  %v1121_v61 = vsub.s32 32, %v1120_v42 }
 0x159   :  { %6093 = vst [vmem:[#allocation35_spill] sm:$0xff] %v4530_v10  ;;  %v1126_v5 = vadd.s32 127, %v1125_v63  ;;  %v1169_v32 = vshrl.u32 %v6063_v43, %v1168_v17  ;;  %v1195_v22 = vsel %vm1187_vm10, %v1178_v46, %v1194_v14  ;;  %v1736_v49 = vshll.u32 %v4530_v10, 30 }
 0x15a   :  { %v1196_v55 = vsel %vm1186_vm8, %v1193_v13, %v1195_v22  ;;  %v1197_v54 = vsel %vm1185_vm7, %v1175_v57, %v1178_v46  ;;  %v4548_v25 = vadd.f32 %v4475_v39, %v132_v30  ;;  %v1191_v17 = vsel %vm1187_vm10, %v1175_v57, %v1190_v33 }
 0x15b   :  { %v1127_v27 = vshll.u32 %v1126_v5, 23  ;;  %v1189_v11 = vsel %vm1185_vm7, %v1169_v32, %v1172_v44  ;;  %v1198_v4 = vsel %vm1188_vm11, %v1184_v37, 1326507024  ;;  %v4556_v28 = vsub.s32 %v1733_v12, %v1736_v49 }
 0x15c   :  { %v1199_v63 = vsel %vm1187_vm10, %v1181_v15, %v1198_v4  ;;  %v4561_v46 = vmul.u32.u64.low %v4512_v60, %v1196_v55  ;;  %v4562_v39 = vmul.u32.u64.high %v4512_v60, %v1196_v55, %v4561_v46  ;;  %v1333_v30 = vsub.s32 4294967266, %v4497_v20 }
 0x15d   :  { %v6094_v13 = vand.u32 2147483647, %v4178_v16  ;;  %v1123_v57 = vshrl.u32 %v1105_v41, %v1121_v61  ;;  %v1200_v12 = vsel %vm1186_vm8, %v1197_v54, %v1199_v63  ;;  %v4574_v37 = vadd.f32 %v187_v56, %v4501_v34 }
 0x15e   :  { %v1029_v15 = vxor.u32 2147483648, %v4503_v23  ;;  %v1739_v33 = vsub.s32 0, %v4556_v28  ;;  %v4579_v14 = vmul.u32.u64.low %v4512_v60, %v1200_v12  ;;  %v4580_v5 = vmul.u32.u64.high %v4512_v60, %v1200_v12, %v4579_v14 }
 0x15f   :  { %vm4567_vm2 = vcmp.le.f32.partialorder %v6094_v13, 0.7853982  ;;  %v1122_v32 = vshll.u32 %v4482_v48, %v1120_v42  ;;  %v1128_v22 = vor.u32 4788187, %v1127_v27  ;;  %v1192_v41 = vsel %vm1186_vm8, %v1189_v11, %v1191_v17 }
 0x160   :  { %v1364_v61 = vand.u32 2139095040, %v4548_v25  ;;  %v6097_v49 = vand.u32 2147483647, %v4395_v29  ;;  %v6098_v34 = vcvt.s32.f32 %v4387_v24  ;;  %v1329_v54 = vsub.s32 32, %v4497_v20 }
 0x161   :  { %v3164_v56 = vmin.u32 %v1739_v33, %v4556_v28  ;;  %v1211_v4 = vadd.s32 1, %v4562_v39  ;;  %v1334_v63 = vadd.s32 127, %v1333_v30  ;;  %v1124_v48 = vor.u32 %v1123_v57, %v1122_v32 }
 0x162   :  { %v4590_v55 = vmul.f32 %v6098_v34, %v6097_v49  ;;  %v1365_v42 = vshrl.u32 %v1364_v61, 23  ;;  %v1468_v59 = vand.u32 2139095040, %v4574_v37  ;;  %v1030_v27 = vsel %vm6004_vm14, %v1029_v15, %v4503_v23  ;;  %v191_v49 = vpop.permute.xlu1 %190 }
 0x163   :  { %v1741_v29 = vclz %v3164_v56  ;;  %v1208_v24 = vmul.u32 %v4512_v60, %v1192_v41  ;;  %vm1210_vm5 = vc.u32 %v4580_v5, %v4561_v46  ;;  %v1129_v11 = vand.u32 2147483647, %v1128_v22 }
 0x164   :  { %v1212_v17 = vsel %vm1210_vm5, %v1211_v4, %v4562_v39  ;;  %v6001_v13 = vand.u32 2147483647, %v4548_v25  ;;  %v3151_v12 = vadd.s32 4294967169, %v1365_v42  ;;  %v1331_v30 = vshrl.u32 %v4391_v1, %v1329_v54 }
 0x165   :  { %v3165_v57 = vadd.s32 4294967294, %v1741_v29  ;;  %v1213_v33 = vadd.s32 %v1212_v17, %v1208_v24  ;;  %v1469_v14 = vshrl.u32 %v1468_v59, 23  ;;  %v1335_v61 = vshll.u32 %v1334_v63, 23 }
 0x166   :  { %v1131_v23 = vcvt.s32.f32 %v1124_v48  ;;  %v1371_v15 = vadd.s32 1, %v3151_v12  ;;  %v1330_v60 = vshll.u32 %v4358_v35, %v4497_v20  ;;  %v4610_v39 = vsel %vm4567_vm2, %v4178_v16, %v1030_v27 }
 0x167   :  { %vm3166_vm7 = vcmp.lt.s32.totalorder %v3165_v57, 0  ;;  %v1214_v22 = vadd.s32 536870912, %v1213_v33  ;;  %v1368_v34 = vand.u32 8388607, %v6001_v13  ;;  %v3155_v4 = vadd.s32 4294967169, %v1469_v14 }
 0x168   :  { %v4612_v1 = vmul.f32 %v1131_v23, %v1129_v11  ;;  %v1744_v41 = vsel %vm3166_vm7, 0, %v3165_v57  ;;  %vm1372_vm8 = vcmp.gt.s32.totalorder %v1371_v15, 0  ;;  %v4616_v54 = vor.u32 %v1331_v30, %v1330_v60 }
 0x169   :  { %v1749_v56 = vsub.s32 4294967266, %v1744_v41  ;;  %v4619_v35 = vadd.f32 %v191_v49, %v4385_v21  ;;  %v4621_v20 = vor.u32 4788187, %v1335_v61  ;;  %v1745_v63 = vsub.s32 32, %v1744_v41 }
 0x16a   :  { %v4623_v48 = vshrl.u32 %v1214_v22, 30  ;;  %v1373_v42 = vsel %vm1372_vm8, %v1371_v15, 0  ;;  %3565 = vcosq.f32 %v4610_v39  ;;  %v1729_v59 = vadd.s32 %v4490_v45, %v4487_v2 }
 0x16b   :  { %v1375_v27 = vand.u32 31, %v1373_v42  ;;  %v4631_v11 = vadd.s32 %v4561_v46, %v4580_v5  ;;  %v1369_v17 = vor.u32 8388608, %v1368_v34  ;;  %v1746_v12 = vshll.u32 %v4556_v28, %v1744_v41 }
 0x16c   :  { %6099 = vst [vmem:[#allocation36_spill] sm:$0xff] %v4623_v48  ;;  %v1216_v21 = vshll.u32 %v4623_v48, 30  ;;  %v1750_v30 = vadd.s32 127, %v1749_v56  ;;  %v1475_v14 = vadd.s32 1, %v3155_v4  ;;  %v1747_v61 = vshrl.u32 %v1729_v59, %v1745_v63 }
 0x16d   :  { %v1376_v57 = vsub.s32 32, %v1375_v27  ;;  %v1374_v2 = vshrl.u32 %v1373_v42, 5  ;;  %v1378_v45 = vshll.u32 %v6063_v43, %v1375_v27  ;;  %v1381_v49 = vshll.u32 %v6058_v3, %v1375_v27 }
 0x16e   :  { %v4635_v23 = vsub.s32 %v1213_v33, %v1216_v21  ;;  %v1384_v46 = vshll.u32 %v6059_v40, %v1375_v27  ;;  %v1387_v5 = vshll.u32 %v6060_v52, %v1375_v27  ;;  %v1751_v41 = vshll.u32 %v1750_v30, 23 }
 0x16f   :  { %v1379_v15 = vshrl.u32 %v6058_v3, %v1376_v57  ;;  %v1382_v28 = vshrl.u32 %v6059_v40, %v1376_v57  ;;  %v1385_v22 = vshrl.u32 %v6060_v52, %v1376_v57  ;;  %v1388_v33 = vshrl.u32 %v6071_v31, %v1376_v57 }
 0x170   :  { %v1219_v60 = vsub.s32 0, %v4635_v23  ;;  %v1390_v56 = vshll.u32 %v6071_v31, %v1375_v27  ;;  %v1391_v4 = vshrl.u32 %v6062_v0, %v1376_v57  ;;  %v1748_v32 = vor.u32 %v1747_v61, %v1746_v12 }
 0x171   :  { %v1380_v34 = vor.u32 %v1379_v15, %v1378_v45  ;;  %v1383_v42 = vor.u32 %v1382_v28, %v1381_v49  ;;  %v1386_v59 = vor.u32 %v1385_v22, %v1384_v46  ;;  %v1389_v21 = vor.u32 %v1388_v33, %v1387_v5 }
 0x172   :  { %v3144_v63 = vmin.u32 %v1219_v60, %v4635_v23  ;;  %v1392_v13 = vor.u32 %v1391_v4, %v1390_v56  ;;  %v1409_v24 = vshll.u32 %v1369_v17, 8  ;;  %vm1476_vm10 = vcmp.gt.s32.totalorder %v1475_v14, 0 }
 0x173   :  { %vm6007_vm11 = vcmp.lt.s32.totalorder %v4303_v6, 0  ;;  %v1377_v10 = vshrl.u32 %v6063_v43, %v1376_v57  ;;  %vm1393_vm5 = vcmp.lt.s32.totalorder %v1374_v2, 1  ;;  %vm1396_vm7 = vcmp.lt.s32.totalorder %v1374_v2, 4 }
 0x174   :  { %v1221_v29 = vclz %v3144_v63  ;;  %v4651_v30 = vpop.eup %3565  ;;  %vm1395_vm8 = vcmp.lt.s32.totalorder %v1374_v2, 3  ;;  %v1398_v27 = vsel %vm1396_vm7, %v1386_v59, 2102212464  ;;  %v1401_v45 = vsel %vm1393_vm5, %v1380_v34, %v1383_v42 }
 0x175   :  { %6100 = vst [vmem:[#allocation37_spill] sm:$0xff] %v4651_v30  ;;  %v1402_v15 = vsel %vm1396_vm7, %v1389_v21, 920167782  ;;  %v1752_v49 = vor.u32 4788187, %v1751_v41  ;;  %v1405_v12 = vsel %vm1393_vm5, %v1383_v42, %v1386_v59  ;;  %vm1394_vm14 = vcmp.lt.s32.totalorder %v1374_v2, 2 }
 0x176   :  { %v3145_v46 = vadd.s32 4294967294, %v1221_v29  ;;  %v1403_v5 = vsel %vm1395_vm8, %v1386_v59, %v1402_v15  ;;  %v1397_v17 = vsel %vm1393_vm5, %v1377_v10, %v1380_v34  ;;  %v1399_v61 = vsel %vm1395_vm8, %v1383_v42, %v1398_v27 }
 0x177   :  { %v1406_v60 = vsel %vm1396_vm7, %v1392_v13, 1326507024  ;;  %v1404_v28 = vsel %vm1394_vm14, %v1401_v45, %v1403_v5  ;;  %v6101_v57 = vand.u32 2147483647, %v4574_v37  ;;  %v1755_v56 = vcvt.s32.f32 %v1748_v32 }
 0x178   :  { %vm3146_vm9 = vcmp.lt.s32.totalorder %v3145_v46, 0  ;;  %v1407_v22 = vsel %vm1395_vm8, %v1389_v21, %v1406_v60  ;;  %v1477_v30 = vsel %vm1476_vm10, %v1475_v14, 0  ;;  %v1753_v41 = vand.u32 2147483647, %v1752_v49 }
 0x179   :  { %v4655_v33 = vand.u32 8388607, %v6101_v57  ;;  %v1224_v4 = vsel %vm3146_vm9, 0, %v3145_v46  ;;  %v1408_v63 = vsel %vm1394_vm14, %v1405_v12, %v1407_v22  ;;  %v1400_v59 = vsel %vm1394_vm14, %v1397_v17, %v1399_v61 }
 0x17a   :  { %v1225_v29 = vsub.s32 32, %v1224_v4  ;;  %v1229_v15 = vsub.s32 4294967266, %v1224_v4  ;;  %v4658_v2 = vmul.u32.u64.low %v1409_v24, %v1408_v63  ;;  %v4659_v10 = vmul.u32.u64.high %v1409_v24, %v1408_v63, %v4658_v2 }
 0x17b   :  { %v4661_v13 = vmul.u32.u64.low %v1409_v24, %v1404_v28  ;;  %v4662_v34 = vmul.u32.u64.high %v1409_v24, %v1404_v28, %v4661_v13  ;;  %v1226_v42 = vshll.u32 %v4635_v23, %v1224_v4  ;;  %v1479_v27 = vand.u32 31, %v1477_v30 }
 0x17c   :  { %v1227_v21 = vshrl.u32 %v4631_v11, %v1225_v29  ;;  %v1230_v32 = vadd.s32 127, %v1229_v15  ;;  %v6102_v14 = vxor.u32 2147483648, %v4612_v1  ;;  %v1473_v49 = vor.u32 8388608, %v4655_v33 }
 0x17d   :  { %v1572_v5 = vand.u32 2139095040, %v4619_v35  ;;  %v4677_v12 = vmul.f32 %v1755_v56, %v1753_v41  ;;  %v1480_v11 = vsub.s32 32, %v1479_v27  ;;  %v1416_v61 = vmul.u32 %v1409_v24, %v1400_v59 }
 0x17e   :  { %v4672_v45 = vsel %vm6007_vm11, %v6102_v14, %v4612_v1  ;;  %v1228_v23 = vor.u32 %v1227_v21, %v1226_v42  ;;  %v1231_v17 = vshll.u32 %v1230_v32, 23  ;;  %vm1418_vm9 = vc.u32 %v4659_v10, %v4661_v13 }
 0x17f   :  { %v1419_v60 = vadd.s32 1, %v4662_v34  ;;  %v1478_v28 = vshrl.u32 %v1477_v30, 5  ;;  %v1482_v22 = vshll.u32 %v6063_v43, %v1479_v27  ;;  %v1483_v57 = vshrl.u32 %v6058_v3, %v1480_v11 }
 0x180   :  { %v1232_v1 = vor.u32 4788187, %v1231_v17  ;;  %v1485_v33 = vshll.u32 %v6058_v3, %v1479_v27  ;;  %v1486_v4 = vshrl.u32 %v6059_v40, %v1480_v11  ;;  %v1488_v63 = vshll.u32 %v6059_v40, %v1479_v27 }
 0x181   :  { %v1420_v56 = vsel %vm1418_vm9, %v1419_v60, %v4662_v34  ;;  %v1489_v24 = vshrl.u32 %v6060_v52, %v1480_v11  ;;  %v1235_v41 = vcvt.s32.f32 %v1228_v23  ;;  %v1484_v15 = vor.u32 %v1483_v57, %v1482_v22 }
 0x182   :  { %v1421_v29 = vadd.s32 %v1420_v56, %v1416_v61  ;;  %v1573_v59 = vshrl.u32 %v1572_v5, 23  ;;  %v1487_v30 = vor.u32 %v1486_v4, %v1485_v33  ;;  %v1491_v42 = vshll.u32 %v6060_v52, %v1479_v27 }
 0x183   :  { %v1490_v2 = vor.u32 %v1489_v24, %v1488_v63  ;;  %v1492_v21 = vshrl.u32 %v6071_v31, %v1480_v11  ;;  %v6103_v32 = vand.u32 2147483647, %v4303_v6  ;;  %v6104_v34 = vmov 0  ;;  %v113_v24 = vpop.permute.xlu1 %112 }
 0x184   :  { %v1422_v14 = vadd.s32 536870912, %v1421_v29  ;;  %v1481_v17 = vshrl.u32 %v6063_v43, %v1480_v11  ;;  %v1494_v23 = vshll.u32 %v6071_v31, %v1479_v27  ;;  %v1495_v61 = vshrl.u32 %v6062_v0, %v1480_v11 }
 0x185   :  { %vm4693_vm14 = vcmp.le.f32.partialorder %v6103_v32, 0.7853982  ;;  %vm6016_vm10 = vcmp.lt.s32.totalorder %v4361_v47, 0  ;;  %v1233_v5 = vand.u32 2147483647, %v1232_v1  ;;  %v1493_v60 = vor.u32 %v1492_v21, %v1491_v42 }
 0x186   :  { %v6105_v34 = vsel %vm4693_vm14, 4294967295, %v6104_v34  ;;  %vm1497_vm5 = vcmp.lt.s32.totalorder %v1478_v28, 1  ;;  %vm1498_vm7 = vcmp.lt.s32.totalorder %v1478_v28, 2  ;;  %v4701_v22 = vshrl.u32 %v1422_v14, 30 }
 0x187   :  { %6106 = vst [vmem:[#allocation38_spill] sm:$0xff] %v6105_v34  ;;  %v1496_v57 = vor.u32 %v1495_v61, %v1494_v23  ;;  %vm1499_vm8 = vcmp.lt.s32.totalorder %v1478_v28, 3  ;;  %vm1500_vm9 = vcmp.lt.s32.totalorder %v1478_v28, 4  ;;  %v1501_v33 = vsel %vm1497_vm5, %v1481_v17, %v1484_v15 }
 0x188   :  { %6107 = vst [vmem:[#allocation39_spill] sm:$0xff] %v4701_v22  ;;  %v1502_v56 = vsel %vm1500_vm9, %v1490_v2, 2102212464  ;;  %v1505_v4 = vsel %vm1497_vm5, %v1484_v15, %v1487_v30  ;;  %v1506_v63 = vsel %vm1500_vm9, %v1493_v60, 920167782  ;;  %v1424_v27 = vshll.u32 %v4701_v22, 30 }
 0x189   :  { %v1503_v11 = vsel %vm1499_vm8, %v1487_v30, %v1502_v56  ;;  %v1507_v32 = vsel %vm1499_vm8, %v1490_v2, %v1506_v63  ;;  %v1509_v1 = vsel %vm1497_vm5, %v1487_v30, %v1490_v2  ;;  %v1757_v42 = vxor.u32 2147483648, %v4677_v12 }
 0x18a   :  { %v1508_v21 = vsel %vm1498_vm7, %v1505_v4, %v1507_v32  ;;  %v1510_v14 = vsel %vm1500_vm9, %v1496_v57, 1326507024  ;;  %v1513_v23 = vshll.u32 %v1473_v49, 8  ;;  %v6108_v61 = vand.u32 2147483647, %v4361_v47 }
 0x18b   :  { %v6109_v17 = vmov 0  ;;  %vm6030_vm0 = vcmp.lt.s32.totalorder %v4399_v51, 0  ;;  %v1236_v15 = vmul.f32 %v1235_v41, %v1233_v5  ;;  %v4715_v46 = vsub.s32 %v1421_v29, %v1424_v27 }
 0x18c   :  { %vm4710_vm11 = vcmp.le.f32.partialorder %v6108_v61, 0.7853982  ;;  %v1511_v56 = vsel %vm1499_vm8, %v1493_v60, %v1510_v14  ;;  %v6112_v30 = vand.u32 2147483647, %v4619_v35  ;;  %v1504_v4 = vsel %vm1498_vm7, %v1501_v33, %v1503_v11  ;;  %v199_v60 = vpop.permute.xlu1 %198 }
 0x18d   :  { %v6110_v17 = vsel %vm4710_vm11, 4294967295, %v6109_v17  ;;  %v1512_v49 = vsel %vm1498_vm7, %v1509_v1, %v1511_v56  ;;  %v4722_v57 = vmul.u32.u64.low %v1513_v23, %v1508_v21  ;;  %v4723_v63 = vmul.u32.u64.high %v1513_v23, %v1508_v21, %v4722_v57 }
 0x18e   :  { %6111 = vst [vmem:[#allocation40_spill] sm:$0xff] %v6110_v17  ;;  %v1576_v2 = vand.u32 8388607, %v6112_v30  ;;  %v1427_v32 = vsub.s32 0, %v4715_v46  ;;  %v4727_v61 = vmul.u32.u64.low %v1513_v23, %v1512_v49  ;;  %v4728_v22 = vmul.u32.u64.high %v1513_v23, %v1512_v49, %v4727_v61 }
 0x18f   :  { %v3159_v41 = vadd.s32 4294967169, %v1573_v59  ;;  %v1337_v29 = vand.u32 2147483647, %v4621_v20  ;;  %v1339_v5 = vcvt.s32.f32 %v4616_v54  ;;  %3567 = vsinq.f32 %v4610_v39 }
 0x190   :  { %v1137_v28 = vsel %vm4693_vm14, %v4303_v6, %v4672_v45  ;;  %v1758_v33 = vsel %vm6016_vm10, %v1757_v42, %v4677_v12  ;;  %v3152_v27 = vmin.u32 %v1427_v32, %v4715_v46  ;;  %v136_v59 = vmul.f32 %v4339_v58, %v113_v24 }
 0x191   :  { %v1579_v11 = vadd.s32 1, %v3159_v41  ;;  %v1237_v20 = vxor.u32 2147483648, %v1236_v15  ;;  %v1520_v1 = vmul.u32 %v1513_v23, %v1504_v4  ;;  %v1523_v54 = vadd.s32 1, %v4723_v63 }
 0x192   :  { %v1577_v39 = vor.u32 8388608, %v1576_v2  ;;  %v1429_v21 = vclz %v3152_v27  ;;  %vm1522_vm5 = vc.u32 %v4728_v22, %v4722_v57  ;;  %v4745_v45 = vadd.f32 %v199_v60, %v136_v59 }
 0x193   :  { %vm1580_vm7 = vcmp.gt.s32.totalorder %v1579_v11, 0  ;;  %v4747_v14 = vmul.f32 %v1339_v5, %v1337_v29  ;;  %3569 = vcosq.f32 %v1137_v28  ;;  %v1524_v12 = vsel %vm1522_vm5, %v1523_v54, %v4723_v63 }
 0x194   :  { %v1581_v42 = vsel %vm1580_vm7, %v1579_v11, 0  ;;  %3571 = vsinq.f32 %v1137_v28  ;;  %v3153_v58 = vadd.s32 4294967294, %v1429_v21  ;;  %v1525_v24 = vadd.s32 %v1524_v12, %v1520_v1 }
 0x195   :  { %v1583_v23 = vand.u32 31, %v1581_v42  ;;  %v4753_v56 = vsel %vm4710_vm11, %v4361_v47, %v1758_v33  ;;  %v4757_v30 = vsel %vm6030_vm0, %v1237_v20, %v1236_v15  ;;  %v1417_v2 = vadd.s32 %v4661_v13, %v4659_v10 }
 0x196   :  { %v4761_v4 = vshll.u32 %v1577_v39, 8  ;;  %vm3154_vm8 = vcmp.lt.s32.totalorder %v3153_v58, 0  ;;  %v1526_v49 = vadd.s32 536870912, %v1525_v24  ;;  %v1780_v32 = vand.u32 2139095040, %v4745_v45 }
 0x197   :  { %v1584_v63 = vsub.s32 32, %v1583_v23  ;;  %v1432_v61 = vsel %vm3154_vm8, 0, %v3153_v58  ;;  %v4764_v41 = vshrl.u32 %v1581_v42, 5  ;;  %v1586_v29 = vshll.u32 %v6063_v43, %v1583_v23 }
 0x198   :  { %v1589_v5 = vshll.u32 %v6058_v3, %v1583_v23  ;;  %v1433_v28 = vsub.s32 32, %v1432_v61  ;;  %v1437_v15 = vsub.s32 4294967266, %v1432_v61  ;;  %v4768_v60 = vshrl.u32 %v1526_v49, 30 }
 0x199   :  { %v1592_v10 = vshll.u32 %v6059_v40, %v1583_v23  ;;  %v4771_v13 = vpop.eup %3567  ;;  %v1587_v33 = vshrl.u32 %v6058_v3, %v1584_v63  ;;  %v1590_v27 = vshrl.u32 %v6059_v40, %v1584_v63  ;;  %v1593_v11 = vshrl.u32 %v6060_v52, %v1584_v63 }
 0x19a   :  { %6113 = vst [vmem:[#allocation41_spill] sm:$0xff] %v4768_v60  ;;  %6114 = vst [vmem:[#allocation42_spill] sm:$0xff] %v4771_v13  ;;  %v1595_v59 = vshll.u32 %v6060_v52, %v1583_v23  ;;  %v1435_v20 = vshrl.u32 %v1417_v2, %v1433_v28  ;;  %v1438_v1 = vadd.s32 127, %v1437_v15  ;;  %v1528_v54 = vshll.u32 %v4768_v60, 30 }
 0x19b   :  { %v1596_v39 = vshrl.u32 %v6071_v31, %v1584_v63  ;;  %v1434_v21 = vshll.u32 %v4715_v46, %v1432_v61  ;;  %v1588_v12 = vor.u32 %v1587_v33, %v1586_v29  ;;  %v1591_v42 = vor.u32 %v1590_v27, %v1589_v5 }
 0x19c   :  { %v1439_v49 = vshll.u32 %v1438_v1, 23  ;;  %v4781_v17 = vsub.s32 %v1525_v24, %v1528_v54  ;;  %v1594_v47 = vor.u32 %v1593_v11, %v1592_v10  ;;  %v6116_v2 = vand.u32 2147483647, %v4399_v51 }
 0x19d   :  { %v1597_v13 = vor.u32 %v1596_v39, %v1595_v59  ;;  %v4783_v34 = vpop.eup %3569  ;;  %v6117_v28 = vmov 0  ;;  %v1585_v15 = vshrl.u32 %v6063_v43, %v1584_v63  ;;  %v1598_v46 = vshll.u32 %v6071_v31, %v1583_v23 }
 0x19e   :  { %6115 = vst [vmem:[#allocation43_spill] sm:$0xff] %v4783_v34  ;;  %vm4787_vm9 = vcmp.le.f32.partialorder %v6116_v2, 0.7853982  ;;  %v1599_v61 = vshrl.u32 %v6062_v0, %v1584_v63  ;;  %v1781_v29 = vshrl.u32 %v1780_v32, 23  ;;  %v4794_v5 = vpop.eup %3571  ;;  %v1436_v24 = vor.u32 %v1435_v20, %v1434_v21  ;;  %v1881_v34 = vld [vmem:[%s5937_s2] sm:$0xff] }
 0x19f   :  { %v6118_v28 = vsel %vm4787_vm9, 4294967295, %v6117_v28  ;;  %6120 = vst [vmem:[#allocation45_spill] sm:$0xff] %v4794_v5  ;;  %v1440_v10 = vor.u32 4788187, %v1439_v49  ;;  %v1531_v33 = vsub.s32 0, %v4781_v17  ;;  %vm1601_vm5 = vcmp.lt.s32.totalorder %v4764_v41, 1  ;;  %3285 = vmatprep.mubr.f32.mxu0 %v1881_v34 }
 0x1a0   :  { %6119 = vst [vmem:[#allocation44_spill] sm:$0xff] %v6118_v28  ;;  %v1600_v27 = vor.u32 %v1599_v61, %v1598_v46  ;;  %vm1602_vm7 = vcmp.lt.s32.totalorder %v4764_v41, 2  ;;  %vm1604_vm8 = vcmp.lt.s32.totalorder %v4764_v41, 4  ;;  %v1609_v11 = vsel %vm1601_vm5, %v1588_v12, %v1591_v42 }
 0x1a1   :  { %v3156_v59 = vmin.u32 %v1531_v33, %v4781_v17  ;;  %vm1603_vm10 = vcmp.lt.s32.totalorder %v4764_v41, 3  ;;  %v1606_v23 = vsel %vm1604_vm8, %v1594_v47, 2102212464  ;;  %v1610_v63 = vsel %vm1604_vm8, %v1597_v13, 920167782 }
 0x1a2   :  { %v1605_v32 = vsel %vm1601_vm5, %v1585_v15, %v1588_v12  ;;  %v1611_v1 = vsel %vm1603_vm10, %v1594_v47, %v1610_v63  ;;  %v1613_v20 = vsel %vm1601_vm5, %v1591_v42, %v1594_v47  ;;  %v1614_v54 = vsel %vm1604_vm8, %v1600_v27, 1326507024 }
 0x1a3   :  { %v1441_v39 = vand.u32 2147483647, %v1440_v10  ;;  %v1533_v21 = vclz %v3156_v59  ;;  %v1612_v49 = vsel %vm1602_vm7, %v1609_v11, %v1611_v1  ;;  %v1615_v2 = vsel %vm1603_vm10, %v1597_v13, %v1614_v54 }
 0x1a4   :  { %v1607_v46 = vsel %vm1603_vm10, %v1591_v42, %v1606_v23  ;;  %v1616_v61 = vsel %vm1602_vm7, %v1613_v20, %v1615_v2  ;;  %v4807_v33 = vmul.u32.u64.low %v4761_v4, %v1612_v49  ;;  %v4808_v58 = vmul.u32.u64.high %v4761_v4, %v1612_v49, %v4807_v33 }
 0x1a5   :  { %v3157_v60 = vadd.s32 4294967294, %v1533_v21  ;;  %v4812_v12 = vmul.u32.u64.low %v4761_v4, %v1616_v61  ;;  %v4813_v47 = vmul.u32.u64.high %v4761_v4, %v1616_v61, %v4812_v12  ;;  %v6019_v15 = vand.u32 2147483647, %v3861_v36 }
 0x1a6   :  { %3573 = vcosq.f32 %v4753_v56  ;;  %v1443_v13 = vcvt.s32.f32 %v1436_v24  ;;  %v3167_v42 = vadd.s32 4294967169, %v1781_v29  ;;  %v4822_v27 = vsel %vm4787_vm9, %v4399_v51, %v4757_v30 }
 0x1a7   :  { %vm3158_vm10 = vcmp.lt.s32.totalorder %v3157_v60, 0  ;;  %v1608_v11 = vsel %vm1602_vm7, %v1605_v32, %v1607_v46  ;;  %v6121_v59 = vand.u32 2147483647, %v4745_v45  ;;  %v1627_v20 = vadd.s32 1, %v4808_v58 }
 0x1a8   :  { %v4828_v63 = vmul.f32 %v1443_v13, %v1441_v39  ;;  %v1536_v1 = vsel %vm3158_vm10, 0, %v3157_v60  ;;  %v1787_v24 = vadd.s32 1, %v3167_v42  ;;  %v1521_v29 = vadd.s32 %v4722_v57, %v4728_v22 }
 0x1a9   :  { %v1784_v23 = vand.u32 8388607, %v6121_v59  ;;  %v1541_v54 = vsub.s32 4294967266, %v1536_v1  ;;  %v4835_v30 = vand.u32 8388607, %v6019_v15  ;;  %v4839_v41 = vshrl.u32 %v6063_v43, %v3946_v62 }
 0x1aa   :  { %v1537_v32 = vsub.s32 32, %v1536_v1  ;;  %v1624_v39 = vmul.u32 %v4761_v4, %v1608_v11  ;;  %vm1626_vm5 = vc.u32 %v4813_v47, %v4807_v33  ;;  %vm1788_vm7 = vcmp.gt.s32.totalorder %v1787_v24, 0 }
 0x1ab   :  { %v1542_v60 = vadd.s32 127, %v1541_v54  ;;  %v1628_v21 = vsel %vm1626_vm5, %v1627_v20, %v4808_v58  ;;  %v1785_v22 = vor.u32 8388608, %v1784_v23  ;;  %v1789_v57 = vsel %vm1788_vm7, %v1787_v24, 0 }
 0x1ac   :  { %v1629_v2 = vadd.s32 %v1628_v21, %v1624_v39  ;;  %v1791_v46 = vand.u32 31, %v1789_v57  ;;  %v234_v61 = vshll.u32 %v6063_v43, %v3927_v38  ;;  %v1538_v12 = vshll.u32 %v4781_v17, %v1536_v1 }
 0x1ad   :  { %v235_v4 = vshrl.u32 %v6058_v3, %v3946_v62  ;;  %v237_v13 = vshll.u32 %v6058_v3, %v3927_v38  ;;  %v238_v58 = vshrl.u32 %v6059_v40, %v3946_v62  ;;  %v1539_v42 = vshrl.u32 %v1521_v29, %v1537_v32 }
 0x1ae   :  { %v1630_v11 = vadd.s32 536870912, %v1629_v2  ;;  %v1790_v59 = vshrl.u32 %v1789_v57, 5  ;;  %v1792_v23 = vsub.s32 32, %v1791_v46  ;;  %v1543_v20 = vshll.u32 %v1542_v60, 23 }
 0x1af   :  { %v1794_v24 = vshll.u32 %v6063_v43, %v1791_v46  ;;  %v1797_v54 = vshll.u32 %v6058_v3, %v1791_v46  ;;  %v4857_v39 = vshll.u32 %v1785_v22, 8  ;;  %v1800_v29 = vshll.u32 %v6059_v40, %v1791_v46 }
 0x1b0   :  { %v4859_v17 = vpop.eup %3573  ;;  %v4861_v1 = vshrl.u32 %v1630_v11, 30  ;;  %v1795_v21 = vshrl.u32 %v6058_v3, %v1792_v23  ;;  %v1798_v10 = vshrl.u32 %v6059_v40, %v1792_v23  ;;  %v1801_v32 = vshrl.u32 %v6060_v52, %v1792_v23 }
 0x1b1   :  { %6122 = vst [vmem:[#allocation46_spill] sm:$0xff] %v4859_v17  ;;  %v1803_v60 = vshll.u32 %v6060_v52, %v1791_v46  ;;  %v1804_v57 = vshrl.u32 %v6071_v31, %v1792_v23  ;;  %v1806_v15 = vshll.u32 %v6071_v31, %v1791_v46  ;;  %v1807_v11 = vshrl.u32 %v6062_v0, %v1792_v23 }
 0x1b2   :  { %v1632_v22 = vshll.u32 %v4861_v1, 30  ;;  %v1796_v49 = vor.u32 %v1795_v21, %v1794_v24  ;;  %v1799_v17 = vor.u32 %v1798_v10, %v1797_v54  ;;  %vm6031_vm8 = vcmp.lt.s32.totalorder %v4548_v25, 0 }
 0x1b3   :  { %v1540_v5 = vor.u32 %v1539_v42, %v1538_v12  ;;  %v1544_v28 = vor.u32 4788187, %v1543_v20  ;;  %v1802_v51 = vor.u32 %v1801_v32, %v1800_v29  ;;  %v1805_v48 = vor.u32 %v1804_v57, %v1803_v60 }
 0x1b4   :  { %v4876_v6 = vsub.s32 %v1629_v2, %v1632_v22  ;;  %v1793_v31 = vshrl.u32 %v6063_v43, %v1792_v23  ;;  %v1808_v46 = vor.u32 %v1807_v11, %v1806_v15  ;;  %vm1809_vm10 = vcmp.lt.s32.totalorder %v1790_v59, 1 }
 0x1b5   :  { %vm1810_vm5 = vcmp.lt.s32.totalorder %v1790_v59, 2  ;;  %vm1811_vm7 = vcmp.lt.s32.totalorder %v1790_v59, 3  ;;  %vm1812_vm0 = vcmp.lt.s32.totalorder %v1790_v59, 4  ;;  %v1817_v0 = vsel %vm1809_vm10, %v1796_v49, %v1799_v17 }
 0x1b6   :  { %v1635_v10 = vsub.s32 0, %v4876_v6  ;;  %v1813_v24 = vsel %vm1809_vm10, %v1793_v31, %v1796_v49  ;;  %v1814_v54 = vsel %vm1812_vm0, %v1802_v51, 2102212464  ;;  %v1818_v21 = vsel %vm1812_vm0, %v1805_v48, 920167782 }
 0x1b7   :  { %v1815_v12 = vsel %vm1811_vm7, %v1799_v17, %v1814_v54  ;;  %v1819_v42 = vsel %vm1811_vm7, %v1802_v51, %v1818_v21  ;;  %v1821_v34 = vsel %vm1809_vm10, %v1799_v17, %v1802_v51  ;;  %v1822_v2 = vsel %vm1812_vm0, %v1808_v46, 1326507024 }
 0x1b8   :  { %v3160_v20 = vmin.u32 %v1635_v10, %v4876_v6  ;;  %v1820_v15 = vsel %vm1810_vm5, %v1817_v0, %v1819_v42  ;;  %v236_v23 = vor.u32 %v235_v4, %v234_v61  ;;  %v240_v29 = vshll.u32 %v6059_v40, %v3927_v38 }
 0x1b9   :  { %v1545_v32 = vand.u32 2147483647, %v1544_v28  ;;  %v1823_v60 = vsel %vm1811_vm7, %v1805_v48, %v1822_v2  ;;  %v4888_v49 = vmul.u32.u64.low %v4857_v39, %v1820_v15  ;;  %v4889_v57 = vmul.u32.u64.high %v4857_v39, %v1820_v15, %v4888_v49 }
 0x1ba   :  { %v1637_v22 = vclz %v3160_v20  ;;  %v1816_v51 = vsel %vm1810_vm5, %v1813_v24, %v1815_v12  ;;  %v1824_v17 = vsel %vm1810_vm5, %v1821_v34, %v1823_v60  ;;  %v239_v11 = vor.u32 %v238_v58, %v237_v13 }
 0x1bb   :  { %v1547_v31 = vcvt.s32.f32 %v1540_v5  ;;  %v4895_v61 = vmul.u32.u64.low %v4857_v39, %v1824_v17  ;;  %v4896_v4 = vmul.u32.u64.high %v4857_v39, %v1824_v17, %v4895_v61  ;;  %v241_v38 = vshrl.u32 %v6060_v52, %v3946_v62 }
 0x1bc   :  { %v6123_v48 = vxor.u32 2147483648, %v4828_v63  ;;  %v1625_v46 = vadd.s32 %v4807_v33, %v4813_v47  ;;  %v3161_v59 = vadd.s32 4294967294, %v1637_v22  ;;  %v225_v13 = vor.u32 8388608, %v4835_v30 }
 0x1bd   :  { %v4908_v5 = vmul.f32 %v1547_v31, %v1545_v32  ;;  %v1832_v58 = vmul.u32 %v4857_v39, %v1816_v51  ;;  %v1835_v0 = vadd.s32 1, %v4889_v57  ;;  %v242_v10 = vor.u32 %v241_v38, %v240_v29 }
 0x1be   :  { %v1446_v28 = vsel %vm6031_vm8, %v6123_v48, %v4828_v63  ;;  %vm3162_vm0 = vcmp.lt.s32.totalorder %v3161_v59, 0  ;;  %vm249_vm10 = vcmp.lt.s32.totalorder %v4019_v8, 1  ;;  %vm250_vm5 = vcmp.lt.s32.totalorder %v4019_v8, 2 }
 0x1bf   :  { %vm251_vm7 = vcmp.lt.s32.totalorder %v4019_v8, 3  ;;  %v1640_v62 = vsel %vm3162_vm0, 0, %v3161_v59  ;;  %vm1834_vm8 = vc.u32 %v4896_v4, %v4888_v49  ;;  %v254_v33 = vsel %vm252_vm6, %v242_v10, 2102212464 }
 0x1c0   :  { %v257_v47 = vsel %vm249_vm10, %v236_v23, %v239_v11  ;;  %v1641_v63 = vsub.s32 32, %v1640_v62  ;;  %v1645_v30 = vsub.s32 4294967266, %v1640_v62  ;;  %v1836_v39 = vsel %vm1834_vm8, %v1835_v0, %v4889_v57 }
 0x1c1   :  { %v263_v24 = vsel %vm251_vm7, %v4022_v7, %v4106_v9  ;;  %v1837_v54 = vadd.s32 %v1836_v39, %v1832_v58  ;;  %v259_v21 = vsel %vm251_vm7, %v242_v10, %v4095_v26  ;;  %v261_v12 = vsel %vm249_vm10, %v239_v11, %v242_v10  ;;  %v6127_v58 = vld [vmem:[#allocation11_spill] sm:$0xff] }
 0x1c2   :  { %v265_v42 = vshll.u32 %v225_v13, 8  ;;  %v1646_v34 = vadd.s32 127, %v1645_v30  ;;  %v253_v2 = vsel %vm249_vm10, %v4839_v41, %v236_v23  ;;  %v255_v20 = vsel %vm251_vm7, %v239_v11, %v254_v33 }
 0x1c3   :  { %v260_v15 = vsel %vm250_vm5, %v257_v47, %v259_v21  ;;  %v1838_v29 = vadd.s32 536870912, %v1837_v54  ;;  %v264_v7 = vsel %vm250_vm5, %v261_v12, %v263_v24  ;;  %v1643_v26 = vshrl.u32 %v1625_v46, %v1641_v63 }
 0x1c4   :  { %v4934_v9 = vmul.u32.u64.low %v265_v42, %v260_v15  ;;  %v4935_v32 = vmul.u32.u64.high %v265_v42, %v260_v15, %v4934_v9  ;;  %v1647_v60 = vshll.u32 %v1646_v34, 23  ;;  %3575 = vsinq.f32 %v4753_v56 }
 0x1c5   :  { %v4938_v57 = vmul.u32.u64.low %v265_v42, %v264_v7  ;;  %v4939_v22 = vmul.u32.u64.high %v265_v42, %v264_v7, %v4938_v57  ;;  %v4942_v41 = vshrl.u32 %v1838_v29, 30  ;;  %v256_v23 = vsel %vm250_vm5, %v253_v2, %v255_v20 }
 0x1c6   :  { %v321_v51 = vand.u32 2147483647, %v3870_v50  ;;  %3577 = vcosq.f32 %v4822_v27  ;;  %v6124_v17 = vand.u32 2147483647, %v4548_v25  ;;  %v1642_v31 = vshll.u32 %v4876_v6, %v1640_v62  ;;  %v6128_v62 = vld [vmem:[#allocation9_spill] sm:$0xff] }
 0x1c7   :  { %v1648_v61 = vor.u32 4788187, %v1647_v60  ;;  %3579 = vsinq.f32 %v4822_v27  ;;  %v1840_v56 = vshll.u32 %v4942_v41, 30  ;;  %v275_v38 = vadd.s32 1, %v4935_v32 }
 0x1c8   :  { %vm4950_vm6 = vcmp.le.f32.partialorder %v6124_v17, 0.7853982  ;;  %v1549_v48 = vxor.u32 2147483648, %v4908_v5  ;;  %v1644_v46 = vor.u32 %v1643_v26, %v1642_v31  ;;  %v272_v59 = vmul.u32 %v265_v42, %v256_v23  ;;  %v6132_v23 = vld [vmem:[#allocation14_spill] sm:$0xff] }
 0x1c9   :  { %v1449_v8 = vsel %vm4950_vm6, %v4548_v25, %v1446_v28  ;;  %vm274_vm8 = vc.u32 %v4939_v22, %v4934_v9  ;;  %v4964_v13 = vsub.s32 %v1837_v54, %v1840_v56  ;;  %v328_v27 = vand.u32 8388607, %v321_v51 }
 0x1ca   :  { %v276_v6 = vsel %vm274_vm8, %v275_v38, %v4935_v32  ;;  %v339_v28 = vshrl.u32 %v6058_v3, %v6127_v58  ;;  %v1649_v0 = vand.u32 2147483647, %v1648_v61  ;;  %v338_v33 = vshll.u32 %v6063_v43, %v6128_v62  ;;  %v6133_v61 = vld [vmem:[#allocation16_spill] sm:$0xff] }
 0x1cb   :  { %v277_v10 = vadd.s32 %v276_v6, %v272_v59  ;;  %v342_v47 = vshrl.u32 %v6059_v40, %v6127_v58  ;;  %v1843_v63 = vsub.s32 0, %v4964_v13  ;;  %v341_v30 = vshll.u32 %v6058_v3, %v6128_v62 }
 0x1cc   :  { %v344_v39 = vshll.u32 %v6059_v40, %v6128_v62  ;;  %v345_v24 = vshrl.u32 %v6060_v52, %v6127_v58  ;;  %3581 = vcosq.f32 %v1449_v8  ;;  %vm6032_vm0 = vcmp.lt.s32.totalorder %v4574_v37, 0 }
 0x1cd   :  { %v1651_v54 = vcvt.s32.f32 %v1644_v46  ;;  %v278_v21 = vadd.s32 536870912, %v277_v10  ;;  %v3168_v12 = vmin.u32 %v1843_v63, %v4964_v13  ;;  %v340_v42 = vor.u32 %v339_v28, %v338_v33  ;;  %v6134_v33 = vld [vmem:[#allocation12_spill] sm:$0xff] }
 0x1ce   :  { %v343_v34 = vor.u32 %v342_v47, %v341_v30  ;;  %v346_v2 = vor.u32 %v345_v24, %v344_v39  ;;  %3583 = vsinq.f32 %v1449_v8  ;;  %v1550_v3 = vsel %vm6032_vm0, %v1549_v48, %v4908_v5  ;;  %v4987_v15 = vpop.eup %3575 }
 0x1cf   :  { %v1652_v20 = vmul.f32 %v1651_v54, %v1649_v0  ;;  %v279_v40 = vshrl.u32 %v278_v21, 30  ;;  %v6129_v52 = vand.u32 2147483647, %v4574_v37  ;;  %v1833_v7 = vadd.s32 %v4888_v49, %v4896_v4 }
 0x1d0   :  { %v1845_v32 = vclz %v3168_v12  ;;  %v329_v26 = vor.u32 8388608, %v328_v27  ;;  %vm355_vm5 = vcmp.lt.s32.totalorder %v4043_v19, 3  ;;  %v4998_v60 = vpop.eup %3577  ;;  %v337_v57 = vshrl.u32 %v6063_v43, %v6127_v58 }
 0x1d1   :  { %vm4991_vm10 = vcmp.le.f32.partialorder %v6129_v52, 0.7853982  ;;  %v280_v5 = vshll.u32 %v279_v40, 30  ;;  %vm353_vm7 = vcmp.lt.s32.totalorder %v4043_v19, 1  ;;  %v367_v17 = vsel %vm355_vm5, %v6132_v23, %v4185_v53  ;;  %v5007_v31 = vpop.eup %3579 }
 0x1d2   :  { %vm6035_vm8 = vcmp.lt.s32.totalorder %v4619_v35, 0  ;;  %v3169_v49 = vadd.s32 4294967294, %v1845_v32  ;;  %vm354_vm0 = vcmp.lt.s32.totalorder %v4043_v19, 2  ;;  %v361_v4 = vsel %vm353_vm7, %v340_v42, %v343_v34  ;;  %v6142_v19 = vld [vmem:[#allocation19_spill] sm:$0xff] }
 0x1d3   :  { %v363_v8 = vsel %vm355_vm5, %v346_v2, %v6133_v61  ;;  %v1653_v43 = vxor.u32 2147483648, %v1652_v20  ;;  %vm6039_vm1 = vcmp.lt.s32.totalorder %v3861_v36, 0  ;;  %v5015_v56 = vsub.s32 %v277_v10, %v280_v5 }
 0x1d4   :  { %v358_v53 = vsel %vm356_vm12, %v346_v2, 2102212464  ;;  %v365_v38 = vsel %vm353_vm7, %v343_v34, %v346_v2  ;;  %vm3170_vm13 = vcmp.lt.s32.totalorder %v3169_v49, 0  ;;  %v357_v48 = vsel %vm353_vm7, %v337_v57, %v340_v42 }
 0x1d5   :  { %v368_v46 = vsel %vm354_vm0, %v365_v38, %v367_v17  ;;  %v369_v59 = vshll.u32 %v329_v26, 8  ;;  %v1848_v6 = vsel %vm3170_vm13, 0, %v3169_v49  ;;  %v283_v27 = vsub.s32 0, %v5015_v56  ;;  %v6135_v26 = vld [vmem:[#allocation6_spill] sm:$0xff]  ;;  %v6140_v49 = vld [vmem:[#allocation27_spill] sm:$0xff] }
 0x1d6   :  { %v303_v58 = vsub.s32 4, %v279_v40  ;;  %v364_v28 = vsel %vm354_vm0, %v361_v4, %v363_v8  ;;  %v1849_v0 = vsub.s32 32, %v1848_v6  ;;  %v1853_v10 = vsub.s32 4294967266, %v1848_v6  ;;  %v5027_v63 = vpop.eup %3581  ;;  %v6141_v4 = vld [vmem:[#allocation13_spill] sm:$0xff] }
 0x1d7   :  { %v359_v62 = vsel %vm355_vm5, %v343_v34, %v358_v53  ;;  %v511_v47 = vsub.s32 4, %v6134_v33  ;;  %v1850_v30 = vshll.u32 %v4964_v13, %v1848_v6  ;;  %v3108_v39 = vmin.u32 %v283_v27, %v5015_v56 }
 0x1d8   :  { %v5031_v24 = vmul.u32.u64.low %v369_v59, %v368_v46  ;;  %v5032_v54 = vmul.u32.u64.high %v369_v59, %v368_v46, %v5031_v24  ;;  %v1851_v21 = vshrl.u32 %v1833_v7, %v1849_v0  ;;  %v1854_v12 = vadd.s32 127, %v1853_v10  ;;  %v5038_v52 = vpop.eup %3583 }
 0x1d9   :  { %v5034_v42 = vmul.u32.u64.low %v369_v59, %v364_v28  ;;  %v5035_v2 = vmul.u32.u64.high %v369_v59, %v364_v28, %v5034_v42  ;;  %v1553_v34 = vsel %vm4991_vm10, %v4574_v37, %v1550_v3  ;;  %v285_v32 = vclz %v3108_v39 }
 0x1da   :  { %v360_v13 = vsel %vm354_vm0, %v357_v48, %v359_v62  ;;  %v6136_v5 = vand.u32 2147483647, %v6135_v26  ;;  %v1852_v7 = vor.u32 %v1851_v21, %v1850_v30  ;;  %v1855_v23 = vshll.u32 %v1854_v12, 23  ;;  %v6143_v62 = vld [vmem:[#allocation8_spill] sm:$0xff] }
 0x1db   :  { %vm6139_vm13 = vcmp.lt.s32.totalorder %v6135_v26, 0  ;;  %vm6038_vm5 = vcmp.lt.s32.totalorder %v6141_v4, 0  ;;  %vm6037_vm0 = vcmp.lt.s32.totalorder %v6142_v19, 0  ;;  %v1654_v61 = vsel %vm6035_vm8, %v1653_v43, %v1652_v20 }
 0x1dc   :  { %vm5047_vm12 = vcmp.le.f32.partialorder %v6136_v5, 0.7853982  ;;  %v512_v17 = vsel %vm6139_vm13, %v511_v47, %v6134_v33  ;;  %v273_v8 = vadd.s32 %v4934_v9, %v4939_v22  ;;  %v3109_v53 = vadd.s32 4294967294, %v285_v32 }
 0x1dd   :  { %v513_v3 = vsel %vm5047_vm12, %v6135_v26, %v6140_v49  ;;  %vm378_vm7 = vc.u32 %v5032_v54, %v5034_v42  ;;  %v1856_v38 = vor.u32 4788187, %v1855_v23  ;;  %v304_v48 = vsel %vm6039_vm1, %v303_v58, %v279_v40 }
 0x1de   :  { %v376_v46 = vmul.u32 %v369_v59, %v360_v13  ;;  %v379_v6 = vadd.s32 1, %v5035_v2  ;;  %v1859_v27 = vcvt.s32.f32 %v1852_v7  ;;  %vm3110_vm13 = vcmp.lt.s32.totalorder %v3109_v53, 0 }
 0x1df   :  { %v514_v28 = vsel %vm5047_vm12, 0, %v512_v17  ;;  %3585 = vcosq.f32 %v513_v3  ;;  %v1857_v20 = vand.u32 2147483647, %v1856_v38  ;;  %v288_v43 = vsel %vm3110_vm13, 0, %v3109_v53  ;;  %v6150_v17 = vld [vmem:[#allocation5_spill] sm:$0xff] }
 0x1e0   :  { %v380_v9 = vsel %vm378_vm7, %v379_v6, %v5035_v2  ;;  %3587 = vsinq.f32 %v513_v3  ;;  %v289_v22 = vsub.s32 32, %v288_v43  ;;  %v293_v0 = vsub.s32 4294967266, %v288_v43 }
 0x1e1   :  { %v381_v10 = vadd.s32 %v380_v9, %v376_v46  ;;  %v615_v33 = vsub.s32 4, %v6143_v62  ;;  %3589 = vcosq.f32 %v1553_v34  ;;  %v6144_v40 = vand.u32 2147483647, %v4619_v35 }
 0x1e2   :  { %v1860_v58 = vmul.f32 %v1859_v27, %v1857_v20  ;;  %v6147_v47 = vand.u32 2147483647, %v3861_v36  ;;  %v290_v39 = vshll.u32 %v5015_v56, %v288_v43  ;;  %v291_v24 = vshrl.u32 %v273_v8, %v289_v22 }
 0x1e3   :  { %vm5075_vm8 = vcmp.le.f32.partialorder %v6144_v40, 0.7853982  ;;  %v294_v21 = vadd.s32 127, %v293_v0  ;;  %v382_v12 = vadd.s32 536870912, %v381_v10  ;;  %v518_v5 = vadd.s32 3, %v514_v28  ;;  %v6155_v28 = vld [vmem:[#allocation15_spill] sm:$0xff] }
 0x1e4   :  { %vm5081_vm12 = vcmp.le.f32.partialorder %v6147_v47, 0.7853982  ;;  %v1657_v2 = vsel %vm5075_vm8, %v4619_v35, %v1654_v61  ;;  %v1861_v32 = vxor.u32 2147483648, %v1860_v58  ;;  %v292_v57 = vor.u32 %v291_v24, %v290_v39 }
 0x1e5   :  { %v306_v13 = vsel %vm5081_vm12, 0, %v304_v48  ;;  %v295_v7 = vshll.u32 %v294_v21, 23  ;;  %v383_v23 = vshrl.u32 %v382_v12, 30  ;;  %vm6151_vm7 = vcmp.lt.s32.totalorder %v6150_v17, 0  ;;  %v6161_v12 = vld [vmem:[#allocation7_spill] sm:$0xff] }
 0x1e6   :  { %v616_v49 = vsel %vm6151_vm7, %v615_v33, %v6143_v62  ;;  %v6152_v56 = vxor.u32 2147483648, %v4590_v55  ;;  %v6153_v61 = vxor.u32 2147483648, %v4747_v14  ;;  %3591 = vsinq.f32 %v1553_v34 }
 0x1e7   :  { %vm6036_vm13 = vcmp.lt.s32.totalorder %v4745_v45, 0  ;;  %3593 = vcosq.f32 %v1657_v2  ;;  %v296_v53 = vor.u32 4788187, %v295_v7  ;;  %v310_v38 = vadd.s32 3, %v306_v13 }
 0x1e8   :  { %v5099_v3 = vsel %vm6038_vm5, %v6152_v56, %v4590_v55  ;;  %v5106_v8 = vsel %vm6037_vm0, %v6153_v61, %v4747_v14  ;;  %v384_v48 = vshll.u32 %v383_v23, 30  ;;  %v1862_v46 = vsel %vm6036_vm13, %v1861_v32, %v1860_v58 }
 0x1e9   :  { %v519_v6 = vand.u32 3, %v518_v5  ;;  %v618_v27 = vsel %vm4157_vm4, 0, %v616_v49  ;;  %v719_v20 = vsub.s32 4, %v6155_v28  ;;  %v3586_v43 = vpop.eup %3585  ;;  %v297_v9 = vand.u32 2147483647, %v296_v53 }
 0x1ea   :  { %v299_v14 = vcvt.s32.f32 %v292_v57  ;;  %v5114_v22 = vsub.s32 %v381_v10, %v384_v48  ;;  %v407_v34 = vsub.s32 4, %v383_v23  ;;  %v3588_v0 = vpop.eup %3587  ;;  %3595 = vsinq.f32 %v1657_v2  ;;  %v6165_v48 = vld [vmem:[#allocation29_spill] sm:$0xff] }
 0x1eb   :  { %v6156_v62 = vand.u32 2147483647, %v4745_v45  ;;  %v6157_v33 = vmov 0  ;;  %vm5124_vm13 = vcmp.le.f32.partialorder %v321_v51, 0.7853982  ;;  %vm6042_vm4 = vcmp.lt.s32.totalorder %v3870_v50, 0  ;;  %v5133_v24 = vpop.eup %3589 }
 0x1ec   :  { %v300_v58 = vmul.f32 %v299_v14, %v297_v9  ;;  %v387_v47 = vsub.s32 0, %v5114_v22  ;;  %v622_v39 = vadd.s32 3, %v618_v27  ;;  %v5135_v21 = vand.u32 3, %v310_v38 }
 0x1ed   :  { %vm5118_vm7 = vcmp.le.f32.partialorder %v6156_v62, 0.7853982  ;;  %v377_v51 = vadd.s32 %v5034_v42, %v5032_v54  ;;  %vm520_vm0 = vcmp.lt.s32.totalorder %v519_v6, 2  ;;  %vm6162_vm5 = vcmp.lt.s32.totalorder %v6161_v12, 0  ;;  %v6167_v62 = vld [vmem:[#allocation17_spill] sm:$0xff] }
 0x1ee   :  { %v6158_v33 = vsel %vm5118_vm7, 4294967295, %v6157_v33  ;;  %v1865_v10 = vsel %vm5118_vm7, %v4745_v45, %v1862_v46  ;;  %v720_v2 = vsel %vm6162_vm5, %v719_v20, %v6155_v28  ;;  %v301_v32 = vxor.u32 2147483648, %v300_v58  ;;  %v6166_v20 = vld [vmem:[#allocation21_spill] sm:$0xff] }
 0x1ef   :  { %v3112_v13 = vmin.u32 %v387_v47, %v5114_v22  ;;  %v408_v5 = vsel %vm6042_vm4, %v407_v34, %v383_v23  ;;  %v525_v57 = vxor.u32 2147483648, %v3586_v43  ;;  %3597 = vcosq.f32 %v1865_v10 }
 0x1f0   :  { %vm521_vm1 = vcmp.eq.s32.totalorder %v519_v6, 0  ;;  %v522_v7 = vxor.u32 2147483648, %v3588_v0  ;;  %vm524_vm7 = vcmp.eq.s32.totalorder %v519_v6, 2  ;;  %vm6163_vm11 = vcmp.lt.s32.totalorder %v3861_v36, 0  ;;  %v5151_v53 = vpop.eup %3591 }
 0x1f1   :  { %v302_v49 = vsel %vm6163_vm11, %v301_v32, %v300_v58  ;;  %v389_v54 = vclz %v3112_v13  ;;  %v5147_v42 = vand.u32 3, %v622_v39  ;;  %v722_v61 = vsel %vm4307_vm3, 0, %v720_v2  ;;  %v5159_v55 = vpop.eup %3593 }
 0x1f2   :  { %3599 = vsinq.f32 %v1865_v10  ;;  %v305_v23 = vsel %vm5081_vm12, %v3861_v36, %v302_v49  ;;  %v410_v38 = vsel %vm5124_vm13, 0, %v408_v5  ;;  %v626_v46 = vxor.u32 2147483648, %v6165_v48 }
 0x1f3   :  { %3601 = vcosq.f32 %v305_v23  ;;  %v3113_v27 = vadd.s32 4294967294, %v389_v54  ;;  %v526_v28 = vsel %vm524_vm7, %v525_v57, %v3588_v0  ;;  %v629_v9 = vxor.u32 2147483648, %v6166_v20 }
 0x1f4   :  { %3603 = vsinq.f32 %v305_v23  ;;  %v523_v14 = vsel %vm521_vm1, %v3586_v43, %v522_v7  ;;  %v726_v34 = vadd.s32 3, %v722_v61  ;;  %v823_v10 = vsub.s32 4, %v6167_v62  ;;  %v5167_v58 = vpop.eup %3595  ;;  %v6168_v43 = vld [vmem:[#allocation10_spill] sm:$0xff]  ;;  %v6170_v7 = vld [vmem:[#allocation32_spill] sm:$0xff] }
 0x1f5   :  { %vm3114_vm3 = vcmp.lt.s32.totalorder %v3113_v27, 0  ;;  %v414_v30 = vadd.s32 3, %v410_v38  ;;  %vm517_vm11 = vweird.f32 %v6135_v26  ;;  %vm624_vm5 = vcmp.lt.s32.totalorder %v5147_v42, 2  ;;  %v6172_v61 = vld [vmem:[#allocation20_spill] sm:$0xff] }
 0x1f6   :  { %vm625_vm12 = vcmp.eq.s32.totalorder %v5147_v42, 0  ;;  %v392_v47 = vsel %vm3114_vm3, 0, %v3113_v27  ;;  %vm628_vm7 = vcmp.eq.s32.totalorder %v5147_v42, 2  ;;  %vm6169_vm1 = vcmp.lt.s32.totalorder %v6168_v43, 0 }
 0x1f7   :  { %v627_v0 = vsel %vm625_vm12, %v6166_v20, %v626_v46  ;;  %v824_v39 = vsel %vm6169_vm1, %v823_v10, %v6167_v62  ;;  %v393_v2 = vsub.s32 32, %v392_v47  ;;  %v397_v32 = vsub.s32 4294967266, %v392_v47  ;;  %v6179_v10 = vld [vmem:[#allocation34_spill] sm:$0xff] }
 0x1f8   :  { %v527_v13 = vsel %vm520_vm0, %v523_v14, %v526_v28  ;;  %v630_v5 = vsel %vm628_vm7, %v629_v9, %v6165_v48  ;;  %v727_v57 = vand.u32 3, %v726_v34  ;;  %v730_v49 = vxor.u32 2147483648, %v6170_v7  ;;  %v6177_v28 = vld [vmem:[#allocation31_spill] sm:$0xff] }
 0x1f9   :  { %v826_v56 = vsel %vm4365_vm15, 0, %v824_v39  ;;  %v927_v23 = vsub.s32 4, %v6172_v61  ;;  %v394_v38 = vshll.u32 %v5114_v22, %v392_v47  ;;  %v395_v46 = vshrl.u32 %v377_v51, %v393_v2  ;;  %v5188_v48 = vpop.eup %3597  ;;  %v6180_v39 = vld [vmem:[#allocation33_spill] sm:$0xff] }
 0x1fa   :  { %v398_v27 = vadd.s32 127, %v397_v32  ;;  %vm621_vm3 = vweird.f32 %v6150_v17  ;;  %v6173_v20 = vand.u32 2147483647, %v6141_v4  ;;  %6176 = vst [vmem:[#allocation11_spill] sm:$0xff] %v5188_v48  ;;  %v733_v9 = vxor.u32 2147483648, %v6177_v28 }
 0x1fb   :  { %v830_v14 = vadd.s32 3, %v826_v56  ;;  %vm6178_vm15 = vcmp.lt.s32.totalorder %v6141_v4, 0  ;;  %v396_v51 = vor.u32 %v395_v46, %v394_v38  ;;  %v834_v47 = vxor.u32 2147483648, %v6179_v10 }
 0x1fc   :  { %vm5184_vm12 = vcmp.le.f32.partialorder %v6173_v20, 0.7853982  ;;  %v928_v34 = vsel %vm6178_vm15, %v927_v23, %v6172_v61  ;;  %v399_v62 = vshll.u32 %v398_v27, 23  ;;  %v837_v2 = vxor.u32 2147483648, %v6180_v39  ;;  %v5200_v32 = vpop.eup %3599  ;;  %v6182_v23 = vld [vmem:[#allocation28_spill] sm:$0xff] }
 0x1fd   :  { %v929_v22 = vsel %vm5184_vm12, %v6141_v4, %v5099_v3  ;;  %6181 = vst [vmem:[#allocation9_spill] sm:$0xff] %v5200_v32  ;;  %vm313_vm0 = vcmp.eq.s32.totalorder %v5135_v21, 0  ;;  %vm729_vm1 = vcmp.eq.s32.totalorder %v727_v57, 0  ;;  %vm732_vm4 = vcmp.eq.s32.totalorder %v727_v57, 2  ;;  %v3602_v56 = vpop.eup %3601 }
 0x1fe   :  { %v831_v54 = vand.u32 3, %v830_v14  ;;  %3605 = vcosq.f32 %v929_v22  ;;  %v400_v61 = vor.u32 4788187, %v399_v62  ;;  %v930_v3 = vsel %vm5184_vm12, 0, %v928_v34  ;;  %v3604_v46 = vpop.eup %3603 }
 0x1ff   :  { %3607 = vsinq.f32 %v929_v22  ;;  %v1031_v38 = vsub.s32 4, %v6182_v23  ;;  %v528_v27 = vsel %vm517_vm11, nan, %v527_v13  ;;  %v631_v20 = vsel %vm624_vm5, %v627_v0, %v630_v5 }
 0x200   :  { %v731_v48 = vsel %vm729_vm1, %v6177_v28, %v730_v49  ;;  %v734_v14 = vsel %vm732_vm4, %v733_v9, %v6170_v7  ;;  %vm312_vm15 = vcmp.lt.s32.totalorder %v5135_v21, 2  ;;  %v401_v62 = vand.u32 2147483647, %v400_v61  ;;  %v6188_v61 = vld [vmem:[#allocation36_spill] sm:$0xff] }
 0x201   :  { %v403_v32 = vcvt.s32.f32 %v396_v51  ;;  %vm833_vm7 = vcmp.eq.s32.totalorder %v831_v54, 0  ;;  %vm836_vm12 = vcmp.eq.s32.totalorder %v831_v54, 2  ;;  %v934_v22 = vadd.s32 3, %v930_v3 }
 0x202   :  { %v835_v6 = vsel %vm833_vm7, %v6180_v39, %v834_v47  ;;  %v838_v34 = vsel %vm836_vm12, %v837_v2, %v6179_v10  ;;  %vm6183_vm11 = vcmp.lt.s32.totalorder %v4178_v16, 0  ;;  %v314_v42 = vxor.u32 2147483648, %v3604_v46 }
 0x203   :  { %v1032_v26 = vsel %vm6183_vm11, %v1031_v38, %v6182_v23  ;;  %v317_v0 = vxor.u32 2147483648, %v3602_v56  ;;  %v404_v13 = vmul.f32 %v403_v32, %v401_v62  ;;  %vm309_vm4 = vweird.f32 %v3861_v36 }
 0x204   :  { %v1034_v5 = vsel %vm4567_vm2, 0, %v1032_v26  ;;  %v5222_v7 = vand.u32 3, %v414_v30  ;;  %v632_v49 = vsel %vm621_vm3, nan, %v631_v20  ;;  %vm725_vm5 = vweird.f32 %v6161_v12 }
 0x205   :  { %vm832_vm7 = vcmp.lt.s32.totalorder %v831_v54, 2  ;;  %v405_v28 = vxor.u32 2147483648, %v404_v13  ;;  %v5227_v9 = vpack.c.bf16 %v632_v49, %v528_v27  ;;  %vm728_vm1 = vcmp.lt.s32.totalorder %v727_v57, 2 }
 0x206   :  { %v839_v51 = vsel %vm832_vm7, %v835_v6, %v838_v34  ;;  %v735_v10 = vsel %vm728_vm1, %v731_v48, %v734_v14  ;;  %vm829_vm12 = vweird.f32 %v6168_v43  ;;  %v1038_v44 = vadd.s32 3, %v1034_v5  ;;  %v6186_v43 = vld [vmem:[#allocation22_spill] sm:$0xff]  ;;  %v6191_v34 = vld [vmem:[#allocation37_spill] sm:$0xff] }
 0x207   :  { %v1135_v47 = vsub.s32 4, %v4478_v18  ;;  %v315_v30 = vsel %vm313_vm0, %v3602_v56, %v314_v42  ;;  %vm6184_vm2 = vcmp.eq.s32.totalorder %v5135_v21, 2  ;;  %vm6185_vm3 = vcmp.lt.s32.totalorder %v3870_v50, 0  ;;  %v6192_v42 = vld [vmem:[#allocation30_spill] sm:$0xff] }
 0x208   :  { %v318_v17 = vsel %vm6184_vm2, %v317_v0, %v3604_v46  ;;  %v406_v39 = vsel %vm6185_vm3, %v405_v28, %v404_v13  ;;  %v935_v2 = vand.u32 3, %v934_v22  ;;  %v3606_v32 = vpop.eup %3605  ;;  %v840_v48 = vsel %vm829_vm12, nan, %v839_v51 }
 0x209   :  { %v409_v57 = vsel %vm5124_vm13, %v3870_v50, %v406_v39  ;;  %vm6187_vm11 = vcmp.lt.s32.totalorder %v6186_v43, 0  ;;  %v1239_v3 = vsub.s32 4, %v6188_v61  ;;  %v3608_v56 = vpop.eup %3607  ;;  %v941_v23 = vxor.u32 2147483648, %v3606_v32  ;;  %v6196_v39 = vld [vmem:[#allocation43_spill] sm:$0xff] }
 0x20a   :  { %v1136_v54 = vsel %vm6187_vm11, %v1135_v47, %v4478_v18  ;;  %3609 = vcosq.f32 %v409_v57  ;;  %v1039_v38 = vand.u32 3, %v1038_v44  ;;  %v319_v20 = vsel %vm312_vm15, %v315_v30, %v318_v17  ;;  %v6190_v18 = vld [vmem:[#allocation42_spill] sm:$0xff]  ;;  %v6195_v30 = vld [vmem:[#allocation45_spill] sm:$0xff] }
 0x20b   :  { %v1138_v27 = vsel %vm4693_vm14, 0, %v1136_v54  ;;  %3611 = vsinq.f32 %v409_v57  ;;  %v736_v40 = vsel %vm725_vm5, nan, %v735_v10  ;;  %v938_v14 = vxor.u32 2147483648, %v3608_v56 }
 0x20c   :  { %v5250_v62 = vpack.c.bf16 %v840_v48, %v736_v40  ;;  %v1042_v6 = vxor.u32 2147483648, %v6190_v18  ;;  %v1045_v22 = vxor.u32 2147483648, %v6191_v34  ;;  %v1142_v26 = vadd.s32 3, %v1138_v27 }
 0x20d   :  { %vm936_vm13 = vcmp.lt.s32.totalorder %v935_v2, 2  ;;  %vm937_vm0 = vcmp.eq.s32.totalorder %v935_v2, 0  ;;  %vm940_vm7 = vcmp.eq.s32.totalorder %v935_v2, 2  ;;  %vm6193_vm14 = vcmp.lt.s32.totalorder %v6192_v42, 0 }
 0x20e   :  { %v1240_v21 = vsel %vm6193_vm14, %v1239_v3, %v6188_v61  ;;  %v320_v0 = vsel %vm309_vm4, nan, %v319_v20  ;;  %vm420_vm15 = vcmp.eq.s32.totalorder %v5222_v7, 2  ;;  %v942_v12 = vsel %vm940_vm7, %v941_v23, %v3608_v56  ;;  %v6200_v3 = vld [vmem:[#allocation24_spill] sm:$0xff] }
 0x20f   :  { %vm1041_vm5 = vcmp.eq.s32.totalorder %v1039_v38, 0  ;;  %v1242_v5 = vsel %vm4787_vm9, 0, %v1240_v21  ;;  %vm417_vm1 = vcmp.eq.s32.totalorder %v5222_v7, 0  ;;  %vm933_vm12 = vweird.f32 %v6141_v4 }
 0x210   :  { %v939_v49 = vsel %vm937_vm0, %v3606_v32, %v938_v14  ;;  %vm1044_vm2 = vcmp.eq.s32.totalorder %v1039_v38, 2  ;;  %v1143_v28 = vand.u32 3, %v1142_v26  ;;  %v1246_v51 = vadd.s32 3, %v1242_v5 }
 0x211   :  { %vm416_vm3 = vcmp.lt.s32.totalorder %v5222_v7, 2  ;;  %v1043_v36 = vsel %vm1041_vm5, %v6191_v34, %v1042_v6  ;;  %v1046_v10 = vsel %vm1044_vm2, %v1045_v22, %v6190_v18  ;;  %v1250_v44 = vxor.u32 2147483648, %v5007_v31  ;;  %v6202_v34 = vld [vmem:[#allocation39_spill] sm:$0xff] }
 0x212   :  { %v1253_v47 = vxor.u32 2147483648, %v4998_v60  ;;  %vm413_vm9 = vweird.f32 %v3870_v50  ;;  %v1146_v17 = vxor.u32 2147483648, %v6195_v30  ;;  %v1149_v32 = vxor.u32 2147483648, %v6196_v39 }
 0x213   :  { %v1247_v57 = vand.u32 3, %v1246_v51  ;;  %v6197_v48 = vand.u32 2147483647, %v6142_v19  ;;  %v943_v61 = vsel %vm936_vm13, %v939_v49, %v942_v12  ;;  %vm1040_vm0 = vcmp.lt.s32.totalorder %v1039_v38, 2 }
 0x214   :  { %v1343_v56 = vsub.s32 4, %v6200_v3  ;;  %v1047_v46 = vsel %vm1040_vm0, %v1043_v36, %v1046_v10  ;;  %vm1145_vm7 = vcmp.eq.s32.totalorder %v1143_v28, 0  ;;  %v3610_v27 = vpop.eup %3609  ;;  %vm1141_vm2 = vweird.f32 %v6186_v43  ;;  %v6204_v36 = vld [vmem:[#allocation41_spill] sm:$0xff] }
 0x215   :  { %vm5275_vm11 = vcmp.le.f32.partialorder %v6197_v48, 0.7853982  ;;  %vm1249_vm14 = vcmp.eq.s32.totalorder %v1247_v57, 0  ;;  %vm1252_vm5 = vcmp.eq.s32.totalorder %v1247_v57, 2  ;;  %vm6201_vm13 = vcmp.lt.s32.totalorder %v6142_v19, 0  ;;  %v3612_v40 = vpop.eup %3611 }
 0x216   :  { %v1345_v23 = vsel %vm5275_vm11, %v6142_v19, %v5106_v8  ;;  %v1251_v20 = vsel %vm1249_vm14, %v4998_v60, %v1250_v44  ;;  %v1254_v2 = vsel %vm1252_vm5, %v1253_v47, %v5007_v31  ;;  %v1344_v38 = vsel %vm6201_vm13, %v1343_v56, %v6200_v3  ;;  %v6208_v3 = vld [vmem:[#allocation35_spill] sm:$0xff] }
 0x217   :  { %3613 = vcosq.f32 %v1345_v23  ;;  %v421_v14 = vxor.u32 2147483648, %v3610_v27  ;;  %vm1148_vm4 = vcmp.eq.s32.totalorder %v1143_v28, 2  ;;  %v1346_v8 = vsel %vm5275_vm11, 0, %v1344_v38 }
 0x218   :  { %3615 = vsinq.f32 %v1345_v23  ;;  %v418_v18 = vxor.u32 2147483648, %v3612_v40  ;;  %v1147_v6 = vsel %vm1145_vm7, %v6196_v39, %v1146_v17  ;;  %vm1248_vm0 = vcmp.lt.s32.totalorder %v1247_v57, 2 }
 0x219   :  { %v1447_v60 = vsub.s32 4, %v6202_v34  ;;  %v422_v31 = vsel %vm420_vm15, %v421_v14, %v3612_v40  ;;  %v1150_v22 = vsel %vm1148_vm4, %v1149_v32, %v6195_v30  ;;  %v1255_v26 = vsel %vm1248_vm0, %v1251_v20, %v1254_v2  ;;  %v6209_v40 = vld [vmem:[#allocation25_spill] sm:$0xff] }
 0x21a   :  { %v1350_v21 = vadd.s32 3, %v1346_v8  ;;  %v419_v12 = vsel %vm417_vm1, %v3610_v27, %v418_v18  ;;  %v944_v13 = vsel %vm933_vm12, nan, %v943_v61  ;;  %vm1245_vm11 = vweird.f32 %v6192_v42 }
 0x21b   :  { %vm6203_vm7 = vcmp.lt.s32.totalorder %v4548_v25, 0  ;;  %v423_v49 = vsel %vm416_vm3, %v419_v12, %v422_v31  ;;  %vm1144_vm15 = vcmp.lt.s32.totalorder %v1143_v28, 2  ;;  %v1551_v10 = vsub.s32 4, %v6204_v36  ;;  %v6211_v31 = vld [vmem:[#allocation40_spill] sm:$0xff] }
 0x21c   :  { %v1448_v5 = vsel %vm6203_vm7, %v1447_v60, %v6202_v34  ;;  %v424_v44 = vsel %vm413_vm9, nan, %v423_v49  ;;  %vm6205_vm1 = vweird.f32 %v4178_v16  ;;  %v1151_v42 = vsel %vm1144_vm15, %v1147_v6, %v1150_v22 }
 0x21d   :  { %v1450_v51 = vsel %vm4950_vm6, 0, %v1448_v5  ;;  %v1048_v4 = vsel %vm6205_vm1, nan, %v1047_v46  ;;  %v1256_v47 = vsel %vm1245_vm11, nan, %v1255_v26  ;;  %v3372_v30 = vpack.c.bf16 %v424_v44, %v320_v0 }
 0x21e   :  { %v1351_v17 = vand.u32 3, %v1350_v21  ;;  %v1454_v39 = vadd.s32 3, %v1450_v51  ;;  %vm6206_vm12 = vcmp.lt.s32.totalorder %v4574_v37, 0  ;;  %v1458_v11 = vxor.u32 2147483648, %v5038_v52  ;;  %v6213_v51 = vld [vmem:[#allocation46_spill] sm:$0xff] }
 0x21f   :  { %v1552_v7 = vsel %vm6206_vm12, %v1551_v10, %v6204_v36  ;;  %v1461_v28 = vxor.u32 2147483648, %v5027_v63  ;;  %v1655_v32 = vsub.s32 4, %v4861_v1  ;;  %3373 = vmatprep.subr.bf16.mxu0 %v3372_v30  ;;  %v3384_v16 = vpack.c.bf16 %v1048_v4, %v944_v13 }
 0x220   :  { %v1554_v50 = vsel %vm4991_vm10, 0, %v1552_v7  ;;  %v1152_v0 = vsel %vm1141_vm2, nan, %v1151_v42  ;;  %v1455_v57 = vand.u32 3, %v1454_v39  ;;  %3375 = vmatpush3.bf16.msra.mxu0 %v3372_v30  ;;  %vm1453_vm6 = vweird.f32 %v4548_v25 }
 0x221   :  { %v1558_v48 = vadd.s32 3, %v1554_v50  ;;  %v3614_v54 = vpop.eup %3613  ;;  %v5325_v61 = vpack.c.bf16 %v1256_v47, %v1152_v0  ;;  %vm6207_vm3 = vcmp.lt.s32.totalorder %v4619_v35, 0  ;;  %v1759_v56 = vsub.s32 4, %v6208_v3  ;;  %3377 = vmatprep.subr.bf16.mxu0 %v5227_v9 }
 0x222   :  { %v1656_v29 = vsel %vm6207_vm3, %v1655_v32, %v4861_v1  ;;  %v3616_v23 = vpop.eup %3615  ;;  %vm1352_vm10 = vcmp.lt.s32.totalorder %v1351_v17, 2  ;;  %v1357_v43 = vxor.u32 2147483648, %v3614_v54  ;;  %vm1457_vm9 = vcmp.eq.s32.totalorder %v1455_v57, 0 }
 0x223   :  { %vm1460_vm4 = vcmp.eq.s32.totalorder %v1455_v57, 2  ;;  %vm1349_vm14 = vweird.f32 %v6142_v19  ;;  %v1354_v46 = vxor.u32 2147483648, %v3616_v23  ;;  %vm1456_vm5 = vcmp.lt.s32.totalorder %v1455_v57, 2  ;;  %v5394_v57 = vld [vmem:[%s5936_s1 + $0x10] sm:$0xff] }
 0x224   :  { %v1459_v27 = vsel %vm1457_vm9, %v5027_v63, %v1458_v11  ;;  %v1462_v20 = vsel %vm1460_vm4, %v1461_v28, %v5038_v52  ;;  %v1559_v38 = vand.u32 3, %v1558_v48  ;;  %v1658_v1 = vsel %vm5075_vm8, 0, %v1656_v29  ;;  %3379 = vmatpush3.bf16.msra.mxu0 %v5227_v9  ;;  %v5377_v11 = vld [vmem:[%s5936_s1] sm:$0xff]  ;;  %v5383_v28 = vld [vmem:[%s5936_s1 + $0x8] sm:$0xff]  ;;  %v5406_v29 = vld [vmem:[%s5936_s1 + $0x18] sm:$0xff] }
 0x225   :  { %v1463_v2 = vsel %vm1456_vm5, %v1459_v27, %v1462_v20  ;;  %vm6210_vm2 = vcmp.lt.s32.totalorder %v6209_v40, 0  ;;  %vm1353_vm13 = vcmp.eq.s32.totalorder %v1351_v17, 0  ;;  %vm1356_vm0 = vcmp.eq.s32.totalorder %v1351_v17, 2  ;;  %3381 = vmatprep.subr.bf16.mxu0 %v5250_v62  ;;  %v5400_v48 = vld [vmem:[%s5936_s1 + $0x20] sm:$0xff]  ;;  %v1884_v27 = vld [vmem:[%s5937_s2 + $0x18] sm:$0xff] }
 0x226   :  { %v1760_v14 = vsel %vm6210_vm2, %v1759_v56, %v6208_v3  ;;  %v1562_v8 = vxor.u32 2147483648, %v5151_v53  ;;  %v1565_v18 = vxor.u32 2147483648, %v5133_v24  ;;  %v1355_v63 = vsel %vm1353_vm13, %v3614_v54, %v1354_v46  ;;  %v5412_v3 = vld [vmem:[%s5936_s1 + $0x30] sm:$0xff]  ;;  %v5418_v56 = vld [vmem:[%s5936_s1 + $0x28] sm:$0xff]  ;;  %v5430_v46 = vld [vmem:[%s5936_s1 + $0x38] sm:$0xff] }
 0x227   :  { %v1358_v52 = vsel %vm1356_vm0, %v1357_v43, %v3616_v23  ;;  %v1662_v6 = vadd.s32 3, %v1658_v1  ;;  %v1666_v59 = vxor.u32 2147483648, %v5167_v58  ;;  %v1464_v34 = vsel %vm1453_vm6, nan, %v1463_v2  ;;  %v1882_v23 = vld [vmem:[%s5937_s2 + $0x8] sm:$0xff]  ;;  %v1883_v43 = vld [vmem:[%s5937_s2 + $0x10] sm:$0xff]  ;;  %v1885_v20 = vld [vmem:[%s5937_s2 + $0x20] sm:$0xff] }
 0x228   :  { %v1669_v60 = vxor.u32 2147483648, %v5159_v55  ;;  %vm6212_vm8 = vnez %v6211_v31  ;;  %v1770_v22 = vxor.u32 2147483648, %v4987_v15  ;;  %vm1561_vm11 = vcmp.eq.s32.totalorder %v1559_v38, 0  ;;  %3383 = vmatpush3.bf16.msra.mxu0 %v5250_v62  ;;  %v1886_v2 = vld [vmem:[%s5937_s2 + $0x28] sm:$0xff]  ;;  %v1888_v1 = vld [vmem:[%s5937_s2 + $0x38] sm:$0xff] }
 0x229   :  { %v1762_v9 = vsel %vm6212_vm8, 0, %v1760_v14  ;;  %vm1564_vm7 = vcmp.eq.s32.totalorder %v1559_v38, 2  ;;  %v1663_v26 = vand.u32 3, %v1662_v6  ;;  %v1359_v12 = vsel %vm1352_vm10, %v1355_v63, %v1358_v52  ;;  %3385 = vmatprep.subr.bf16.mxu0 %v3384_v16 }
 0x22a   :  { %v1766_v21 = vadd.s32 3, %v1762_v9  ;;  %v1563_v13 = vsel %vm1561_vm11, %v5133_v24, %v1562_v8  ;;  %v1566_v25 = vsel %vm1564_vm7, %v1565_v18, %v5151_v53  ;;  %v1863_v5 = vsub.s32 4, %v4942_v41 }
 0x22b   :  { %vm1665_vm15 = vcmp.eq.s32.totalorder %v1663_v26, 0  ;;  %vm1668_vm1 = vcmp.eq.s32.totalorder %v1663_v26, 2  ;;  %v1773_v36 = vxor.u32 2147483648, %v6213_v51  ;;  %vm1664_vm12 = vcmp.lt.s32.totalorder %v1663_v26, 2 }
 0x22c   :  { %v1767_v49 = vand.u32 3, %v1766_v21  ;;  %v1667_v10 = vsel %vm1665_vm15, %v5159_v55, %v1666_v59  ;;  %v1670_v44 = vsel %vm1668_vm1, %v1669_v60, %v5167_v58  ;;  %vm6214_vm6 = vcmp.lt.s32.totalorder %v4745_v45, 0  ;;  %3387 = vmatpush3.bf16.msra.mxu0 %v3384_v16  ;;  %v6216_v55 = vld [vmem:[#allocation9_spill] sm:$0xff] }
 0x22d   :  { %v1864_v62 = vsel %vm6214_vm6, %v1863_v5, %v4942_v41  ;;  %v1360_v24 = vsel %vm1349_vm14, nan, %v1359_v12  ;;  %vm1560_vm3 = vcmp.lt.s32.totalorder %v1559_v38, 2  ;;  %vm1661_vm10 = vweird.f32 %v4619_v35  ;;  %3389 = vmatprep.subr.bf16.mxu0 %v5325_v61  ;;  %v6217_v35 = vld [vmem:[#allocation11_spill] sm:$0xff]  ;;  %v1887_v38 = vld [vmem:[%s5937_s2 + $0x30] sm:$0xff] }
 0x22e   :  { %v1671_v53 = vsel %vm1664_vm12, %v1667_v10, %v1670_v44  ;;  %v3392_v4 = vpack.c.bf16 %v1464_v34, %v1360_v24  ;;  %v1567_v42 = vsel %vm1560_vm3, %v1563_v13, %v1566_v25  ;;  %vm6215_vm9 = vnez %v6158_v33 }
 0x22f   :  { %v1866_v47 = vsel %vm6215_vm9, 0, %v1864_v62  ;;  %v1874_v30 = vxor.u32 2147483648, %v6216_v55  ;;  %vm1769_vm4 = vcmp.eq.s32.totalorder %v1767_v49, 0  ;;  %vm1772_vm5 = vcmp.eq.s32.totalorder %v1767_v49, 2 }
 0x230   :  { %v1870_v41 = vadd.s32 3, %v1866_v47  ;;  %v1672_v58 = vsel %vm1661_vm10, nan, %v1671_v53  ;;  %v1771_v19 = vsel %vm1769_vm4, %v6213_v51, %v1770_v22  ;;  %v1774_v17 = vsel %vm1772_vm5, %v1773_v36, %v4987_v15  ;;  %3391 = vmatpush3.bf16.msra.mxu0 %v5325_v61 }
 0x231   :  { %v1877_v39 = vxor.u32 2147483648, %v6217_v35  ;;  %v3755_v7 = vmov 2   ;;  %vm1557_vm14 = vweird.f32 %v4574_v37  ;;  %vm1768_vm2 = vcmp.lt.s32.totalorder %v1767_v49, 2  ;;  %3393 = vmatprep.subr.bf16.mxu0 %v3392_v4 }
 0x232   :  { %3546 = vset.pattern.permute.xlu1 %v3755_v7  ;;  %3547 = vset.pattern.permute.xlu0 %v3755_v7  ;;  %v1871_v33 = vand.u32 3, %v1870_v41  ;;  %v1568_v15 = vsel %vm1557_vm14, nan, %v1567_v42  ;;  %v1775_v50 = vsel %vm1768_vm2, %v1771_v19, %v1774_v17  ;;  %vm1765_vm11 = vweird.f32 %v6209_v40  ;;  %v1889_v40 = vld [vmem:[%s5938_s3] sm:$0xff] }
 0x233   :  { %1907 = vperm.xlu1 %3546, %v5377_v11   ;;  %1911 = vperm.xlu0 %3547, %v5383_v28   ;;  %v3396_v37 = vpack.c.bf16 %v1672_v58, %v1568_v15  ;;  %vm1869_vm7 = vweird.f32 %v4745_v45  ;;  %v1776_v54 = vsel %vm1765_vm11, nan, %v1775_v50  ;;  %vm2291_vm15 = vcmask 523264  }
 0x234   :  { %vm1873_vm13 = vcmp.eq.s32.totalorder %v1871_v33, 0  ;;  %vm1876_vm0 = vcmp.eq.s32.totalorder %v1871_v33, 2  ;;  %vm1872_vm8 = vcmp.lt.s32.totalorder %v1871_v33, 2  ;;  %3395 = vmatpush3.bf16.msra.mxu0 %v3392_v4  ;;  %3313 = vmatprep.mubr.msk.f32.mxu1 %vm2291_vm15, %v1889_v40  ;;  %v3756_v14 = vmov 3  }
 0x235   :  { %v1875_v32 = vsel %vm1873_vm13, %v6217_v35, %v1874_v30  ;;  %v1878_v16 = vsel %vm1876_vm0, %v1877_v39, %v6216_v55  ;;  %3397 = vmatprep.subr.bf16.mxu0 %v3396_v37 }
 0x236   :  { %v1879_v0 = vsel %vm1872_vm8, %v1875_v32, %v1878_v16 }
 0x237   :  { %1915 = vperm.xlu1 %3546, %v5394_v57   ;;  %1923 = vperm.xlu0 %3547, %v5400_v48   ;;  %v1880_v61 = vsel %vm1869_vm7, nan, %v1879_v0 }
 0x238   :  { %v3400_v45 = vpack.c.bf16 %v1880_v61, %v1776_v54  ;;  %3399 = vmatpush3.bf16.msra.mxu0 %v3396_v37 }
 0x23a   :  { %3401 = vmatprep.subr.bf16.mxu0 %v3400_v45 }
 0x23b   :  { %1919 = vperm.xlu1 %3546, %v5406_v29   ;;  %1931 = vperm.xlu0 %3547, %v5412_v3  }
 0x23c   :  { %3403 = vmatpush3.bf16.msra.mxu0 %v3400_v45 }
 0x23f   :  { %1927 = vperm.xlu1 %3546, %v5418_v56   ;;  %3286 = vmatmul.mubr.f32.vlgmr.msra.gmra.mrb[0].mxu0 %v1882_v23 }
 0x240   :  { %3288 = vmatprep.mubr.f32.mxu0 %v1883_v43  ;;  %3548 = vset.pattern.permute.xlu0 %v3756_v14 }
 0x241   :  { %2260 = vperm.xlu0 %3548, %v5377_v11  }
 0x243   :  { %1935 = vperm.xlu1 %3546, %v5430_v46   ;;  %3289 = vmatmul.mubr.f32.gmra.mrb[2].mxu0 %v1884_v27 }
 0x244   :  { %3291 = vmatprep.mubr.f32.mxu0 %v1885_v20 }
 0x245   :  { %2272 = vperm.xlu0 %3548, %v5406_v29  }
 0x247   :  { %3292 = vmatmul.mubr.f32.gmra.mrb[4].mxu0 %v1886_v2  ;;  %3549 = vset.pattern.permute.xlu1 %v3756_v14 }
 0x248   :  { %3294 = vmatprep.mubr.f32.mxu0 %v1887_v38  ;;  %2264 = vperm.xlu1 %3549, %v5383_v28  }
 0x249   :  { %2280 = vperm.xlu0 %3548, %v5418_v56  }
 0x24b   :  { %3295 = vmatmul.mubr.f32.gmra.mrb[6].mxu0 %v1888_v1 }
 0x24c   :  { %2268 = vperm.xlu1 %3549, %v5394_v57  }
 0x24d   :  { %2288 = vperm.xlu0 %3548, %v5430_v46  }
 0x250   :  { %2276 = vperm.xlu1 %3549, %v5400_v48  }
 0x254   :  { %2284 = vperm.xlu1 %3549, %v5412_v3  }
 0x2b2   :  { %v1908_v8 = vpop.permute.xlu1 %1907  ;;  %v1912_v63 = vpop.permute.xlu0 %1911 }
 0x2b6   :  { %v1916_v18 = vpop.permute.xlu1 %1915  ;;  %v1924_v47 = vpop.permute.xlu0 %1923 }
 0x2ba   :  { %v1920_v31 = vpop.permute.xlu1 %1919  ;;  %v1932_v32 = vpop.permute.xlu0 %1931 }
 0x2be   :  { %v1928_v24 = vpop.permute.xlu1 %1927 }
 0x2c2   :  { %v1936_v15 = vpop.permute.xlu1 %1935 }
 0x312   :  { %v3287_v52 = vpop.f32.mrb[0].mxu0 }
 0x313   :  { %v2010_v6 = vadd.f32 %v3287_v52, %v1912_v63  ;;  %v2004_v59 = vpop.f32.mrb[1].mxu0 }
 0x314   :  { %v2005_v34 = vadd.f32 %v2004_v59, %v1908_v8 }
 0x315   :  { %v5460_v60 = vmul.f32 0.70710677, %v2010_v6  ;;  %v5497_v40 = vmul.f32 0.5, %v2010_v6 }
 0x316   :  { %v5462_v9 = vmul.f32 0.70710677, %v2005_v34  ;;  %v3290_v22 = vpop.f32.mrb[2].mxu0  ;;  %v5502_v52 = vmul.f32 0.5, %v2005_v34 }
 0x317   :  { %v2060_v26 = vand.u32 2147483647, %v5460_v60  ;;  %v2020_v21 = vadd.f32 %v3290_v22, %v1920_v31  ;;  %v2014_v12 = vpop.f32.mrb[3].mxu0  ;;  %vm2220_vm3 = vcmp.ge.f32.partialorder %v5460_v60, 0.0 }
 0x318   :  { %v2059_v13 = vand.u32 2147483647, %v5462_v9  ;;  %v5466_v25 = vadd.f32 %v2014_v12, %v1916_v18  ;;  %vm2219_vm6 = vcmp.ge.f32.partialorder %v5462_v9, 0.0 }
 0x319   :  { %v2068_v5 = vmul.f32 0.3275911, %v2060_v26  ;;  %v5468_v49 = vmul.f32 0.70710677, %v2020_v21  ;;  %v2172_v7 = vmul.f32 %v2060_v26, %v2060_v26  ;;  %v5505_v12 = vmul.f32 0.5, %v2020_v21 }
 0x31a   :  { %v2067_v51 = vmul.f32 0.3275911, %v2059_v13  ;;  %v5471_v36 = vmul.f32 0.70710677, %v5466_v25  ;;  %v3293_v10 = vpop.f32.mrb[4].mxu0  ;;  %v2171_v37 = vmul.f32 %v2059_v13, %v2059_v13 }
 0x31b   :  { %v2062_v44 = vand.u32 2147483647, %v5468_v49  ;;  %v2024_v62 = vpop.f32.mrb[5].mxu0  ;;  %v2076_v53 = vadd.f32 1.0, %v2068_v5  ;;  %v5475_v19 = vadd.f32 %v3293_v10, %v1928_v24  ;;  %v2180_v43 = vsub.f32 0.0, %v2172_v7 }
 0x31c   :  { %v2075_v4 = vadd.f32 1.0, %v2067_v51  ;;  %v2061_v42 = vand.u32 2147483647, %v5471_v36  ;;  %v5477_v39 = vadd.f32 %v2024_v62, %v1924_v47  ;;  %v2179_v2 = vsub.f32 0.0, %v2171_v37 }
 0x31d   :  { %v2070_v55 = vmul.f32 0.3275911, %v2062_v44  ;;  %v5480_v33 = vmul.f32 0.70710677, %v5475_v19  ;;  %v2174_v16 = vmul.f32 %v2062_v44, %v2062_v44  ;;  %v2189_v26 = vmul.f32 1.442695, %v2180_v43 }
 0x31e   :  { %3617 = vrcp.f32 %v2075_v4  ;;  %v2069_v30 = vmul.f32 0.3275911, %v2061_v42  ;;  %v3296_v41 = vpop.f32.mrb[6].mxu0  ;;  %v5483_v50 = vmul.f32 0.70710677, %v5477_v39  ;;  %v2173_v61 = vmul.f32 %v2061_v42, %v2061_v42 }
 0x31f   :  { %v2078_v58 = vadd.f32 1.0, %v2070_v55  ;;  %v2034_v17 = vpop.f32.mrb[7].mxu0  ;;  %3619 = vrcp.f32 %v2076_v53  ;;  %v2064_v0 = vand.u32 2147483647, %v5480_v33  ;;  %v5486_v54 = vadd.f32 %v3296_v41, %v1936_v15 }
 0x320   :  { %v2077_v35 = vadd.f32 1.0, %v2069_v30  ;;  %v2063_v45 = vand.u32 2147483647, %v5483_v50  ;;  %v5489_v23 = vadd.f32 %v2034_v17, %v1932_v32  ;;  %v2182_v14 = vsub.f32 0.0, %v2174_v16 }
 0x321   :  { %3621 = vrcp.f32 %v2078_v58  ;;  %v2072_v27 = vmul.f32 0.3275911, %v2064_v0  ;;  %v5492_v20 = vmul.f32 0.70710677, %v5486_v54  ;;  %v2181_v59 = vsub.f32 0.0, %v2173_v61 }
 0x322   :  { %3623 = vrcp.f32 %v2077_v35  ;;  %v2071_v38 = vmul.f32 0.3275911, %v2063_v45  ;;  %v5495_v1 = vmul.f32 0.70710677, %v5489_v23  ;;  %v2187_v6 = vmul.f32 1.442695, %v2179_v2 }
 0x323   :  { %v2080_v8 = vadd.f32 1.0, %v2072_v27  ;;  %v2066_v18 = vand.u32 2147483647, %v5492_v20  ;;  %v2176_v51 = vmul.f32 %v2064_v0, %v2064_v0  ;;  %v2193_v62 = vmul.f32 1.442695, %v2182_v14 }
 0x324   :  { %v2079_v31 = vadd.f32 1.0, %v2071_v38  ;;  %v2065_v22 = vand.u32 2147483647, %v5495_v1  ;;  %v2175_v34 = vmul.f32 %v2063_v45, %v2063_v45  ;;  %v2191_v42 = vmul.f32 1.442695, %v2181_v59 }
 0x325   :  { %3625 = vrcp.f32 %v2080_v8  ;;  %v2074_v13 = vmul.f32 0.3275911, %v2066_v18  ;;  %v2178_v47 = vmul.f32 %v2066_v18, %v2066_v18  ;;  %v2184_v35 = vsub.f32 0.0, %v2176_v51 }
 0x326   :  { %3627 = vrcp.f32 %v2079_v31  ;;  %v2073_v10 = vmul.f32 0.3275911, %v2065_v22  ;;  %v2177_v41 = vmul.f32 %v2065_v22, %v2065_v22  ;;  %v5518_v15 = vmul.f32 0.5, %v5466_v25 }
 0x327   :  { %v2082_v24 = vadd.f32 1.0, %v2074_v13  ;;  %v2183_v32 = vsub.f32 0.0, %v2175_v34  ;;  %v2186_v61 = vsub.f32 0.0, %v2178_v47  ;;  %v2197_v14 = vmul.f32 1.442695, %v2184_v35 }
 0x328   :  { %v5500_v63 = vpop.eup %3617  ;;  %v2081_v55 = vadd.f32 1.0, %v2073_v10  ;;  %v2185_v27 = vsub.f32 0.0, %v2177_v41  ;;  %vm2222_vm1 = vcmp.ge.f32.partialorder %v5468_v49, 0.0  ;;  %vm2221_vm12 = vcmp.ge.f32.partialorder %v5471_v36, 0.0 }
 0x329   :  { %v5507_v5 = vpop.eup %3619  ;;  %v2099_v53 = vmul.f32 1.0614054, %v5500_v63  ;;  %3629 = vrcp.f32 %v2082_v24  ;;  %v2195_v59 = vmul.f32 1.442695, %v2183_v32  ;;  %vm2224_vm10 = vcmp.ge.f32.partialorder %v5480_v33, 0.0 }
 0x32a   :  { %v2100_v58 = vmul.f32 1.0614054, %v5507_v5  ;;  %3631 = vrcp.f32 %v2081_v55  ;;  %v2199_v34 = vmul.f32 1.442695, %v2185_v27  ;;  %vm2223_vm9 = vcmp.ge.f32.partialorder %v5483_v50, 0.0 }
 0x32b   :  { %v5509_v44 = vpop.eup %3621  ;;  %v2107_v7 = vadd.f32 -1.4531521, %v2099_v53  ;;  %3633 = vpow2.f32 %v2189_v26  ;;  %v2047_v33 = vmul.f32 0.5, %v5477_v39  ;;  %vm2226_vm4 = vcmp.ge.f32.partialorder %v5492_v20, 0.0 }
 0x32c   :  { %v5512_v4 = vpop.eup %3623  ;;  %v2102_v21 = vmul.f32 1.0614054, %v5509_v44  ;;  %v2108_v16 = vadd.f32 -1.4531521, %v2100_v58  ;;  %3635 = vpow2.f32 %v2187_v6  ;;  %v2201_v6 = vmul.f32 1.442695, %v2186_v61 }
 0x32d   :  { %v2101_v30 = vmul.f32 1.0614054, %v5512_v4  ;;  %v2115_v45 = vmul.f32 %v5500_v63, %v2107_v7  ;;  %3637 = vpow2.f32 %v2193_v62  ;;  %vm2225_vm5 = vcmp.ge.f32.partialorder %v5495_v1, 0.0  ;;  %v1890_v1 = vld [vmem:[%s5938_s3 + $0x8] sm:$0xff] }
 0x32e   :  { %v2110_v17 = vadd.f32 -1.4531521, %v2102_v21  ;;  %v2116_v2 = vmul.f32 %v5507_v5, %v2108_v16  ;;  %3639 = vpow2.f32 %v2191_v42 }
 0x32f   :  { %v2109_v37 = vadd.f32 -1.4531521, %v2101_v30  ;;  %v2123_v25 = vadd.f32 1.4214138, %v2115_v45  ;;  %v5524_v8 = vpop.eup %3625  ;;  %3641 = vpow2.f32 %v2197_v14 }
 0x330   :  { %v2118_v0 = vmul.f32 %v5509_v44, %v2110_v17  ;;  %v2124_v31 = vadd.f32 1.4214138, %v2116_v2  ;;  %v5526_v22 = vpop.eup %3627  ;;  %v2104_v13 = vmul.f32 1.0614054, %v5524_v8  ;;  %3643 = vpow2.f32 %v2195_v59 }
 0x331   :  { %v2117_v43 = vmul.f32 %v5512_v4, %v2109_v37  ;;  %v2131_v51 = vmul.f32 %v5500_v63, %v2123_v25  ;;  %v2103_v62 = vmul.f32 1.0614054, %v5526_v22  ;;  %3645 = vpow2.f32 %v2201_v6 }
 0x332   :  { %v2126_v38 = vadd.f32 1.4214138, %v2118_v0  ;;  %v2132_v24 = vmul.f32 %v5507_v5, %v2124_v31  ;;  %v2112_v21 = vadd.f32 -1.4531521, %v2104_v13  ;;  %3647 = vpow2.f32 %v2199_v34 }
 0x333   :  { %v2125_v18 = vadd.f32 1.4214138, %v2117_v43  ;;  %v2139_v42 = vadd.f32 -0.28449672, %v2131_v51  ;;  %v5534_v47 = vpop.eup %3629  ;;  %v2111_v30 = vadd.f32 -1.4531521, %v2103_v62 }
 0x334   :  { %v2134_v26 = vmul.f32 %v5509_v44, %v2126_v38  ;;  %v2140_v41 = vadd.f32 -0.28449672, %v2132_v24  ;;  %v5536_v58 = vpop.eup %3631  ;;  %v2120_v35 = vmul.f32 %v5524_v8, %v2112_v21  ;;  %v2106_v7 = vmul.f32 1.0614054, %v5534_v47 }
 0x335   :  { %v2133_v10 = vmul.f32 %v5512_v4, %v2125_v18  ;;  %v2147_v37 = vmul.f32 %v5500_v63, %v2139_v42  ;;  %v2119_v16 = vmul.f32 %v5526_v22, %v2111_v30  ;;  %v2105_v0 = vmul.f32 1.0614054, %v5536_v58  ;;  %v3634_v45 = vpop.eup %3633 }
 0x336   :  { %v2142_v53 = vadd.f32 -0.28449672, %v2134_v26  ;;  %v2148_v61 = vmul.f32 %v5507_v5, %v2140_v41  ;;  %v2128_v27 = vadd.f32 1.4214138, %v2120_v35  ;;  %v2114_v2 = vadd.f32 -1.4531521, %v2106_v7  ;;  %v3636_v38 = vpop.eup %3635 }
 0x337   :  { %v2141_v55 = vadd.f32 -0.28449672, %v2133_v10  ;;  %v2127_v25 = vadd.f32 1.4214138, %v2119_v16  ;;  %v2113_v18 = vadd.f32 -1.4531521, %v2105_v0  ;;  %v3638_v59 = vpop.eup %3637 }
 0x338   :  { %v2150_v17 = vmul.f32 %v5509_v44, %v2142_v53  ;;  %v2136_v26 = vmul.f32 %v5524_v8, %v2128_v27  ;;  %v2122_v13 = vmul.f32 %v5534_v47, %v2114_v2  ;;  %v2155_v51 = vadd.f32 0.2548296, %v2147_v37  ;;  %v3640_v10 = vpop.eup %3639 }
 0x339   :  { %v2149_v32 = vmul.f32 %v5512_v4, %v2141_v55  ;;  %v2135_v62 = vmul.f32 %v5526_v22, %v2127_v25  ;;  %v2121_v24 = vmul.f32 %v5536_v58, %v2113_v18  ;;  %v2156_v53 = vadd.f32 0.2548296, %v2148_v61 }
 0x33a   :  { %v2158_v43 = vadd.f32 0.2548296, %v2150_v17  ;;  %v2144_v21 = vadd.f32 -0.28449672, %v2136_v26  ;;  %v2163_v42 = vmul.f32 %v5500_v63, %v2155_v51 }
 0x33b   :  { %v2157_v14 = vadd.f32 0.2548296, %v2149_v32  ;;  %v2143_v30 = vadd.f32 -0.28449672, %v2135_v62  ;;  %v2129_v41 = vadd.f32 1.4214138, %v2121_v24  ;;  %v2164_v17 = vmul.f32 %v5507_v5, %v2156_v53 }
 0x33c   :  { %v2166_v31 = vmul.f32 %v5509_v44, %v2158_v43  ;;  %v2130_v44 = vadd.f32 1.4214138, %v2122_v13  ;;  %v2152_v7 = vmul.f32 %v5524_v8, %v2144_v21  ;;  %v2203_v32 = vmul.f32 %v3636_v38, %v2163_v42 }
 0x33d   :  { %v2165_v6 = vmul.f32 %v5512_v4, %v2157_v14  ;;  %v3642_v4 = vpop.eup %3641  ;;  %v2151_v61 = vmul.f32 %v5526_v22, %v2143_v30  ;;  %v2137_v63 = vmul.f32 %v5536_v58, %v2129_v41  ;;  %v2204_v43 = vmul.f32 %v3634_v45, %v2164_v17 }
 0x33e   :  { %v2206_v34 = vmul.f32 %v3638_v59, %v2166_v31  ;;  %v2138_v37 = vmul.f32 %v5534_v47, %v2130_v44  ;;  %v3644_v16 = vpop.eup %3643  ;;  %v2160_v2 = vadd.f32 0.2548296, %v2152_v7  ;;  %v2211_v25 = vsub.f32 1.0, %v2203_v32 }
 0x33f   :  { %v2205_v55 = vmul.f32 %v3640_v10, %v2165_v6  ;;  %v2159_v5 = vadd.f32 0.2548296, %v2151_v61  ;;  %v2145_v59 = vadd.f32 -0.28449672, %v2137_v63  ;;  %v2212_v31 = vsub.f32 1.0, %v2204_v43  ;;  %v3646_v26 = vpop.eup %3645 }
 0x340   :  { %v2214_v35 = vsub.f32 1.0, %v2206_v34  ;;  %v2146_v14 = vadd.f32 -0.28449672, %v2138_v37  ;;  %v2168_v38 = vmul.f32 %v5524_v8, %v2160_v2  ;;  %v2227_v10 = vsub.f32 0.0, %v2211_v25  ;;  %v3648_v6 = vpop.eup %3647 }
 0x341   :  { %v2213_v0 = vsub.f32 1.0, %v2205_v55  ;;  %v2167_v24 = vmul.f32 %v5526_v22, %v2159_v5  ;;  %v2153_v53 = vmul.f32 %v5536_v58, %v2145_v59  ;;  %v2228_v42 = vsub.f32 0.0, %v2212_v31 }
 0x342   :  { %v2230_v27 = vsub.f32 0.0, %v2214_v35  ;;  %v2154_v51 = vmul.f32 %v5534_v47, %v2146_v14  ;;  %v2208_v21 = vmul.f32 %v3642_v4, %v2168_v38  ;;  %v2235_v30 = vsel %vm2219_vm6, %v2211_v25, %v2227_v10  ;;  %v1894_v10 = vld [vmem:[%s5938_s3 + $0x28] sm:$0xff] }
 0x343   :  { %v2229_v18 = vsub.f32 0.0, %v2213_v0  ;;  %v2207_v55 = vmul.f32 %v3644_v16, %v2167_v24  ;;  %v2161_v8 = vadd.f32 0.2548296, %v2153_v53  ;;  %v2236_v22 = vsel %vm2220_vm3, %v2212_v31, %v2228_v42  ;;  %v2261_v53 = vpop.permute.xlu0 %2260 }
 0x344   :  { %v2238_v13 = vsel %vm2222_vm1, %v2214_v35, %v2230_v27  ;;  %v2162_v44 = vadd.f32 0.2548296, %v2154_v51  ;;  %v2216_v17 = vsub.f32 1.0, %v2208_v21  ;;  %v2243_v7 = vadd.f32 1.0, %v2235_v30  ;;  %v1893_v51 = vld [vmem:[%s5938_s3 + $0x20] sm:$0xff] }
 0x345   :  { %v2246_v62 = vadd.f32 1.0, %v2238_v13  ;;  %v2237_v45 = vsel %vm2221_vm12, %v2213_v0, %v2229_v18  ;;  %v2215_v35 = vsub.f32 1.0, %v2207_v55  ;;  %v2169_v4 = vmul.f32 %v5536_v58, %v2161_v8 }
 0x346   :  { %v2245_v34 = vadd.f32 1.0, %v2237_v45  ;;  %v2170_v36 = vmul.f32 %v5534_v47, %v2162_v44  ;;  %v2244_v37 = vadd.f32 1.0, %v2236_v22  ;;  %v2048_v47 = vmul.f32 0.5, %v5475_v19  ;;  %v1897_v45 = vld [vmem:[%s5938_s3 + $0x40] sm:$0xff] }
 0x347   :  { %v2254_v49 = vmul.f32 %v2246_v62, %v5505_v12  ;;  %v2232_v12 = vsub.f32 0.0, %v2216_v17  ;;  %v2231_v9 = vsub.f32 0.0, %v2215_v35  ;;  %v2209_v0 = vmul.f32 %v3648_v6, %v2169_v4  ;;  %v1895_v6 = vld [vmem:[%s5938_s3 + $0x30] sm:$0xff]  ;;  %v1896_v62 = vld [vmem:[%s5938_s3 + $0x38] sm:$0xff] }
 0x348   :  { %v2253_v41 = vmul.f32 %v2245_v34, %v5518_v15  ;;  %v2210_v32 = vmul.f32 %v3646_v26, %v2170_v36  ;;  %v2251_v15 = vmul.f32 %v2243_v7, %v5502_v52  ;;  %v2252_v61 = vmul.f32 %v2244_v37, %v5497_v40  ;;  %v2265_v34 = vpop.permute.xlu1 %2264 }
 0x349   :  { %v2240_v60 = vsel %vm2224_vm10, %v2216_v17, %v2232_v12  ;;  %v2239_v43 = vsel %vm2223_vm9, %v2215_v35, %v2231_v9  ;;  %v2217_v27 = vsub.f32 1.0, %v2209_v0  ;;  %v2050_v19 = vmul.f32 0.5, %v5486_v54  ;;  %v1891_v54 = vld [vmem:[%s5938_s3 + $0x10] sm:$0xff] }
 0x34a   :  { %v3408_v16 = vpack.c.bf16 %v2254_v49, %v2253_v41  ;;  %v2218_v63 = vsub.f32 1.0, %v2210_v32  ;;  %v2248_v58 = vadd.f32 1.0, %v2240_v60  ;;  %v3404_v2 = vpack.c.bf16 %v2252_v61, %v2251_v15 }
 0x34b   :  { %v2247_v14 = vadd.f32 1.0, %v2239_v43  ;;  %v2233_v52 = vsub.f32 0.0, %v2217_v27  ;;  %v2049_v31 = vmul.f32 0.5, %v5489_v23  ;;  %v1892_v23 = vld [vmem:[%s5938_s3 + $0x18] sm:$0xff]  ;;  %v3757_v24 = vmov 4  }
 0x34c   :  { %v2234_v25 = vsub.f32 0.0, %v2218_v63  ;;  %v2256_v18 = vmul.f32 %v2248_v58, %v2048_v47  ;;  %3405 = vmatprep.subr.bf16.mxu1 %v3404_v2  ;;  %3550 = vset.pattern.permute.xlu1 %v3757_v24  ;;  %v2269_v55 = vpop.permute.xlu1 %2268  ;;  %vm3759_vm12 = vmmov 0  }
 0x34d   :  { %v2255_v40 = vmul.f32 %v2247_v14, %v2047_v33  ;;  %3407 = vmatpush3.bf16.msra.mxu1 %v3404_v2  ;;  %v2241_v59 = vsel %vm2225_vm5, %v2217_v27, %v2233_v52  ;;  %3551 = vset.pattern.permute.xlu0 %v3757_v24 }
 0x34e   :  { %v2242_v5 = vsel %vm2226_vm4, %v2218_v63, %v2234_v25  ;;  %3409 = vmatprep.subr.bf16.mxu1 %v3408_v16  ;;  %v2249_v39 = vadd.f32 1.0, %v2241_v59  ;;  %2638 = vperm.xlu1 %3550, %v5377_v11  }
 0x34f   :  { %v2250_v50 = vadd.f32 1.0, %v2242_v5  ;;  %v3412_v26 = vpack.c.bf16 %v2256_v18, %v2255_v40  ;;  %2642 = vperm.xlu0 %3551, %v5383_v28   ;;  %v2273_v28 = vpop.permute.xlu0 %2272 }
 0x350   :  { %v2257_v38 = vmul.f32 %v2249_v39, %v2049_v31  ;;  %v2277_v9 = vpop.permute.xlu1 %2276 }
 0x351   :  { %v2258_v13 = vmul.f32 %v2250_v50, %v2050_v19  ;;  %3411 = vmatpush3.bf16.msra.mxu1 %v3408_v16 }
 0x352   :  { %3413 = vmatprep.subr.bf16.mxu1 %v3412_v26  ;;  %2646 = vperm.xlu1 %3550, %v5394_v57  }
 0x353   :  { %v3416_v20 = vpack.c.bf16 %v2258_v13, %v2257_v38  ;;  %2654 = vperm.xlu0 %3551, %v5400_v48   ;;  %v2281_v12 = vpop.permute.xlu0 %2280 }
 0x354   :  { %v2285_v40 = vpop.permute.xlu1 %2284 }
 0x355   :  { %3415 = vmatpush3.bf16.msra.mxu1 %v3412_v26 }
 0x356   :  { %3417 = vmatprep.subr.bf16.mxu1 %v3416_v20  ;;  %2650 = vperm.xlu1 %3550, %v5406_v29  }
 0x357   :  { %2662 = vperm.xlu0 %3551, %v5412_v3   ;;  %v2289_v14 = vpop.permute.xlu0 %2288 }
 0x359   :  { %3419 = vmatpush3.bf16.msra.mxu1 %v3416_v20 }
 0x35a   :  { %2658 = vperm.xlu1 %3550, %v5418_v56  }
 0x35c   :  { %3314 = vmatmul.mubr.msk.f32.vlgmr.msra.gmra.mrb[0].mxu1 %vm2291_vm15, %v1890_v1 }
 0x35d   :  { %3316 = vmatprep.mubr.msk.f32.mxu1 %vm2291_vm15, %v1891_v54 }
 0x35e   :  { %2666 = vperm.xlu1 %3550, %v5430_v46  }
 0x360   :  { %3317 = vmatmul.mubr.msk.f32.gmra.mrb[2].mxu1 %vm2291_vm15, %v1892_v23 }
 0x361   :  { %3319 = vmatprep.mubr.msk.f32.mxu1 %vm2291_vm15, %v1893_v51 }
 0x364   :  { %3320 = vmatmul.mubr.msk.f32.gmra.mrb[4].mxu1 %vm2291_vm15, %v1894_v10 }
 0x365   :  { %3322 = vmatprep.mubr.msk.f32.mxu1 %vm2291_vm15, %v1895_v6 }
 0x368   :  { %3323 = vmatmul.mubr.msk.f32.gmra.mrb[6].mxu1 %vm2291_vm15, %v1896_v62 }
 0x369   :  { %3341 = vmatprep.mubr.msk.f32.mxu1 %vm2291_vm15, %v1897_v45 }
 0x42f   :  { %v3315_v21 = vpop.f32.mrb[0].mxu1 }
 0x430   :  { %v2388_v44 = vadd.f32 %v3315_v21, %v2265_v34  ;;  %v2382_v42 = vpop.f32.mrb[1].mxu1 }
 0x431   :  { %v2383_v11 = vadd.f32 %v2382_v42, %v2261_v53 }
 0x432   :  { %v5628_v49 = vmul.f32 0.70710677, %v2388_v44  ;;  %v5656_v59 = vmul.f32 0.5, %v2388_v44 }
 0x433   :  { %v5630_v57 = vmul.f32 0.70710677, %v2383_v11  ;;  %v3318_v48 = vpop.f32.mrb[2].mxu1  ;;  %v5661_v26 = vmul.f32 0.5, %v2383_v11 }
 0x434   :  { %v2438_v29 = vand.u32 2147483647, %v5628_v49  ;;  %v2398_v3 = vadd.f32 %v3318_v48, %v2273_v28  ;;  %v2392_v8 = vpop.f32.mrb[3].mxu1  ;;  %vm2598_vm14 = vcmp.ge.f32.partialorder %v5628_v49, 0.0 }
 0x435   :  { %v2437_v56 = vand.u32 2147483647, %v5630_v57  ;;  %v5634_v46 = vadd.f32 %v2392_v8, %v2269_v55  ;;  %vm2597_vm2 = vcmp.ge.f32.partialorder %v5630_v57, 0.0 }
 0x436   :  { %v2446_v30 = vmul.f32 0.3275911, %v2438_v29  ;;  %v5636_v41 = vmul.f32 0.70710677, %v2398_v3  ;;  %v2550_v4 = vmul.f32 %v2438_v29, %v2438_v29  ;;  %v5666_v1 = vmul.f32 0.5, %v2398_v3 }
 0x437   :  { %v2445_v17 = vmul.f32 0.3275911, %v2437_v56  ;;  %v5639_v36 = vmul.f32 0.70710677, %v5634_v46  ;;  %v3321_v22 = vpop.f32.mrb[4].mxu1  ;;  %v2549_v2 = vmul.f32 %v2437_v56, %v2437_v56 }
 0x438   :  { %v2454_v35 = vadd.f32 1.0, %v2446_v30  ;;  %v2440_v7 = vand.u32 2147483647, %v5636_v41  ;;  %v2402_v37 = vpop.f32.mrb[5].mxu1  ;;  %v2558_v47 = vsub.f32 0.0, %v2550_v4  ;;  %v5643_v63 = vadd.f32 %v3321_v22, %v2281_v12 }
 0x439   :  { %v2453_v32 = vadd.f32 1.0, %v2445_v17  ;;  %v2439_v16 = vand.u32 2147483647, %v5639_v36  ;;  %v5645_v27 = vadd.f32 %v2402_v37, %v2277_v9  ;;  %v2557_v13 = vsub.f32 0.0, %v2549_v2 }
 0x43a   :  { %3649 = vrcp.f32 %v2454_v35  ;;  %v2448_v0 = vmul.f32 0.3275911, %v2440_v7  ;;  %v5648_v33 = vmul.f32 0.70710677, %v5643_v63  ;;  %v2552_v25 = vmul.f32 %v2440_v7, %v2440_v7 }
 0x43b   :  { %3651 = vrcp.f32 %v2453_v32  ;;  %v2447_v15 = vmul.f32 0.3275911, %v2439_v16  ;;  %v3324_v61 = vpop.f32.mrb[6].mxu1  ;;  %v5651_v18 = vmul.f32 0.70710677, %v5645_v27  ;;  %v2551_v5 = vmul.f32 %v2439_v16, %v2439_v16 }
 0x43c   :  { %v2456_v60 = vadd.f32 1.0, %v2448_v0  ;;  %v2412_v58 = vpop.f32.mrb[7].mxu1  ;;  %v2567_v52 = vmul.f32 1.442695, %v2558_v47  ;;  %v2442_v19 = vand.u32 2147483647, %v5648_v33  ;;  %v5654_v50 = vadd.f32 %v3324_v61, %v2289_v14 }
 0x43d   :  { %v2455_v43 = vadd.f32 1.0, %v2447_v15  ;;  %v2441_v31 = vand.u32 2147483647, %v5651_v18  ;;  %v5659_v39 = vadd.f32 %v2412_v58, %v2285_v40  ;;  %v2560_v54 = vsub.f32 0.0, %v2552_v25 }
 0x43e   :  { %3653 = vrcp.f32 %v2456_v60  ;;  %v2450_v38 = vmul.f32 0.3275911, %v2442_v19  ;;  %v5664_v20 = vmul.f32 0.70710677, %v5654_v50  ;;  %v2559_v6 = vsub.f32 0.0, %v2551_v5 }
 0x43f   :  { %3655 = vrcp.f32 %v2455_v43  ;;  %v2449_v23 = vmul.f32 0.3275911, %v2441_v31  ;;  %v5669_v51 = vmul.f32 0.70710677, %v5659_v39  ;;  %v2554_v34 = vmul.f32 %v2442_v19, %v2442_v19 }
 0x440   :  { %3657 = vpow2.f32 %v2567_v52  ;;  %v2458_v62 = vadd.f32 1.0, %v2450_v38  ;;  %v2444_v45 = vand.u32 2147483647, %v5664_v20  ;;  %v2565_v11 = vmul.f32 1.442695, %v2557_v13 }
 0x441   :  { %v2457_v21 = vadd.f32 1.0, %v2449_v23  ;;  %v2443_v44 = vand.u32 2147483647, %v5669_v51  ;;  %v2571_v55 = vmul.f32 1.442695, %v2560_v54  ;;  %v2553_v29 = vmul.f32 %v2441_v31, %v2441_v31 }
 0x442   :  { %3659 = vrcp.f32 %v2458_v62  ;;  %v2452_v28 = vmul.f32 0.3275911, %v2444_v45  ;;  %v2556_v30 = vmul.f32 %v2444_v45, %v2444_v45  ;;  %v2569_v7 = vmul.f32 1.442695, %v2559_v6 }
 0x443   :  { %3661 = vrcp.f32 %v2457_v21  ;;  %v2451_v17 = vmul.f32 0.3275911, %v2443_v44  ;;  %v2562_v37 = vsub.f32 0.0, %v2554_v34  ;;  %v2561_v15 = vsub.f32 0.0, %v2553_v29 }
 0x444   :  { %v5671_v10 = vpop.eup %3649  ;;  %v2460_v56 = vadd.f32 1.0, %v2452_v28  ;;  %v2555_v61 = vmul.f32 %v2443_v44, %v2443_v44  ;;  %v2564_v58 = vsub.f32 0.0, %v2556_v30  ;;  %v5691_v40 = vmul.f32 0.5, %v5634_v46 }
 0x445   :  { %v5674_v24 = vpop.eup %3651  ;;  %v2478_v53 = vmul.f32 1.0614054, %v5671_v10  ;;  %v2459_v16 = vadd.f32 1.0, %v2451_v17  ;;  %v2575_v14 = vmul.f32 1.442695, %v2562_v37  ;;  %vm2600_vm13 = vcmp.ge.f32.partialorder %v5636_v41, 0.0 }
 0x446   :  { %v2477_v42 = vmul.f32 1.0614054, %v5674_v24  ;;  %3663 = vrcp.f32 %v2460_v56  ;;  %v2563_v19 = vsub.f32 0.0, %v2555_v61  ;;  %v2573_v38 = vmul.f32 1.442695, %v2561_v15 }
 0x447   :  { %v2486_v48 = vadd.f32 -1.4531521, %v2478_v53  ;;  %3665 = vrcp.f32 %v2459_v16  ;;  %v2579_v62 = vmul.f32 1.442695, %v2564_v58  ;;  %vm2599_vm0 = vcmp.ge.f32.partialorder %v5639_v36, 0.0 }
 0x448   :  { %v5679_v3 = vpop.eup %3653  ;;  %v2485_v8 = vadd.f32 -1.4531521, %v2477_v42  ;;  %3667 = vpow2.f32 %v2565_v11  ;;  %v2577_v11 = vmul.f32 1.442695, %v2563_v19  ;;  %vm2602_vm8 = vcmp.ge.f32.partialorder %v5648_v33, 0.0 }
 0x449   :  { %v5681_v22 = vpop.eup %3655  ;;  %v2494_v35 = vmul.f32 %v5671_v10, %v2486_v48  ;;  %v2480_v4 = vmul.f32 1.0614054, %v5679_v3  ;;  %3669 = vpow2.f32 %v2571_v55  ;;  %vm2601_vm11 = vcmp.ge.f32.partialorder %v5651_v18, 0.0 }
 0x44a   :  { %v2493_v12 = vmul.f32 %v5674_v24, %v2485_v8  ;;  %v2479_v32 = vmul.f32 1.0614054, %v5681_v22  ;;  %v3658_v25 = vpop.eup %3657  ;;  %3671 = vpow2.f32 %v2569_v7  ;;  %vm2604_vm7 = vcmp.ge.f32.partialorder %v5664_v20, 0.0 }
 0x44b   :  { %v2502_v9 = vadd.f32 1.4214138, %v2494_v35  ;;  %v2488_v0 = vadd.f32 -1.4531521, %v2480_v4  ;;  %3673 = vpow2.f32 %v2575_v14  ;;  %vm2603_vm1 = vcmp.ge.f32.partialorder %v5669_v51, 0.0  ;;  %v1901_v51 = vld [vmem:[%s5938_s3 + $0x60] sm:$0xff] }
 0x44c   :  { %v2501_v47 = vadd.f32 1.4214138, %v2493_v12  ;;  %v2487_v60 = vadd.f32 -1.4531521, %v2479_v32  ;;  %v5694_v54 = vpop.eup %3659  ;;  %3675 = vpow2.f32 %v2573_v38 }
 0x44d   :  { %v2510_v43 = vmul.f32 %v5671_v10, %v2502_v9  ;;  %v2496_v2 = vmul.f32 %v5679_v3, %v2488_v0  ;;  %v5696_v45 = vpop.eup %3661  ;;  %v2482_v34 = vmul.f32 1.0614054, %v5694_v54  ;;  %3677 = vpow2.f32 %v2579_v62 }
 0x44e   :  { %v2509_v52 = vmul.f32 %v5674_v24, %v2501_v47  ;;  %v2495_v5 = vmul.f32 %v5681_v22, %v2487_v60  ;;  %v2481_v42 = vmul.f32 1.0614054, %v5696_v45  ;;  %3679 = vpow2.f32 %v2577_v11 }
 0x44f   :  { %v2518_v31 = vadd.f32 -0.28449672, %v2510_v43  ;;  %v2504_v13 = vadd.f32 1.4214138, %v2496_v2  ;;  %v2490_v55 = vadd.f32 -1.4531521, %v2482_v34 }
 0x450   :  { %v2517_v23 = vadd.f32 -0.28449672, %v2509_v52  ;;  %v2503_v6 = vadd.f32 1.4214138, %v2495_v5  ;;  %v5704_v29 = vpop.eup %3663  ;;  %v2489_v30 = vadd.f32 -1.4531521, %v2481_v42 }
 0x451   :  { %v2526_v53 = vmul.f32 %v5671_v10, %v2518_v31  ;;  %v2512_v46 = vmul.f32 %v5679_v3, %v2504_v13  ;;  %v2498_v4 = vmul.f32 %v5694_v54, %v2490_v55  ;;  %v2484_v7 = vmul.f32 1.0614054, %v5704_v29  ;;  %v5712_v37 = vpop.eup %3665 }
 0x452   :  { %v2525_v21 = vmul.f32 %v5674_v24, %v2517_v23  ;;  %v2511_v44 = vmul.f32 %v5681_v22, %v2503_v6  ;;  %v2497_v16 = vmul.f32 %v5696_v45, %v2489_v30  ;;  %v3668_v9 = vpop.eup %3667  ;;  %v2483_v43 = vmul.f32 1.0614054, %v5712_v37 }
 0x453   :  { %v2534_v28 = vadd.f32 0.2548296, %v2526_v53  ;;  %v2520_v48 = vadd.f32 -0.28449672, %v2512_v46  ;;  %v2506_v15 = vadd.f32 1.4214138, %v2498_v4  ;;  %v3670_v2 = vpop.eup %3669 }
 0x454   :  { %v2533_v8 = vadd.f32 0.2548296, %v2525_v21  ;;  %v2519_v56 = vadd.f32 -0.28449672, %v2511_v44  ;;  %v2492_v61 = vadd.f32 -1.4531521, %v2484_v7  ;;  %v3672_v5 = vpop.eup %3671 }
 0x455   :  { %v2542_v17 = vmul.f32 %v5671_v10, %v2534_v28  ;;  %v2528_v35 = vmul.f32 %v5679_v3, %v2520_v48  ;;  %v2505_v58 = vadd.f32 1.4214138, %v2497_v16  ;;  %v2514_v52 = vmul.f32 %v5694_v54, %v2506_v15  ;;  %v3674_v23 = vpop.eup %3673 }
 0x456   :  { %v2541_v12 = vmul.f32 %v5674_v24, %v2533_v8  ;;  %v2527_v32 = vmul.f32 %v5681_v22, %v2519_v56  ;;  %v2491_v38 = vadd.f32 -1.4531521, %v2483_v43  ;;  %v3676_v42 = vpop.eup %3675 }
 0x457   :  { %v2582_v0 = vmul.f32 %v3658_v25, %v2542_v17  ;;  %v2536_v10 = vadd.f32 0.2548296, %v2528_v35  ;;  %v2500_v25 = vmul.f32 %v5704_v29, %v2492_v61  ;;  %v2513_v13 = vmul.f32 %v5696_v45, %v2505_v58  ;;  %v3678_v55 = vpop.eup %3677 }
 0x458   :  { %v2581_v47 = vmul.f32 %v3668_v9, %v2541_v12  ;;  %v2535_v60 = vadd.f32 0.2548296, %v2527_v32  ;;  %v2522_v53 = vadd.f32 -0.28449672, %v2514_v52  ;;  %v2499_v44 = vmul.f32 %v5712_v37, %v2491_v38  ;;  %v3680_v32 = vpop.eup %3679 }
 0x459   :  { %v2590_v14 = vsub.f32 1.0, %v2582_v0  ;;  %v2544_v24 = vmul.f32 %v5679_v3, %v2536_v10  ;;  %v2508_v46 = vadd.f32 1.4214138, %v2500_v25  ;;  %v2521_v21 = vadd.f32 -0.28449672, %v2513_v13 }
 0x45a   :  { %v2589_v19 = vsub.f32 1.0, %v2581_v47  ;;  %v2543_v31 = vmul.f32 %v5681_v22, %v2535_v60  ;;  %v2530_v22 = vmul.f32 %v5694_v54, %v2522_v53  ;;  %v2507_v0 = vadd.f32 1.4214138, %v2499_v44 }
 0x45b   :  { %v2606_v6 = vsub.f32 0.0, %v2590_v14  ;;  %v2584_v62 = vmul.f32 %v3670_v2, %v2544_v24  ;;  %v2516_v48 = vmul.f32 %v5704_v29, %v2508_v46  ;;  %v2529_v17 = vmul.f32 %v5696_v45, %v2521_v21 }
 0x45c   :  { %v2605_v34 = vsub.f32 0.0, %v2589_v19  ;;  %v2583_v3 = vmul.f32 %v3672_v5, %v2543_v31  ;;  %v2538_v7 = vadd.f32 0.2548296, %v2530_v22  ;;  %v2425_v46 = vmul.f32 0.5, %v5645_v27 }
 0x45d   :  { %v2614_v11 = vsel %vm2598_vm14, %v2590_v14, %v2606_v6  ;;  %v2592_v28 = vsub.f32 1.0, %v2584_v62  ;;  %v2524_v12 = vadd.f32 -0.28449672, %v2516_v48  ;;  %v2537_v9 = vadd.f32 0.2548296, %v2529_v17  ;;  %v1903_v17 = vld [vmem:[%s5938_s3 + $0x70] sm:$0xff] }
 0x45e   :  { %v2622_v8 = vadd.f32 1.0, %v2614_v11  ;;  %v2613_v56 = vsel %vm2597_vm2, %v2589_v19, %v2605_v34  ;;  %v2591_v30 = vsub.f32 1.0, %v2583_v3  ;;  %v2546_v57 = vmul.f32 %v5694_v54, %v2538_v7 }
 0x45f   :  { %v2621_v35 = vadd.f32 1.0, %v2613_v56  ;;  %v2608_v4 = vsub.f32 0.0, %v2592_v28  ;;  %v2532_v61 = vmul.f32 %v5704_v29, %v2524_v12  ;;  %v2545_v58 = vmul.f32 %v5696_v45, %v2537_v9  ;;  %v1898_v56 = vld [vmem:[%s5938_s3 + $0x48] sm:$0xff]  ;;  %v2643_v9 = vpop.permute.xlu0 %2642 }
 0x460   :  { %v2630_v49 = vmul.f32 %v2622_v8, %v5656_v59  ;;  %v2607_v16 = vsub.f32 0.0, %v2591_v30  ;;  %v2515_v59 = vmul.f32 %v5712_v37, %v2507_v0  ;;  %v2586_v2 = vmul.f32 %v3674_v23, %v2546_v57 }
 0x461   :  { %v2629_v10 = vmul.f32 %v2621_v35, %v5661_v26  ;;  %v2616_v15 = vsel %vm2600_vm13, %v2592_v28, %v2608_v4  ;;  %v2540_v14 = vadd.f32 0.2548296, %v2532_v61  ;;  %v2585_v41 = vmul.f32 %v3676_v42, %v2545_v58  ;;  %v1904_v35 = vld [vmem:[%s5938_s3 + $0x78] sm:$0xff] }
 0x462   :  { %v2624_v47 = vadd.f32 1.0, %v2616_v15  ;;  %v2615_v60 = vsel %vm2599_vm0, %v2591_v30, %v2607_v16  ;;  %v2523_v52 = vadd.f32 -0.28449672, %v2515_v59  ;;  %v2594_v25 = vsub.f32 1.0, %v2586_v2  ;;  %v1902_v30 = vld [vmem:[%s5938_s3 + $0x68] sm:$0xff] }
 0x463   :  { %v2623_v43 = vadd.f32 1.0, %v2615_v60  ;;  %v3420_v24 = vpack.c.bf16 %v2630_v49, %v2629_v10  ;;  %v2548_v5 = vmul.f32 %v5704_v29, %v2540_v14  ;;  %v2593_v36 = vsub.f32 1.0, %v2585_v41  ;;  %v2639_v49 = vpop.permute.xlu1 %2638 }
 0x464   :  { %v2632_v26 = vmul.f32 %v2624_v47, %v5666_v1  ;;  %v2531_v19 = vmul.f32 %v5712_v37, %v2523_v52  ;;  %v2610_v45 = vsub.f32 0.0, %v2594_v25  ;;  %v2427_v48 = vmul.f32 0.5, %v5659_v39  ;;  %v1900_v39 = vld [vmem:[%s5938_s3 + $0x58] sm:$0xff] }
 0x465   :  { %v2631_v54 = vmul.f32 %v2623_v43, %v5691_v40  ;;  %3421 = vmatprep.subr.bf16.mxu1 %v3420_v24  ;;  %v2588_v31 = vmul.f32 %v3678_v55, %v2548_v5  ;;  %v2609_v38 = vsub.f32 0.0, %v2593_v36  ;;  %v2426_v40 = vmul.f32 0.5, %v5643_v63 }
 0x466   :  { %3423 = vmatpush3.bf16.msra.mxu1 %v3420_v24  ;;  %v2539_v23 = vadd.f32 0.2548296, %v2531_v19  ;;  %v2618_v1 = vsel %vm2602_vm8, %v2594_v25, %v2610_v45  ;;  %v2428_v63 = vmul.f32 0.5, %v5654_v50  ;;  %v1899_v50 = vld [vmem:[%s5938_s3 + $0x50] sm:$0xff]  ;;  %v3758_v4 = vmov 0.0|0.0  }
 0x467   :  { %v3424_v13 = vpack.c.bf16 %v2632_v26, %v2631_v54  ;;  %v2596_v6 = vsub.f32 1.0, %v2588_v31  ;;  %v2626_v29 = vadd.f32 1.0, %v2618_v1  ;;  %v2617_v62 = vsel %vm2601_vm11, %v2593_v36, %v2609_v38  ;;  %3436 = vmatprep.subr.bf16.mxu0 %v3758_v4  ;;  %v2647_v16 = vpop.permute.xlu1 %2646 }
 0x468   :  { %v2547_v53 = vmul.f32 %v5712_v37, %v2539_v23  ;;  %v2625_v34 = vadd.f32 1.0, %v2617_v62  ;;  %v3760_v7 = vmov 0.0   ;;  %v3761_v12 = vmov 5   ;;  %v2655_v23 = vpop.permute.xlu0 %2654 }
 0x469   :  { %3425 = vmatprep.subr.bf16.mxu1 %v3424_v13  ;;  %v2612_v3 = vsub.f32 0.0, %v2596_v6  ;;  %v2634_v21 = vmul.f32 %v2626_v29, %v2426_v40  ;;  %3369 = vmatprep.mubr.msk.f32.mxu0 %vm3759_vm12, %v3760_v7 }
 0x46a   :  { %3427 = vmatpush3.bf16.msra.mxu1 %v3424_v13  ;;  %v2587_v33 = vmul.f32 %v3680_v32, %v2547_v53  ;;  %v2633_v44 = vmul.f32 %v2625_v34, %v2425_v46  ;;  %3552 = vset.pattern.permute.xlu0 %v3761_v12  ;;  %v3722_v32 = vld [vmem:[%s5936_s1] sm:$0xff] }
 0x46b   :  { %v2620_v42 = vsel %vm2604_vm7, %v2596_v6, %v2612_v3  ;;  %3015 = vperm.xlu0 %3552, %v3722_v32   ;;  %v2651_v47 = vpop.permute.xlu1 %2650 }
 0x46c   :  { %v2595_v18 = vsub.f32 1.0, %v2587_v33  ;;  %v2628_v11 = vadd.f32 1.0, %v2620_v42  ;;  %v3428_v28 = vpack.c.bf16 %v2634_v21, %v2633_v44 }
 0x46e   :  { %v2611_v22 = vsub.f32 0.0, %v2595_v18  ;;  %3429 = vmatprep.subr.bf16.mxu1 %v3428_v28  ;;  %v2636_v27 = vmul.f32 %v2628_v11, %v2428_v63 }
 0x46f   :  { %3431 = vmatpush3.bf16.msra.mxu1 %v3428_v28  ;;  %v2659_v31 = vpop.permute.xlu1 %2658  ;;  %v2663_v28 = vpop.permute.xlu0 %2662 }
 0x470   :  { %v2619_v37 = vsel %vm2603_vm1, %v2595_v18, %v2611_v22 }
 0x471   :  { %v2627_v55 = vadd.f32 1.0, %v2619_v37 }
 0x473   :  { %v2635_v8 = vmul.f32 %v2627_v55, %v2427_v48  ;;  %v2667_v44 = vpop.permute.xlu1 %2666 }
 0x475   :  { %v3432_v20 = vpack.c.bf16 %v2636_v27, %v2635_v8 }
 0x477   :  { %3433 = vmatprep.subr.bf16.mxu1 %v3432_v20 }
 0x478   :  { %3435 = vmatpush3.bf16.msra.mxu1 %v3432_v20 }
 0x47b   :  { %3342 = vmatmul.mubr.msk.f32.vlgmr.msra.gmra.mrb[8].mxu1 %vm2291_vm15, %v1898_v56 }
 0x47c   :  { %3344 = vmatprep.mubr.msk.f32.mxu1 %vm2291_vm15, %v1899_v50 }
 0x47f   :  { %3345 = vmatmul.mubr.msk.f32.gmra.mrb[10].mxu1 %vm2291_vm15, %v1900_v39 }
 0x480   :  { %3347 = vmatprep.mubr.msk.f32.mxu1 %vm2291_vm15, %v1901_v51 }
 0x483   :  { %3348 = vmatmul.mubr.msk.f32.gmra.mrb[12].mxu1 %vm2291_vm15, %v1902_v30 }
 0x484   :  { %3350 = vmatprep.mubr.msk.f32.mxu1 %vm2291_vm15, %v1903_v17 }
 0x487   :  { %3351 = vmatmul.mubr.msk.f32.gmra.mrb[14].mxu1 %vm2291_vm15, %v1904_v35 }
 0x54e   :  { %v3343_v0 = vpop.f32.mrb[8].mxu1 }
 0x54f   :  { %v2765_v10 = vadd.f32 %v3343_v0, %v2643_v9  ;;  %v2759_v15 = vpop.f32.mrb[9].mxu1 }
 0x550   :  { %v2760_v57 = vadd.f32 %v2759_v15, %v2639_v49 }
 0x551   :  { %v5788_v61 = vmul.f32 0.70710677, %v2765_v10  ;;  %v5816_v27 = vmul.f32 0.5, %v2765_v10 }
 0x552   :  { %v5790_v60 = vmul.f32 0.70710677, %v2760_v57  ;;  %v3346_v58 = vpop.f32.mrb[10].mxu1  ;;  %v5821_v8 = vmul.f32 0.5, %v2760_v57 }
 0x553   :  { %v2815_v59 = vand.u32 2147483647, %v5788_v61  ;;  %v2775_v43 = vadd.f32 %v3346_v58, %v2651_v47  ;;  %v2769_v2 = vpop.f32.mrb[11].mxu1  ;;  %vm2975_vm6 = vcmp.ge.f32.partialorder %v5788_v61, 0.0 }
 0x554   :  { %v2814_v14 = vand.u32 2147483647, %v5790_v60  ;;  %v5794_v24 = vadd.f32 %v2769_v2, %v2647_v16  ;;  %vm2974_vm3 = vcmp.ge.f32.partialorder %v5790_v60, 0.0 }
 0x555   :  { %v2823_v26 = vmul.f32 0.3275911, %v2815_v59  ;;  %v5796_v41 = vmul.f32 0.70710677, %v2775_v43  ;;  %v2927_v36 = vmul.f32 %v2815_v59, %v2815_v59  ;;  %v5826_v39 = vmul.f32 0.5, %v2775_v43 }
 0x556   :  { %v2822_v52 = vmul.f32 0.3275911, %v2814_v14  ;;  %v5799_v54 = vmul.f32 0.70710677, %v5794_v24  ;;  %v3349_v25 = vpop.f32.mrb[12].mxu1  ;;  %v2926_v21 = vmul.f32 %v2814_v14, %v2814_v14 }
 0x557   :  { %v2831_v5 = vadd.f32 1.0, %v2823_v26  ;;  %v2817_v19 = vand.u32 2147483647, %v5796_v41  ;;  %v2779_v45 = vpop.f32.mrb[13].mxu1  ;;  %v2935_v29 = vsub.f32 0.0, %v2927_v36  ;;  %v5803_v53 = vadd.f32 %v3349_v25, %v2659_v31 }
 0x558   :  { %v2830_v13 = vadd.f32 1.0, %v2822_v52  ;;  %v2816_v38 = vand.u32 2147483647, %v5799_v54  ;;  %v5805_v3 = vadd.f32 %v2779_v45, %v2655_v23  ;;  %v2934_v20 = vsub.f32 0.0, %v2926_v21 }
 0x559   :  { %3681 = vrcp.f32 %v2831_v5  ;;  %v2825_v1 = vmul.f32 0.3275911, %v2817_v19  ;;  %v5808_v33 = vmul.f32 0.70710677, %v5803_v53  ;;  %v2929_v42 = vmul.f32 %v2817_v19, %v2817_v19 }
 0x55a   :  { %3683 = vrcp.f32 %v2830_v13  ;;  %v2824_v6 = vmul.f32 0.3275911, %v2816_v38  ;;  %v3352_v40 = vpop.f32.mrb[14].mxu1  ;;  %v5811_v18 = vmul.f32 0.70710677, %v5805_v3  ;;  %v2928_v22 = vmul.f32 %v2816_v38, %v2816_v38 }
 0x55b   :  { %v2833_v62 = vadd.f32 1.0, %v2825_v1  ;;  %v2789_v46 = vpop.f32.mrb[15].mxu1  ;;  %v2944_v11 = vmul.f32 1.442695, %v2935_v29  ;;  %v2819_v63 = vand.u32 2147483647, %v5808_v33  ;;  %v5814_v37 = vadd.f32 %v3352_v40, %v2667_v44 }
 0x55c   :  { %v2832_v34 = vadd.f32 1.0, %v2824_v6  ;;  %v2818_v48 = vand.u32 2147483647, %v5811_v18  ;;  %v5819_v55 = vadd.f32 %v2789_v46, %v2663_v28  ;;  %v2937_v51 = vsub.f32 0.0, %v2929_v42 }
 0x55d   :  { %3685 = vrcp.f32 %v2833_v62  ;;  %v2827_v56 = vmul.f32 0.3275911, %v2819_v63  ;;  %v5824_v50 = vmul.f32 0.70710677, %v5814_v37  ;;  %v2936_v7 = vsub.f32 0.0, %v2928_v22 }
 0x55e   :  { %3687 = vrcp.f32 %v2832_v34  ;;  %v2826_v30 = vmul.f32 0.3275911, %v2818_v48  ;;  %v5829_v17 = vmul.f32 0.70710677, %v5819_v55  ;;  %v2931_v9 = vmul.f32 %v2819_v63, %v2819_v63 }
 0x55f   :  { %3689 = vpow2.f32 %v2944_v11  ;;  %v2835_v12 = vadd.f32 1.0, %v2827_v56  ;;  %v2821_v32 = vand.u32 2147483647, %v5824_v50  ;;  %v2942_v57 = vmul.f32 1.442695, %v2934_v20 }
 0x560   :  { %v2834_v0 = vadd.f32 1.0, %v2826_v30  ;;  %v2820_v10 = vand.u32 2147483647, %v5829_v17  ;;  %v2948_v59 = vmul.f32 1.442695, %v2937_v51  ;;  %v2930_v43 = vmul.f32 %v2818_v48, %v2818_v48 }
 0x561   :  { %3691 = vrcp.f32 %v2835_v12  ;;  %v2829_v47 = vmul.f32 0.3275911, %v2821_v32  ;;  %v2933_v52 = vmul.f32 %v2821_v32, %v2821_v32  ;;  %v2946_v45 = vmul.f32 1.442695, %v2936_v7 }
 0x562   :  { %3693 = vrcp.f32 %v2834_v0  ;;  %v2828_v25 = vmul.f32 0.3275911, %v2820_v10  ;;  %v2939_v31 = vsub.f32 0.0, %v2931_v9  ;;  %v2938_v40 = vsub.f32 0.0, %v2930_v43 }
 0x563   :  { %v5831_v35 = vpop.eup %3681  ;;  %v2837_v26 = vadd.f32 1.0, %v2829_v47  ;;  %v2932_v29 = vmul.f32 %v2820_v10, %v2820_v10  ;;  %v2941_v34 = vsub.f32 0.0, %v2933_v52  ;;  %v5851_v22 = vmul.f32 0.5, %v5794_v24 }
 0x564   :  { %v5834_v49 = vpop.eup %3683  ;;  %v2855_v16 = vmul.f32 1.0614054, %v5831_v35  ;;  %v2836_v23 = vadd.f32 1.0, %v2828_v25  ;;  %v2952_v42 = vmul.f32 1.442695, %v2939_v31  ;;  %vm2977_vm10 = vcmp.ge.f32.partialorder %v5796_v41, 0.0 }
 0x565   :  { %v2854_v15 = vmul.f32 1.0614054, %v5834_v49  ;;  %3695 = vrcp.f32 %v2837_v26  ;;  %v2940_v48 = vsub.f32 0.0, %v2932_v29  ;;  %v2950_v51 = vmul.f32 1.442695, %v2938_v40 }
 0x566   :  { %v2863_v58 = vadd.f32 -1.4531521, %v2855_v16  ;;  %3697 = vrcp.f32 %v2836_v23  ;;  %v2956_v32 = vmul.f32 1.442695, %v2941_v34  ;;  %vm2976_vm9 = vcmp.ge.f32.partialorder %v5799_v54, 0.0 }
 0x567   :  { %v5839_v2 = vpop.eup %3685  ;;  %v2862_v14 = vadd.f32 -1.4531521, %v2854_v15  ;;  %3699 = vpow2.f32 %v2942_v57  ;;  %v2954_v47 = vmul.f32 1.442695, %v2940_v48  ;;  %vm2979_vm4 = vcmp.ge.f32.partialorder %v5808_v33, 0.0 }
 0x568   :  { %v5841_v5 = vpop.eup %3687  ;;  %v2871_v36 = vmul.f32 %v5831_v35, %v2863_v58  ;;  %v2857_v19 = vmul.f32 1.0614054, %v5839_v2  ;;  %3701 = vpow2.f32 %v2948_v59  ;;  %vm2978_vm5 = vcmp.ge.f32.partialorder %v5811_v18, 0.0 }
 0x569   :  { %v2870_v13 = vmul.f32 %v5834_v49, %v2862_v14  ;;  %v2856_v38 = vmul.f32 1.0614054, %v5841_v5  ;;  %v3690_v11 = vpop.eup %3689  ;;  %3703 = vpow2.f32 %v2946_v45  ;;  %vm2981_vm14 = vcmp.ge.f32.partialorder %v5824_v50, 0.0 }
 0x56a   :  { %v2879_v1 = vadd.f32 1.4214138, %v2871_v36  ;;  %v2865_v6 = vadd.f32 -1.4531521, %v2857_v19  ;;  %3705 = vpow2.f32 %v2952_v42  ;;  %vm2980_vm2 = vcmp.ge.f32.partialorder %v5829_v17, 0.0 }
 0x56b   :  { %v2878_v62 = vadd.f32 1.4214138, %v2870_v13  ;;  %v2864_v46 = vadd.f32 -1.4531521, %v2856_v38  ;;  %v5854_v30 = vpop.eup %3691  ;;  %3707 = vpow2.f32 %v2950_v51 }
 0x56c   :  { %v2887_v21 = vmul.f32 %v5831_v35, %v2879_v1  ;;  %v2873_v44 = vmul.f32 %v5839_v2, %v2865_v6  ;;  %v5856_v16 = vpop.eup %3693  ;;  %v2859_v0 = vmul.f32 1.0614054, %v5854_v30  ;;  %3709 = vpow2.f32 %v2956_v32 }
 0x56d   :  { %v2886_v28 = vmul.f32 %v5834_v49, %v2878_v62  ;;  %v2872_v63 = vmul.f32 %v5841_v5, %v2864_v46  ;;  %v2858_v57 = vmul.f32 1.0614054, %v5856_v16  ;;  %3711 = vpow2.f32 %v2954_v47 }
 0x56e   :  { %v2895_v20 = vadd.f32 -0.28449672, %v2887_v21  ;;  %v2881_v56 = vadd.f32 1.4214138, %v2873_v44  ;;  %v2867_v43 = vadd.f32 -1.4531521, %v2859_v0 }
 0x56f   :  { %v2894_v7 = vadd.f32 -0.28449672, %v2886_v28  ;;  %v2880_v12 = vadd.f32 1.4214138, %v2872_v63  ;;  %v5864_v14 = vpop.eup %3695  ;;  %v2866_v25 = vadd.f32 -1.4531521, %v2858_v57 }
 0x570   :  { %v2903_v9 = vmul.f32 %v5831_v35, %v2895_v20  ;;  %v2889_v24 = vmul.f32 %v5839_v2, %v2881_v56  ;;  %v2875_v45 = vmul.f32 %v5854_v30, %v2867_v43  ;;  %v2861_v31 = vmul.f32 1.0614054, %v5864_v14  ;;  %v5872_v13 = vpop.eup %3697 }
 0x571   :  { %v2902_v10 = vmul.f32 %v5834_v49, %v2894_v7  ;;  %v2888_v15 = vmul.f32 %v5841_v5, %v2880_v12  ;;  %v2874_v1 = vmul.f32 %v5856_v16, %v2866_v25  ;;  %v3700_v6 = vpop.eup %3699  ;;  %v2860_v44 = vmul.f32 1.0614054, %v5872_v13 }
 0x572   :  { %v2911_v58 = vadd.f32 0.2548296, %v2903_v9  ;;  %v2897_v59 = vadd.f32 -0.28449672, %v2889_v24  ;;  %v2883_v29 = vadd.f32 1.4214138, %v2875_v45  ;;  %v3702_v42 = vpop.eup %3701 }
 0x573   :  { %v2910_v26 = vadd.f32 0.2548296, %v2902_v10  ;;  %v2896_v52 = vadd.f32 -0.28449672, %v2888_v15  ;;  %v2869_v62 = vadd.f32 -1.4531521, %v2861_v31  ;;  %v3704_v48 = vpop.eup %3703 }
 0x574   :  { %v2919_v36 = vmul.f32 %v5831_v35, %v2911_v58  ;;  %v2905_v19 = vmul.f32 %v5839_v2, %v2897_v59  ;;  %v2882_v21 = vadd.f32 1.4214138, %v2874_v1  ;;  %v2891_v63 = vmul.f32 %v5854_v30, %v2883_v29  ;;  %v3706_v12 = vpop.eup %3705 }
 0x575   :  { %v2918_v38 = vmul.f32 %v5834_v49, %v2910_v26  ;;  %v2904_v23 = vmul.f32 %v5841_v5, %v2896_v52  ;;  %v2868_v7 = vadd.f32 -1.4531521, %v2860_v44  ;;  %v3708_v47 = vpop.eup %3707 }
 0x576   :  { %v2959_v40 = vmul.f32 %v3690_v11, %v2919_v36  ;;  %v2913_v35 = vadd.f32 0.2548296, %v2905_v19  ;;  %v2877_v11 = vmul.f32 %v5864_v14, %v2869_v62  ;;  %v2890_v51 = vmul.f32 %v5856_v16, %v2882_v21  ;;  %v3710_v26 = vpop.eup %3709 }
 0x577   :  { %v2958_v46 = vmul.f32 %v3700_v6, %v2918_v38  ;;  %v2912_v34 = vadd.f32 0.2548296, %v2904_v23  ;;  %v2899_v24 = vadd.f32 -0.28449672, %v2891_v63  ;;  %v2876_v57 = vmul.f32 %v5872_v13, %v2868_v7  ;;  %v3712_v1 = vpop.eup %3711 }
 0x578   :  { %v2967_v28 = vsub.f32 1.0, %v2959_v40  ;;  %v2921_v49 = vmul.f32 %v5839_v2, %v2913_v35  ;;  %v2885_v0 = vadd.f32 1.4214138, %v2877_v11  ;;  %v2898_v15 = vadd.f32 -0.28449672, %v2890_v51 }
 0x579   :  { %v2966_v20 = vsub.f32 1.0, %v2958_v46  ;;  %v2920_v56 = vmul.f32 %v5841_v5, %v2912_v34  ;;  %v2907_v5 = vmul.f32 %v5854_v30, %v2899_v24  ;;  %v2884_v35 = vadd.f32 1.4214138, %v2876_v57 }
 0x57a   :  { %v2983_v32 = vsub.f32 0.0, %v2967_v28  ;;  %v2961_v9 = vmul.f32 %v3702_v42, %v2921_v49  ;;  %v2893_v43 = vmul.f32 %v5864_v14, %v2885_v0  ;;  %v2906_v19 = vmul.f32 %v5856_v16, %v2898_v15 }
 0x57b   :  { %v2982_v10 = vsub.f32 0.0, %v2966_v20  ;;  %v2960_v2 = vmul.f32 %v3704_v48, %v2920_v56  ;;  %v2915_v38 = vadd.f32 0.2548296, %v2907_v5 }
 0x57c   :  { %v2991_v58 = vsel %vm2975_vm6, %v2967_v28, %v2983_v32  ;;  %v2969_v59 = vsub.f32 1.0, %v2961_v9  ;;  %v2901_v23 = vadd.f32 -0.28449672, %v2893_v43  ;;  %v2914_v40 = vadd.f32 0.2548296, %v2906_v19 }
 0x57d   :  { %v2999_v52 = vadd.f32 1.0, %v2991_v58  ;;  %v2990_v25 = vsel %vm2974_vm3, %v2966_v20, %v2982_v10  ;;  %v2968_v36 = vsub.f32 1.0, %v2960_v2  ;;  %v2923_v60 = vmul.f32 %v5854_v30, %v2915_v38 }
 0x57e   :  { %v2998_v45 = vadd.f32 1.0, %v2990_v25  ;;  %v2985_v31 = vsub.f32 0.0, %v2969_v59  ;;  %v2909_v46 = vmul.f32 %v5864_v14, %v2901_v23  ;;  %v2922_v44 = vmul.f32 %v5856_v16, %v2914_v40 }
 0x57f   :  { %v3007_v61 = vmul.f32 %v2999_v52, %v5816_v27  ;;  %v2984_v6 = vsub.f32 0.0, %v2968_v36  ;;  %v2892_v27 = vmul.f32 %v5872_v13, %v2884_v35  ;;  %v2963_v49 = vmul.f32 %v3706_v12, %v2923_v60 }
 0x580   :  { %v3006_v29 = vmul.f32 %v2998_v45, %v5821_v8  ;;  %v2993_v62 = vsel %vm2977_vm10, %v2969_v59, %v2985_v31  ;;  %v2917_v63 = vadd.f32 0.2548296, %v2909_v46  ;;  %v2962_v41 = vmul.f32 %v3708_v47, %v2922_v44 }
 0x581   :  { %v3001_v34 = vadd.f32 1.0, %v2993_v62  ;;  %v2992_v21 = vsel %vm2976_vm9, %v2968_v36, %v2984_v6  ;;  %v2900_v11 = vadd.f32 -0.28449672, %v2892_v27  ;;  %v2971_v48 = vsub.f32 1.0, %v2963_v49  ;;  %v1905_v36 = vld [vmem:[%s5938_s3 + $0x80] sm:$0xff] }
 0x582   :  { %v3437_v42 = vpack.c.bf16 %v3007_v61, %v3006_v29  ;;  %v3000_v28 = vadd.f32 1.0, %v2992_v21  ;;  %v2925_v20 = vmul.f32 %v5864_v14, %v2917_v63  ;;  %v2970_v54 = vsub.f32 1.0, %v2962_v41 }
 0x583   :  { %v3009_v8 = vmul.f32 %v3001_v34, %v5826_v39  ;;  %v2908_v56 = vmul.f32 %v5872_v13, %v2900_v11  ;;  %v2987_v51 = vsub.f32 0.0, %v2971_v48  ;;  %v2803_v14 = vmul.f32 0.5, %v5803_v53 }
 0x584   :  { %v3008_v30 = vmul.f32 %v3000_v28, %v5851_v22  ;;  %3438 = vmatpush3.bf16.msra.mxu0 %v3437_v42  ;;  %v2965_v7 = vmul.f32 %v3710_v26, %v2925_v20  ;;  %v2986_v12 = vsub.f32 0.0, %v2970_v54  ;;  %v2802_v10 = vmul.f32 0.5, %v5805_v3 }
 0x585   :  { %3439 = vmatprep.subr.bf16.mxu0 %v3758_v4  ;;  %v2916_v39 = vadd.f32 0.2548296, %v2908_v56  ;;  %v2995_v32 = vsel %vm2979_vm4, %v2971_v48, %v2987_v51  ;;  %v2805_v43 = vmul.f32 0.5, %v5814_v37  ;;  %v2804_v26 = vmul.f32 0.5, %v5819_v55  ;;  %v3016_v37 = vpop.permute.xlu0 %3015 }
 0x586   :  { %v3440_v16 = vpack.c.bf16 %v3009_v8, %v3008_v30  ;;  %v2973_v22 = vsub.f32 1.0, %v2965_v7  ;;  %v3003_v9 = vadd.f32 1.0, %v2995_v32  ;;  %v2994_v24 = vsel %vm2978_vm5, %v2970_v54, %v2986_v12 }
 0x587   :  { %v2924_v0 = vmul.f32 %v5872_v13, %v2916_v39  ;;  %v3002_v2 = vadd.f32 1.0, %v2994_v24 }
 0x588   :  { %3441 = vmatpush3.bf16.msra.mxu0 %v3440_v16  ;;  %v2989_v15 = vsub.f32 0.0, %v2973_v22  ;;  %v3011_v33 = vmul.f32 %v3003_v9, %v2803_v14 }
 0x589   :  { %3442 = vmatprep.subr.bf16.mxu0 %v3758_v4  ;;  %v2964_v57 = vmul.f32 %v3712_v1, %v2924_v0  ;;  %v3010_v47 = vmul.f32 %v3002_v2, %v2802_v10 }
 0x58a   :  { %v2997_v18 = vsel %vm2981_vm14, %v2973_v22, %v2989_v15 }
 0x58b   :  { %v2972_v58 = vsub.f32 1.0, %v2964_v57  ;;  %v3443_v59 = vpack.c.bf16 %v3011_v33, %v3010_v47  ;;  %v3005_v5 = vadd.f32 1.0, %v2997_v18 }
 0x58d   :  { %v2988_v53 = vsub.f32 0.0, %v2972_v58  ;;  %3444 = vmatpush3.bf16.msra.mxu0 %v3443_v59  ;;  %v3013_v3 = vmul.f32 %v3005_v5, %v2805_v43 }
 0x58e   :  { %3445 = vmatprep.subr.bf16.mxu0 %v3758_v4 }
 0x58f   :  { %v2996_v13 = vsel %vm2980_vm2, %v2972_v58, %v2988_v53 }
 0x590   :  { %v3004_v52 = vadd.f32 1.0, %v2996_v13 }
 0x592   :  { %v3012_v50 = vmul.f32 %v3004_v52, %v2804_v26 }
 0x594   :  { %v3446_v25 = vpack.c.bf16 %v3013_v3, %v3012_v50 }
 0x596   :  { %3447 = vmatpush3.bf16.msra.mxu0 %v3446_v25 }
 0x599   :  { %3370 = vmatmul.mubr.msk.f32.vlgmr.msra.gmra.mrb[8].mxu0 %vm2291_vm15, %v1905_v36 }
 0x66c   :  { %v3087_v17 = vpop.f32.mrb[8].mxu0 }
 0x66d   :  { %v3088_v19 = vadd.f32 %v3087_v17, %v3016_v37  ;;  %v3371_v45 = vpop.f32.mrb[9].mxu0 }
 0x66f   :  { %3091 = vst [vmem:[#allocation2] sm:$0xff] %v3088_v19 }
 0x670   :  { %3734 = shalt.err (!%p3731_p4)
}
 0x671   :  { %s3735_s3 = scalar_lea.hbm %s5939_s4, 128 }
 0x672   :  { %p3736_p5 = scmp.ne.s32.totalorder %s5939_s4, %s3735_s3  ;;  %p3739_p6 = scmp.lt.u32.totalorder %s3735_s3, %s5939_s4 }
 0x674   :  { %p3741_p7 = pnand %p3739_p6, %p3736_p5 }
 0x676   :  { %3744 = shalt.err (!%p3741_p7)
}
 0x677   :  { %3101 = dma.vmem_to_hbm [thread:$0]  %s3099_s10, 128, %s5939_s4, [#allocation3]  }
 0x678   :  { %3745 = dma.done.wait [#allocation3], 128  }
 0x679   :  { %3746 = vsyncadd [#allocation3], 4294967168 }
 0x67a   :  { %3105 = vsyncpa [#allocation3], 1 }

</bundles_post_ra>
